<compile_context>
chip_gen: v5e
topology: v5e:2x2
jax: 0.10.0
libtpu: 0.0.40
codegen_flags: <defaults>
</compile_context>

<pallas_src>
import numpy as np
import jax
import jax.numpy as jnp
from jax.experimental import pallas as pl
from jax.experimental.pallas import tpu as pltpu


def _sigmoid(x):
    return 1.0 / (1.0 + jnp.exp(-x))


# -------------------------------------------- fused recurrent decoder kernel -
def _make_fused_decoder_kernel(num_layers, T, B, S, E, H, Vp):
    f32, bf16 = jnp.float32, jnp.bfloat16
    n_upper = 3 * (num_layers - 1)

    def kernel(*refs):
        (emb_ref, gbias0_ref, annot_ref, ascore_ref,
         w_e_ref, w_c_ref, w_h0_ref) = refs[:7]
        upper_refs = refs[7:7 + n_upper]
        (w_ah_ref, b_ah_ref, w_o_ref, b_o_ref,
         w_p1_ref, w_p2_ref, b_p_ref, w_out_ref, b_out_ref) = \
            refs[7 + n_upper:16 + n_upper]
        scores_ref, h_ref, c_ref = refs[16 + n_upper:19 + n_upper]
        out_hist_ref, ctx_hist_ref = refs[19 + n_upper:]

        # Only loop-invariant *activations* are hoisted (a few vregs); weights
        # and biases are loaded at their use sites to keep vreg pressure low.
        annot = annot_ref[...]                                    # (B,S,2H) f32
        ascore = ascore_ref[...]                                  # (B,S,H)  f32
        gbias0 = gbias0_ref[...]                                  # (B,4H)   f32
        w_o_bc = jnp.broadcast_to(w_o_ref[...], (B, S, H))        # hoisted bcast
        b_o = b_o_ref[...]                                        # (1,1)

        def sigmoid(x):
            # One EUP op (tanh) instead of exp + reciprocal; exact.
            return 0.5 * jnp.tanh(0.5 * x) + 0.5

        def lstm_cell(gates, c_prev):
            i = sigmoid(gates[:, 0:H])
            f = sigmoid(gates[:, H:2 * H])
            g = jnp.tanh(gates[:, 2 * H:3 * H])
            o = sigmoid(gates[:, 3 * H:4 * H])
            c_new = f * c_prev + i * g
            h_new = o * jnp.tanh(c_new)
            return h_new, c_new

        hs = [jnp.zeros((B, H), f32) for _ in range(num_layers)]
        cs = [jnp.zeros((B, H), f32) for _ in range(num_layers)]
        ctx = jnp.zeros((B, 2 * H), f32)

        # Fully unrolled recurrence (T=6); static indices -> static history
        # stores.  Only the serial h/c/ctx chain lives in this loop.
        for t in range(T):
            emb_t = emb_ref[t]                                    # (B,E) bf16

            # LSTM layer 0: input = [word ; z ; context]; the z part (and
            # layer-0 biases) is pre-folded into gbias0.
            gates = (jnp.dot(emb_t, w_e_ref[...], preferred_element_type=f32)
                     + jnp.dot(ctx.astype(bf16), w_c_ref[...],
                               preferred_element_type=f32)
                     + jnp.dot(hs[0].astype(bf16), w_h0_ref[...],
                               preferred_element_type=f32)
                     + gbias0)
            hs[0], cs[0] = lstm_cell(gates, cs[0])
            out = hs[0]

            # Upper LSTM layers (eval: inter-layer dropout == identity).
            for l in range(1, num_layers):
                w_ih_ref = upper_refs[3 * (l - 1)]
                w_hh_ref = upper_refs[3 * (l - 1) + 1]
                b_l_ref = upper_refs[3 * (l - 1) + 2]
                gates = (jnp.dot(out.astype(bf16), w_ih_ref[...],
                                 preferred_element_type=f32)
                         + jnp.dot(hs[l].astype(bf16), w_hh_ref[...],
                                   preferred_element_type=f32)
                         + b_l_ref[...])
                hs[l], cs[l] = lstm_cell(gates, cs[l])
                out = hs[l]

            # Bahdanau attention; softmax axis (S) on lanes; exact normalizer.
            hsc = (jnp.dot(out.astype(bf16), w_ah_ref[...],
                           preferred_element_type=f32) + b_ah_ref[...])
            e = jnp.tanh(hsc[:, None, :] + ascore)                # (B,S,H)
            logits = jnp.sum(e * w_o_bc, axis=-1) + b_o           # (B,S)
            mx = jnp.max(logits, axis=-1, keepdims=True)
            pexp = jnp.exp(logits - mx)
            attn = pexp / jnp.sum(pexp, axis=-1, keepdims=True)   # (B,S)
            ctx = jnp.sum(attn[:, :, None] * annot, axis=1)       # (B,2H)

            # Stash recurrent outputs; all scoring happens after the loop.
            out_hist_ref[pl.ds(t * B, B), :] = out
            ctx_hist_ref[pl.ds(t * B, B), :] = ctx

        for l in range(num_layers):
            h_ref[l] = hs[l]
            c_ref[l] = cs[l]

        # Post-loop batched scoring over all T*B rows (off the recurrent
        # chain): penult (split matmuls == cat(out,ctx) @ W_p without a lane
        # concat) + tied vocab projection + log-softmax, one dense store.
        outs = out_hist_ref[...]                                  # (T*B,H)  f32
        ctxs = ctx_hist_ref[...]                                  # (T*B,2H) f32
        y = (jnp.dot(outs.astype(bf16), w_p1_ref[...], preferred_element_type=f32)
             + jnp.dot(ctxs.astype(bf16), w_p2_ref[...], preferred_element_type=f32)
             + b_p_ref[...])                                      # (T*B,E)
        lg = (jnp.dot(y.astype(bf16), w_out_ref[...], preferred_element_type=f32)
              + b_out_ref[...])                                   # (T*B,Vp)
        m2 = jnp.max(lg, axis=-1, keepdims=True)
        sh = lg - m2
        lse = jnp.log(jnp.sum(jnp.exp(sh), axis=-1, keepdims=True))
        scores_ref[...] = sh - lse                                # lane-dense slab

    return kernel


# ------------------------------------------------- one-time weight repacking -
def prepare_params(p, E, H, L, num_layers):
    """One-time repacking of module weights into kernel-ready layout."""
    f32, bf16 = jnp.float32, jnp.bfloat16
    V = p["emb"].shape[0]
    Vp = ((V + 127) // 128) * 128

    lp0 = p["lstm"][0]
    w_ih0_t = lp0["w_ih"].T                                       # (E+2L+2H,4H)
    prep = {
        "emb_tbl": p["emb"].astype(bf16),                         # (V,E) gather
        "w_tp_t": p["w_tp"].T.astype(f32),                        # (L,2L)
        "b_tp": p["b_tp"].astype(f32),
        "w_z": w_ih0_t[E:E + 2 * L].astype(f32),                  # folded / call
        "b0": (lp0["b_ih"] + lp0["b_hh"]).astype(f32),            # (4H,)
        "w_e": w_ih0_t[:E].astype(bf16),                          # (E,4H)
        "w_c": w_ih0_t[E + 2 * L:].astype(bf16),                  # (2H,4H)
        "w_h0": lp0["w_hh"].T.astype(bf16),                       # (H,4H)
        "w_aa_t": p["w_aa"].T.astype(f32),                        # (2H,H)
        "b_aa": p["b_aa"].astype(f32),
        "w_ah": p["w_ah"].T.astype(bf16),                         # (H,H)
        "b_ah": p["b_ah"].reshape(1, H).astype(f32),
        "w_o": p["w_o"].reshape(1, H).astype(f32),
        "b_o": p["b_o"].reshape(1, 1).astype(f32),
        "w_p1": p["w_p"].T[:H].astype(bf16),                      # (H,E)
        "w_p2": p["w_p"].T[H:].astype(bf16),                      # (2H,E)
        "b_p": p["b_p"].reshape(1, E).astype(f32),
        # Tied output weight, padded to a lane-dense vocab; padding masked via bias.
        "w_out": jnp.pad(p["emb"].T, ((0, 0), (0, Vp - V))).astype(bf16),
        "b_out": jnp.pad(p["b_out"].reshape(1, V), ((0, 0), (0, Vp - V)),
                         constant_values=-1e30).astype(f32),
        "upper": [],
    }
    for lp in p["lstm"][1:]:
        prep["upper"] += [lp["w_ih"].T.astype(bf16), lp["w_hh"].T.astype(bf16),
                          (lp["b_ih"] + lp["b_hh"]).reshape(1, 4 * H).astype(f32)]
    return prep


# ---------------------------------------------------------------- forward ---
@jax.jit
def bahdanau_forward(prep, trg, z, encoded_src):
    f32 = jnp.float32
    T, B = trg.shape
    S = encoded_src.shape[0]
    H = prep["w_ah"].shape[0]
    E = prep["w_e"].shape[0]
    V = prep["emb_tbl"].shape[0]
    Vp = prep["w_out"].shape[1]
    num_layers = 1 + len(prep["upper"]) // 3

    # Tiny per-call XLA glue (fused under this jit with the pallas_call).
    emb = jnp.take(prep["emb_tbl"], trg, axis=0)                  # (T,B,E) bf16
    z2 = jnp.tanh(z @ prep["w_tp_t"] + prep["b_tp"])              # (B,2L)
    gbias0 = (z2 @ prep["w_z"] + prep["b0"]).astype(f32)          # (B,4H)
    ascore_b = jnp.transpose(encoded_src @ prep["w_aa_t"] + prep["b_aa"],
                             (1, 0, 2)).astype(f32)               # (B,S,H)
    annot_b = jnp.transpose(encoded_src, (1, 0, 2)).astype(f32)   # (B,S,2H)

    inputs = [emb, gbias0, annot_b, ascore_b,
              prep["w_e"], prep["w_c"], prep["w_h0"],
              *prep["upper"],
              prep["w_ah"], prep["b_ah"], prep["w_o"], prep["b_o"],
              prep["w_p1"], prep["w_p2"], prep["b_p"],
              prep["w_out"], prep["b_out"]]

    kernel = _make_fused_decoder_kernel(num_layers, T, B, S, E, H, Vp)
    vmem = pltpu.MemorySpace.VMEM
    out_shape = (
        jax.ShapeDtypeStruct((T * B, Vp), f32),                   # dense scores
        jax.ShapeDtypeStruct((num_layers, B, H), f32),
        jax.ShapeDtypeStruct((num_layers, B, H), f32),
    )

    # Advisory scheduling cost for XLA around the custom call.
    flops = int(
        T * (2 * B * (E + 3 * H) * 4 * H
             + (num_layers - 1) * 2 * B * 2 * H * 4 * H
             + 2 * B * H * H + 4 * B * S * H + 2 * B * S * 2 * H)
        + 2 * T * B * 3 * H * E + 2 * T * B * E * Vp)
    transc = int(T * B * (5 * H * num_layers + S * H + 2 * S) + T * B * (Vp + 1))
    bytes_acc = int(sum(int(np.prod(a.shape)) * a.dtype.itemsize for a in inputs)
                    + sum(int(np.prod(s.shape)) * s.dtype.itemsize for s in out_shape))

    scores_flat, hT, cT = pl.pallas_call(
        kernel,
        out_shape=out_shape,
        in_specs=[pl.BlockSpec(memory_space=vmem) for _ in inputs],
        out_specs=tuple(pl.BlockSpec(memory_space=vmem) for _ in out_shape),
        scratch_shapes=[pltpu.VMEM((T * B, H), f32),       # out history
                        pltpu.VMEM((T * B, 2 * H), f32)],  # ctx history
        cost_estimate=pl.CostEstimate(flops=flops, transcendentals=transc,
                                      bytes_accessed=bytes_acc),
    )(*inputs)

    scores = scores_flat.reshape(T, B, Vp)[:, :, :V]
    return scores, (hT, cT)


# ------------------------------------------------------------------ params ---
def init_params(key, V, E, H, L, num_layers):
    ks = iter(jax.random.split(key, 32))

    def u(shape, scale=0.1):
        return jax.random.uniform(next(ks), shape, jnp.float32, -scale, scale)

    p = {}
    p["emb"] = jax.random.uniform(next(ks), (V, E), jnp.float32, -1.0, 1.0)
    p["w_tp"] = u((2 * L, L)); p["b_tp"] = u((2 * L,))
    p["w_aa"] = u((H, 2 * H)); p["b_aa"] = u((H,))
    p["w_ah"] = u((H, H));     p["b_ah"] = u((H,))
    p["w_o"] = u((1, H));      p["b_o"] = u((1,))
    p["w_p"] = u((E, 3 * H));  p["b_p"] = u((E,))
    p["b_out"] = u((V,))
    d_in = E + 2 * L + 2 * H   # what forward() actually feeds the LSTM
    lstm = []
    for l in range(num_layers):
        din = d_in if l == 0 else H
        lstm.append(dict(w_ih=u((4 * H, din)), w_hh=u((4 * H, H)),
                         b_ih=u((4 * H,)), b_hh=u((4 * H,))))
    p["lstm"] = lstm
    return p


# ---------------------------------------------------- pure-JAX reference ----
def reference_forward(p, trg, z, encoded_src, num_layers, E, H, L):
    T, B = trg.shape
    emb = jnp.take(p["emb"], trg, axis=0)
    z2 = jnp.tanh(z @ p["w_tp"].T + p["b_tp"])
    x = jnp.concatenate([emb, jnp.broadcast_to(z2[None], (T, B, 2 * L))], axis=2)
    ascore = encoded_src @ p["w_aa"].T + p["b_aa"]

    def step(carry, x_t):
        h, c, ctx = carry
        layer_in = jnp.concatenate([x_t, ctx], axis=1)
        new_h, new_c = [], []
        for l, lp in enumerate(p["lstm"]):
            gates = (layer_in @ lp["w_ih"].T + lp["b_ih"]
                     + h[l] @ lp["w_hh"].T + lp["b_hh"])
            i = _sigmoid(gates[:, :H]); f = _sigmoid(gates[:, H:2 * H])
            g = jnp.tanh(gates[:, 2 * H:3 * H]); o = _sigmoid(gates[:, 3 * H:])
            c_n = f * c[l] + i * g
            h_n = o * jnp.tanh(c_n)
            new_h.append(h_n); new_c.append(c_n)
            layer_in = h_n
        out = layer_in
        hs = out @ p["w_ah"].T + p["b_ah"]
        e = jnp.tanh(hs[None] + ascore)
        logits = jnp.squeeze(e @ p["w_o"].T, -1) + p["b_o"][0]
        attn = jax.nn.softmax(logits, axis=0)
        ctx_n = jnp.einsum("sb,sbk->bk", attn, encoded_src)
        stacked = jnp.concatenate([out, ctx_n], axis=1)
        return (jnp.stack(new_h), jnp.stack(new_c), ctx_n), stacked

    carry0 = (jnp.zeros((num_layers, B, H)), jnp.zeros((num_layers, B, H)),
              jnp.zeros((B, 2 * H)))
    (hT, cT, _), all_scores = jax.lax.scan(step, carry0, x)
    y = all_scores @ p["w_p"].T + p["b_p"]
    logits = y @ p["emb"].T + p["b_out"]
    return jax.nn.log_softmax(logits, axis=2), (hT, cT)


# -------------------------------------------------------------------- main ---
if __name__ == "__main__":
    V, E, H, L, NL = 50, 16, 32, 8, 2     # vocab, embed, hidden, latent, layers
    T, S, B = 6, 8, 2                     # target len, source len, batch

    key = jax.random.PRNGKey(0)
    kp, kt, kz, ke = jax.random.split(key, 4)
    params = init_params(kp, V, E, H, L, NL)
    trg = jax.random.randint(kt, (T, B), 0, V, dtype=jnp.int32)
    z = jax.random.normal(kz, (B, L), jnp.float32)
    encoded_src = 0.5 * jax.random.normal(ke, (S, B, 2 * H), jnp.float32)

    prep = prepare_params(params, E, H, L, NL)     # one-time, off the hot path
    scores, (hT, cT) = bahdanau_forward(prep, trg, z, encoded_src)
    jax.block_until_ready((scores, hT, cT))

    ref_scores, (rhT, rcT) = reference_forward(params, trg, z, encoded_src,
                                               NL, E, H, L)
    np.testing.assert_allclose(np.asarray(scores), np.asarray(ref_scores),
                               rtol=5e-2, atol=5e-2)
    np.testing.assert_allclose(np.asarray(hT), np.asarray(rhT), rtol=5e-2, atol=5e-2)
    np.testing.assert_allclose(np.asarray(cT), np.asarray(rcT), rtol=5e-2, atol=5e-2)
    print("KERNEL_OK")
</pallas_src>

<mosaic_0001>
module attributes {stable_mosaic.version = 11 : i64} {
  func.func @kernel(%arg0: memref<6x2x16xbf16, #tpu.memory_space<vmem>>, %arg1: memref<2x128xf32, #tpu.memory_space<vmem>>, %arg2: memref<2x8x64xf32, #tpu.memory_space<vmem>>, %arg3: memref<2x8x32xf32, #tpu.memory_space<vmem>>, %arg4: memref<16x128xbf16, #tpu.memory_space<vmem>>, %arg5: memref<64x128xbf16, #tpu.memory_space<vmem>>, %arg6: memref<32x128xbf16, #tpu.memory_space<vmem>>, %arg7: memref<32x128xbf16, #tpu.memory_space<vmem>>, %arg8: memref<32x128xbf16, #tpu.memory_space<vmem>>, %arg9: memref<1x128xf32, #tpu.memory_space<vmem>>, %arg10: memref<32x32xbf16, #tpu.memory_space<vmem>>, %arg11: memref<1x32xf32, #tpu.memory_space<vmem>>, %arg12: memref<1x32xf32, #tpu.memory_space<vmem>>, %arg13: memref<1x1xf32, #tpu.memory_space<vmem>>, %arg14: memref<32x16xbf16, #tpu.memory_space<vmem>>, %arg15: memref<64x16xbf16, #tpu.memory_space<vmem>>, %arg16: memref<1x16xf32, #tpu.memory_space<vmem>>, %arg17: memref<16x128xbf16, #tpu.memory_space<vmem>>, %arg18: memref<1x128xf32, #tpu.memory_space<vmem>>, %arg19: memref<12x128xf32, #tpu.memory_space<vmem>>, %arg20: memref<2x2x32xf32, #tpu.memory_space<vmem>>, %arg21: memref<2x2x32xf32, #tpu.memory_space<vmem>>, %arg22: memref<12x32xf32, #tpu.memory_space<vmem>>, %arg23: memref<12x64xf32, #tpu.memory_space<vmem>>) attributes {dimension_semantics = [], scalar_prefetch = 0 : i64, scratch_operands = 2 : i64, tpu.core_type = #tpu.core_type<tc>} {
    %c0 = arith.constant 0 : index
    %c0_0 = arith.constant 0 : index
    %c0_1 = arith.constant 0 : index
    %0 = vector.load %arg2[%c0, %c0_0, %c0_1] : memref<2x8x64xf32, #tpu.memory_space<vmem>>, vector<2x8x64xf32>
    %c0_2 = arith.constant 0 : index
    %c0_3 = arith.constant 0 : index
    %c0_4 = arith.constant 0 : index
    %1 = vector.load %arg3[%c0_2, %c0_3, %c0_4] : memref<2x8x32xf32, #tpu.memory_space<vmem>>, vector<2x8x32xf32>
    %c0_5 = arith.constant 0 : index
    %c0_6 = arith.constant 0 : index
    %2 = vector.load %arg1[%c0_5, %c0_6] : memref<2x128xf32, #tpu.memory_space<vmem>>, vector<2x128xf32>
    %c0_7 = arith.constant 0 : index
    %c0_8 = arith.constant 0 : index
    %3 = vector.load %arg12[%c0_7, %c0_8] : memref<1x32xf32, #tpu.memory_space<vmem>>, vector<1x32xf32>
    %4 = vector.shape_cast %3 : vector<1x32xf32> to vector<1x1x32xf32>
    %5 = vector.broadcast %4 : vector<1x1x32xf32> to vector<2x8x32xf32>
    %c0_9 = arith.constant 0 : index
    %c0_10 = arith.constant 0 : index
    %6 = vector.load %arg13[%c0_9, %c0_10] : memref<1x1xf32, #tpu.memory_space<vmem>>, vector<1x1xf32>
    %cst = arith.constant 0.000000e+00 : f32
    %7 = vector.broadcast %cst : f32 to vector<2x32xf32>
    %cst_11 = arith.constant 0.000000e+00 : f32
    %8 = vector.broadcast %cst_11 : f32 to vector<2x32xf32>
    %cst_12 = arith.constant 0.000000e+00 : f32
    %9 = vector.broadcast %cst_12 : f32 to vector<2x32xf32>
    %cst_13 = arith.constant 0.000000e+00 : f32
    %10 = vector.broadcast %cst_13 : f32 to vector<2x32xf32>
    %cst_14 = arith.constant 0.000000e+00 : f32
    %11 = vector.broadcast %cst_14 : f32 to vector<2x64xf32>
    %c0_15 = arith.constant 0 : index
    %c0_16 = arith.constant 0 : index
    %c0_17 = arith.constant 0 : index
    %12 = vector.load %arg0[%c0_15, %c0_16, %c0_17] : memref<6x2x16xbf16, #tpu.memory_space<vmem>>, vector<1x2x16xbf16>
    %13 = vector.shape_cast %12 : vector<1x2x16xbf16> to vector<2x16xbf16>
    %c0_18 = arith.constant 0 : index
    %c0_19 = arith.constant 0 : index
    %14 = vector.load %arg4[%c0_18, %c0_19] : memref<16x128xbf16, #tpu.memory_space<vmem>>, vector<16x128xbf16>
    %cst_20 = arith.constant dense<0.000000e+00> : vector<2x128xf32>
    %15 = tpu.matmul %13, %14, %cst_20 {dimension_numbers = #tpu.dot_dimension_numbers<[1], [0], [0], [1], [0, 0, 1, 1], [], []>} : vector<2x16xbf16>, vector<16x128xbf16>, vector<2x128xf32> -> vector<2x128xf32>
    %16 = arith.truncf %11 : vector<2x64xf32> to vector<2x64xbf16>
    %c0_21 = arith.constant 0 : index
    %c0_22 = arith.constant 0 : index
    %17 = vector.load %arg5[%c0_21, %c0_22] : memref<64x128xbf16, #tpu.memory_space<vmem>>, vector<64x128xbf16>
    %cst_23 = arith.constant dense<0.000000e+00> : vector<2x128xf32>
    %18 = tpu.matmul %16, %17, %cst_23 {dimension_numbers = #tpu.dot_dimension_numbers<[1], [0], [0], [1], [0, 0, 1, 1], [], []>} : vector<2x64xbf16>, vector<64x128xbf16>, vector<2x128xf32> -> vector<2x128xf32>
    %19 = arith.addf %15, %18 : vector<2x128xf32>
    %20 = arith.truncf %7 : vector<2x32xf32> to vector<2x32xbf16>
    %c0_24 = arith.constant 0 : index
    %c0_25 = arith.constant 0 : index
    %21 = vector.load %arg6[%c0_24, %c0_25] : memref<32x128xbf16, #tpu.memory_space<vmem>>, vector<32x128xbf16>
    %cst_26 = arith.constant dense<0.000000e+00> : vector<2x128xf32>
    %22 = tpu.matmul %20, %21, %cst_26 {dimension_numbers = #tpu.dot_dimension_numbers<[1], [0], [0], [1], [0, 0, 1, 1], [], []>} : vector<2x32xbf16>, vector<32x128xbf16>, vector<2x128xf32> -> vector<2x128xf32>
    %23 = arith.addf %19, %22 : vector<2x128xf32>
    %24 = arith.addf %23, %2 : vector<2x128xf32>
    %25 = vector.extract_strided_slice %24 {offsets = [0, 0], sizes = [2, 32], strides = [1, 1]} : vector<2x128xf32> to vector<2x32xf32>
    %cst_27 = arith.constant 5.000000e-01 : f32
    %26 = vector.broadcast %cst_27 : f32 to vector<2x32xf32>
    %27 = arith.mulf %26, %25 : vector<2x32xf32>
    %28 = math.tanh %27 : vector<2x32xf32>
    %cst_28 = arith.constant 5.000000e-01 : f32
    %29 = vector.broadcast %cst_28 : f32 to vector<2x32xf32>
    %30 = arith.mulf %29, %28 : vector<2x32xf32>
    %cst_29 = arith.constant 5.000000e-01 : f32
    %31 = vector.broadcast %cst_29 : f32 to vector<2x32xf32>
    %32 = arith.addf %30, %31 : vector<2x32xf32>
    %33 = vector.extract_strided_slice %24 {offsets = [0, 32], sizes = [2, 32], strides = [1, 1]} : vector<2x128xf32> to vector<2x32xf32>
    %cst_30 = arith.constant 5.000000e-01 : f32
    %34 = vector.broadcast %cst_30 : f32 to vector<2x32xf32>
    %35 = arith.mulf %34, %33 : vector<2x32xf32>
    %36 = math.tanh %35 : vector<2x32xf32>
    %cst_31 = arith.constant 5.000000e-01 : f32
    %37 = vector.broadcast %cst_31 : f32 to vector<2x32xf32>
    %38 = arith.mulf %37, %36 : vector<2x32xf32>
    %cst_32 = arith.constant 5.000000e-01 : f32
    %39 = vector.broadcast %cst_32 : f32 to vector<2x32xf32>
    %40 = arith.addf %38, %39 : vector<2x32xf32>
    %41 = vector.extract_strided_slice %24 {offsets = [0, 64], sizes = [2, 32], strides = [1, 1]} : vector<2x128xf32> to vector<2x32xf32>
    %42 = math.tanh %41 : vector<2x32xf32>
    %43 = vector.extract_strided_slice %24 {offsets = [0, 96], sizes = [2, 32], strides = [1, 1]} : vector<2x128xf32> to vector<2x32xf32>
    %cst_33 = arith.constant 5.000000e-01 : f32
    %44 = vector.broadcast %cst_33 : f32 to vector<2x32xf32>
    %45 = arith.mulf %44, %43 : vector<2x32xf32>
    %46 = math.tanh %45 : vector<2x32xf32>
    %cst_34 = arith.constant 5.000000e-01 : f32
    %47 = vector.broadcast %cst_34 : f32 to vector<2x32xf32>
    %48 = arith.mulf %47, %46 : vector<2x32xf32>
    %cst_35 = arith.constant 5.000000e-01 : f32
    %49 = vector.broadcast %cst_35 : f32 to vector<2x32xf32>
    %50 = arith.addf %48, %49 : vector<2x32xf32>
    %51 = arith.mulf %40, %9 : vector<2x32xf32>
    %52 = arith.mulf %32, %42 : vector<2x32xf32>
    %53 = arith.addf %51, %52 : vector<2x32xf32>
    %54 = math.tanh %53 : vector<2x32xf32>
    %55 = arith.mulf %50, %54 : vector<2x32xf32>
    %56 = arith.truncf %55 : vector<2x32xf32> to vector<2x32xbf16>
    %c0_36 = arith.constant 0 : index
    %c0_37 = arith.constant 0 : index
    %57 = vector.load %arg7[%c0_36, %c0_37] : memref<32x128xbf16, #tpu.memory_space<vmem>>, vector<32x128xbf16>
    %cst_38 = arith.constant dense<0.000000e+00> : vector<2x128xf32>
    %58 = tpu.matmul %56, %57, %cst_38 {dimension_numbers = #tpu.dot_dimension_numbers<[1], [0], [0], [1], [0, 0, 1, 1], [], []>} : vector<2x32xbf16>, vector<32x128xbf16>, vector<2x128xf32> -> vector<2x128xf32>
    %59 = arith.truncf %8 : vector<2x32xf32> to vector<2x32xbf16>
    %c0_39 = arith.constant 0 : index
    %c0_40 = arith.constant 0 : index
    %60 = vector.load %arg8[%c0_39, %c0_40] : memref<32x128xbf16, #tpu.memory_space<vmem>>, vector<32x128xbf16>
    %cst_41 = arith.constant dense<0.000000e+00> : vector<2x128xf32>
    %61 = tpu.matmul %59, %60, %cst_41 {dimension_numbers = #tpu.dot_dimension_numbers<[1], [0], [0], [1], [0, 0, 1, 1], [], []>} : vector<2x32xbf16>, vector<32x128xbf16>, vector<2x128xf32> -> vector<2x128xf32>
    %62 = arith.addf %58, %61 : vector<2x128xf32>
    %c0_42 = arith.constant 0 : index
    %c0_43 = arith.constant 0 : index
    %63 = vector.load %arg9[%c0_42, %c0_43] : memref<1x128xf32, #tpu.memory_space<vmem>>, vector<1x128xf32>
    %64 = vector.broadcast %63 : vector<1x128xf32> to vector<2x128xf32>
    %65 = arith.addf %62, %64 : vector<2x128xf32>
    %66 = vector.extract_strided_slice %65 {offsets = [0, 0], sizes = [2, 32], strides = [1, 1]} : vector<2x128xf32> to vector<2x32xf32>
    %cst_44 = arith.constant 5.000000e-01 : f32
    %67 = vector.broadcast %cst_44 : f32 to vector<2x32xf32>
    %68 = arith.mulf %67, %66 : vector<2x32xf32>
    %69 = math.tanh %68 : vector<2x32xf32>
    %cst_45 = arith.constant 5.000000e-01 : f32
    %70 = vector.broadcast %cst_45 : f32 to vector<2x32xf32>
    %71 = arith.mulf %70, %69 : vector<2x32xf32>
    %cst_46 = arith.constant 5.000000e-01 : f32
    %72 = vector.broadcast %cst_46 : f32 to vector<2x32xf32>
    %73 = arith.addf %71, %72 : vector<2x32xf32>
    %74 = vector.extract_strided_slice %65 {offsets = [0, 32], sizes = [2, 32], strides = [1, 1]} : vector<2x128xf32> to vector<2x32xf32>
    %cst_47 = arith.constant 5.000000e-01 : f32
    %75 = vector.broadcast %cst_47 : f32 to vector<2x32xf32>
    %76 = arith.mulf %75, %74 : vector<2x32xf32>
    %77 = math.tanh %76 : vector<2x32xf32>
    %cst_48 = arith.constant 5.000000e-01 : f32
    %78 = vector.broadcast %cst_48 : f32 to vector<2x32xf32>
    %79 = arith.mulf %78, %77 : vector<2x32xf32>
    %cst_49 = arith.constant 5.000000e-01 : f32
    %80 = vector.broadcast %cst_49 : f32 to vector<2x32xf32>
    %81 = arith.addf %79, %80 : vector<2x32xf32>
    %82 = vector.extract_strided_slice %65 {offsets = [0, 64], sizes = [2, 32], strides = [1, 1]} : vector<2x128xf32> to vector<2x32xf32>
    %83 = math.tanh %82 : vector<2x32xf32>
    %84 = vector.extract_strided_slice %65 {offsets = [0, 96], sizes = [2, 32], strides = [1, 1]} : vector<2x128xf32> to vector<2x32xf32>
    %cst_50 = arith.constant 5.000000e-01 : f32
    %85 = vector.broadcast %cst_50 : f32 to vector<2x32xf32>
    %86 = arith.mulf %85, %84 : vector<2x32xf32>
    %87 = math.tanh %86 : vector<2x32xf32>
    %cst_51 = arith.constant 5.000000e-01 : f32
    %88 = vector.broadcast %cst_51 : f32 to vector<2x32xf32>
    %89 = arith.mulf %88, %87 : vector<2x32xf32>
    %cst_52 = arith.constant 5.000000e-01 : f32
    %90 = vector.broadcast %cst_52 : f32 to vector<2x32xf32>
    %91 = arith.addf %89, %90 : vector<2x32xf32>
    %92 = arith.mulf %81, %10 : vector<2x32xf32>
    %93 = arith.mulf %73, %83 : vector<2x32xf32>
    %94 = arith.addf %92, %93 : vector<2x32xf32>
    %95 = math.tanh %94 : vector<2x32xf32>
    %96 = arith.mulf %91, %95 : vector<2x32xf32>
    %97 = arith.truncf %96 : vector<2x32xf32> to vector<2x32xbf16>
    %c0_53 = arith.constant 0 : index
    %c0_54 = arith.constant 0 : index
    %98 = vector.load %arg10[%c0_53, %c0_54] : memref<32x32xbf16, #tpu.memory_space<vmem>>, vector<32x32xbf16>
    %cst_55 = arith.constant dense<0.000000e+00> : vector<2x32xf32>
    %99 = tpu.matmul %97, %98, %cst_55 {dimension_numbers = #tpu.dot_dimension_numbers<[1], [0], [0], [1], [0, 0, 1, 1], [], []>} : vector<2x32xbf16>, vector<32x32xbf16>, vector<2x32xf32> -> vector<2x32xf32>
    %c0_56 = arith.constant 0 : index
    %c0_57 = arith.constant 0 : index
    %100 = vector.load %arg11[%c0_56, %c0_57] : memref<1x32xf32, #tpu.memory_space<vmem>>, vector<1x32xf32>
    %101 = vector.broadcast %100 : vector<1x32xf32> to vector<2x32xf32>
    %102 = arith.addf %99, %101 : vector<2x32xf32>
    %103 = vector.shape_cast %102 : vector<2x32xf32> to vector<2x1x32xf32>
    %104 = vector.broadcast %103 : vector<2x1x32xf32> to vector<2x8x32xf32>
    %105 = arith.addf %104, %1 : vector<2x8x32xf32>
    %106 = math.tanh %105 : vector<2x8x32xf32>
    %107 = arith.mulf %106, %5 : vector<2x8x32xf32>
    %cst_58 = arith.constant dense<0.000000e+00> : vector<2x8xf32>
    %108 = vector.multi_reduction <add>, %107, %cst_58 [2] : vector<2x8x32xf32> to vector<2x8xf32>
    %109 = vector.broadcast %6 : vector<1x1xf32> to vector<2x8xf32>
    %110 = arith.addf %108, %109 : vector<2x8xf32>
    %cst_59 = arith.constant dense<0xFF800000> : vector<2xf32>
    %111 = vector.multi_reduction <maximumf>, %110, %cst_59 [1] : vector<2x8xf32> to vector<2xf32>
    %112 = vector.shape_cast %111 : vector<2xf32> to vector<2x1xf32>
    %113 = vector.broadcast %112 : vector<2x1xf32> to vector<2x8xf32>
    %114 = arith.subf %110, %113 : vector<2x8xf32>
    %115 = math.exp %114 : vector<2x8xf32>
    %cst_60 = arith.constant dense<0.000000e+00> : vector<2xf32>
    %116 = vector.multi_reduction <add>, %115, %cst_60 [1] : vector<2x8xf32> to vector<2xf32>
    %117 = vector.shape_cast %116 : vector<2xf32> to vector<2x1xf32>
    %118 = vector.broadcast %117 : vector<2x1xf32> to vector<2x8xf32>
    %119 = arith.divf %115, %118 : vector<2x8xf32>
    %120 = vector.shape_cast %119 : vector<2x8xf32> to vector<2x8x1xf32>
    %121 = vector.broadcast %120 : vector<2x8x1xf32> to vector<2x8x64xf32>
    %122 = arith.mulf %121, %0 : vector<2x8x64xf32>
    %cst_61 = arith.constant dense<0.000000e+00> : vector<2x64xf32>
    %123 = vector.multi_reduction <add>, %122, %cst_61 [1] : vector<2x8x64xf32> to vector<2x64xf32>
    %c0_62 = arith.constant 0 : index
    %c0_63 = arith.constant 0 : index
    %124 = vector.load %arg22[%c0_62, %c0_63] : memref<12x32xf32, #tpu.memory_space<vmem>>, vector<2x32xf32>
    tpu.vector_store %arg22[%c0_62, %c0_63], %96 {strides = array<i32>} : memref<12x32xf32, #tpu.memory_space<vmem>>, vector<2x32xf32>,
    %c0_64 = arith.constant 0 : index
    %c0_65 = arith.constant 0 : index
    %125 = vector.load %arg23[%c0_64, %c0_65] : memref<12x64xf32, #tpu.memory_space<vmem>>, vector<2x64xf32>
    tpu.vector_store %arg23[%c0_64, %c0_65], %123 {strides = array<i32>} : memref<12x64xf32, #tpu.memory_space<vmem>>, vector<2x64xf32>,
    %c1 = arith.constant 1 : index
    %c0_66 = arith.constant 0 : index
    %c0_67 = arith.constant 0 : index
    %126 = vector.load %arg0[%c1, %c0_66, %c0_67] : memref<6x2x16xbf16, #tpu.memory_space<vmem>>, vector<1x2x16xbf16>
    %127 = vector.shape_cast %126 : vector<1x2x16xbf16> to vector<2x16xbf16>
    %c0_68 = arith.constant 0 : index
    %c0_69 = arith.constant 0 : index
    %128 = vector.load %arg4[%c0_68, %c0_69] : memref<16x128xbf16, #tpu.memory_space<vmem>>, vector<16x128xbf16>
    %cst_70 = arith.constant dense<0.000000e+00> : vector<2x128xf32>
    %129 = tpu.matmul %127, %128, %cst_70 {dimension_numbers = #tpu.dot_dimension_numbers<[1], [0], [0], [1], [0, 0, 1, 1], [], []>} : vector<2x16xbf16>, vector<16x128xbf16>, vector<2x128xf32> -> vector<2x128xf32>
    %130 = arith.truncf %123 : vector<2x64xf32> to vector<2x64xbf16>
    %c0_71 = arith.constant 0 : index
    %c0_72 = arith.constant 0 : index
    %131 = vector.load %arg5[%c0_71, %c0_72] : memref<64x128xbf16, #tpu.memory_space<vmem>>, vector<64x128xbf16>
    %cst_73 = arith.constant dense<0.000000e+00> : vector<2x128xf32>
    %132 = tpu.matmul %130, %131, %cst_73 {dimension_numbers = #tpu.dot_dimension_numbers<[1], [0], [0], [1], [0, 0, 1, 1], [], []>} : vector<2x64xbf16>, vector<64x128xbf16>, vector<2x128xf32> -> vector<2x128xf32>
    %133 = arith.addf %129, %132 : vector<2x128xf32>
    %134 = arith.truncf %55 : vector<2x32xf32> to vector<2x32xbf16>
    %c0_74 = arith.constant 0 : index
    %c0_75 = arith.constant 0 : index
    %135 = vector.load %arg6[%c0_74, %c0_75] : memref<32x128xbf16, #tpu.memory_space<vmem>>, vector<32x128xbf16>
    %cst_76 = arith.constant dense<0.000000e+00> : vector<2x128xf32>
    %136 = tpu.matmul %134, %135, %cst_76 {dimension_numbers = #tpu.dot_dimension_numbers<[1], [0], [0], [1], [0, 0, 1, 1], [], []>} : vector<2x32xbf16>, vector<32x128xbf16>, vector<2x128xf32> -> vector<2x128xf32>
    %137 = arith.addf %133, %136 : vector<2x128xf32>
    %138 = arith.addf %137, %2 : vector<2x128xf32>
    %139 = vector.extract_strided_slice %138 {offsets = [0, 0], sizes = [2, 32], strides = [1, 1]} : vector<2x128xf32> to vector<2x32xf32>
    %cst_77 = arith.constant 5.000000e-01 : f32
    %140 = vector.broadcast %cst_77 : f32 to vector<2x32xf32>
    %141 = arith.mulf %140, %139 : vector<2x32xf32>
    %142 = math.tanh %141 : vector<2x32xf32>
    %cst_78 = arith.constant 5.000000e-01 : f32
    %143 = vector.broadcast %cst_78 : f32 to vector<2x32xf32>
    %144 = arith.mulf %143, %142 : vector<2x32xf32>
    %cst_79 = arith.constant 5.000000e-01 : f32
    %145 = vector.broadcast %cst_79 : f32 to vector<2x32xf32>
    %146 = arith.addf %144, %145 : vector<2x32xf32>
    %147 = vector.extract_strided_slice %138 {offsets = [0, 32], sizes = [2, 32], strides = [1, 1]} : vector<2x128xf32> to vector<2x32xf32>
    %cst_80 = arith.constant 5.000000e-01 : f32
    %148 = vector.broadcast %cst_80 : f32 to vector<2x32xf32>
    %149 = arith.mulf %148, %147 : vector<2x32xf32>
    %150 = math.tanh %149 : vector<2x32xf32>
    %cst_81 = arith.constant 5.000000e-01 : f32
    %151 = vector.broadcast %cst_81 : f32 to vector<2x32xf32>
    %152 = arith.mulf %151, %150 : vector<2x32xf32>
    %cst_82 = arith.constant 5.000000e-01 : f32
    %153 = vector.broadcast %cst_82 : f32 to vector<2x32xf32>
    %154 = arith.addf %152, %153 : vector<2x32xf32>
    %155 = vector.extract_strided_slice %138 {offsets = [0, 64], sizes = [2, 32], strides = [1, 1]} : vector<2x128xf32> to vector<2x32xf32>
    %156 = math.tanh %155 : vector<2x32xf32>
    %157 = vector.extract_strided_slice %138 {offsets = [0, 96], sizes = [2, 32], strides = [1, 1]} : vector<2x128xf32> to vector<2x32xf32>
    %cst_83 = arith.constant 5.000000e-01 : f32
    %158 = vector.broadcast %cst_83 : f32 to vector<2x32xf32>
    %159 = arith.mulf %158, %157 : vector<2x32xf32>
    %160 = math.tanh %159 : vector<2x32xf32>
    %cst_84 = arith.constant 5.000000e-01 : f32
    %161 = vector.broadcast %cst_84 : f32 to vector<2x32xf32>
    %162 = arith.mulf %161, %160 : vector<2x32xf32>
    %cst_85 = arith.constant 5.000000e-01 : f32
    %163 = vector.broadcast %cst_85 : f32 to vector<2x32xf32>
    %164 = arith.addf %162, %163 : vector<2x32xf32>
    %165 = arith.mulf %154, %53 : vector<2x32xf32>
    %166 = arith.mulf %146, %156 : vector<2x32xf32>
    %167 = arith.addf %165, %166 : vector<2x32xf32>
    %168 = math.tanh %167 : vector<2x32xf32>
    %169 = arith.mulf %164, %168 : vector<2x32xf32>
    %170 = arith.truncf %169 : vector<2x32xf32> to vector<2x32xbf16>
    %c0_86 = arith.constant 0 : index
    %c0_87 = arith.constant 0 : index
    %171 = vector.load %arg7[%c0_86, %c0_87] : memref<32x128xbf16, #tpu.memory_space<vmem>>, vector<32x128xbf16>
    %cst_88 = arith.constant dense<0.000000e+00> : vector<2x128xf32>
    %172 = tpu.matmul %170, %171, %cst_88 {dimension_numbers = #tpu.dot_dimension_numbers<[1], [0], [0], [1], [0, 0, 1, 1], [], []>} : vector<2x32xbf16>, vector<32x128xbf16>, vector<2x128xf32> -> vector<2x128xf32>
    %173 = arith.truncf %96 : vector<2x32xf32> to vector<2x32xbf16>
    %c0_89 = arith.constant 0 : index
    %c0_90 = arith.constant 0 : index
    %174 = vector.load %arg8[%c0_89, %c0_90] : memref<32x128xbf16, #tpu.memory_space<vmem>>, vector<32x128xbf16>
    %cst_91 = arith.constant dense<0.000000e+00> : vector<2x128xf32>
    %175 = tpu.matmul %173, %174, %cst_91 {dimension_numbers = #tpu.dot_dimension_numbers<[1], [0], [0], [1], [0, 0, 1, 1], [], []>} : vector<2x32xbf16>, vector<32x128xbf16>, vector<2x128xf32> -> vector<2x128xf32>
    %176 = arith.addf %172, %175 : vector<2x128xf32>
    %c0_92 = arith.constant 0 : index
    %c0_93 = arith.constant 0 : index
    %177 = vector.load %arg9[%c0_92, %c0_93] : memref<1x128xf32, #tpu.memory_space<vmem>>, vector<1x128xf32>
    %178 = vector.broadcast %177 : vector<1x128xf32> to vector<2x128xf32>
    %179 = arith.addf %176, %178 : vector<2x128xf32>
    %180 = vector.extract_strided_slice %179 {offsets = [0, 0], sizes = [2, 32], strides = [1, 1]} : vector<2x128xf32> to vector<2x32xf32>
    %cst_94 = arith.constant 5.000000e-01 : f32
    %181 = vector.broadcast %cst_94 : f32 to vector<2x32xf32>
    %182 = arith.mulf %181, %180 : vector<2x32xf32>
    %183 = math.tanh %182 : vector<2x32xf32>
    %cst_95 = arith.constant 5.000000e-01 : f32
    %184 = vector.broadcast %cst_95 : f32 to vector<2x32xf32>
    %185 = arith.mulf %184, %183 : vector<2x32xf32>
    %cst_96 = arith.constant 5.000000e-01 : f32
    %186 = vector.broadcast %cst_96 : f32 to vector<2x32xf32>
    %187 = arith.addf %185, %186 : vector<2x32xf32>
    %188 = vector.extract_strided_slice %179 {offsets = [0, 32], sizes = [2, 32], strides = [1, 1]} : vector<2x128xf32> to vector<2x32xf32>
    %cst_97 = arith.constant 5.000000e-01 : f32
    %189 = vector.broadcast %cst_97 : f32 to vector<2x32xf32>
    %190 = arith.mulf %189, %188 : vector<2x32xf32>
    %191 = math.tanh %190 : vector<2x32xf32>
    %cst_98 = arith.constant 5.000000e-01 : f32
    %192 = vector.broadcast %cst_98 : f32 to vector<2x32xf32>
    %193 = arith.mulf %192, %191 : vector<2x32xf32>
    %cst_99 = arith.constant 5.000000e-01 : f32
    %194 = vector.broadcast %cst_99 : f32 to vector<2x32xf32>
    %195 = arith.addf %193, %194 : vector<2x32xf32>
    %196 = vector.extract_strided_slice %179 {offsets = [0, 64], sizes = [2, 32], strides = [1, 1]} : vector<2x128xf32> to vector<2x32xf32>
    %197 = math.tanh %196 : vector<2x32xf32>
    %198 = vector.extract_strided_slice %179 {offsets = [0, 96], sizes = [2, 32], strides = [1, 1]} : vector<2x128xf32> to vector<2x32xf32>
    %cst_100 = arith.constant 5.000000e-01 : f32
    %199 = vector.broadcast %cst_100 : f32 to vector<2x32xf32>
    %200 = arith.mulf %199, %198 : vector<2x32xf32>
    %201 = math.tanh %200 : vector<2x32xf32>
    %cst_101 = arith.constant 5.000000e-01 : f32
    %202 = vector.broadcast %cst_101 : f32 to vector<2x32xf32>
    %203 = arith.mulf %202, %201 : vector<2x32xf32>
    %cst_102 = arith.constant 5.000000e-01 : f32
    %204 = vector.broadcast %cst_102 : f32 to vector<2x32xf32>
    %205 = arith.addf %203, %204 : vector<2x32xf32>
    %206 = arith.mulf %195, %94 : vector<2x32xf32>
    %207 = arith.mulf %187, %197 : vector<2x32xf32>
    %208 = arith.addf %206, %207 : vector<2x32xf32>
    %209 = math.tanh %208 : vector<2x32xf32>
    %210 = arith.mulf %205, %209 : vector<2x32xf32>
    %211 = arith.truncf %210 : vector<2x32xf32> to vector<2x32xbf16>
    %c0_103 = arith.constant 0 : index
    %c0_104 = arith.constant 0 : index
    %212 = vector.load %arg10[%c0_103, %c0_104] : memref<32x32xbf16, #tpu.memory_space<vmem>>, vector<32x32xbf16>
    %cst_105 = arith.constant dense<0.000000e+00> : vector<2x32xf32>
    %213 = tpu.matmul %211, %212, %cst_105 {dimension_numbers = #tpu.dot_dimension_numbers<[1], [0], [0], [1], [0, 0, 1, 1], [], []>} : vector<2x32xbf16>, vector<32x32xbf16>, vector<2x32xf32> -> vector<2x32xf32>
    %c0_106 = arith.constant 0 : index
    %c0_107 = arith.constant 0 : index
    %214 = vector.load %arg11[%c0_106, %c0_107] : memref<1x32xf32, #tpu.memory_space<vmem>>, vector<1x32xf32>
    %215 = vector.broadcast %214 : vector<1x32xf32> to vector<2x32xf32>
    %216 = arith.addf %213, %215 : vector<2x32xf32>
    %217 = vector.shape_cast %216 : vector<2x32xf32> to vector<2x1x32xf32>
    %218 = vector.broadcast %217 : vector<2x1x32xf32> to vector<2x8x32xf32>
    %219 = arith.addf %218, %1 : vector<2x8x32xf32>
    %220 = math.tanh %219 : vector<2x8x32xf32>
    %221 = arith.mulf %220, %5 : vector<2x8x32xf32>
    %cst_108 = arith.constant dense<0.000000e+00> : vector<2x8xf32>
    %222 = vector.multi_reduction <add>, %221, %cst_108 [2] : vector<2x8x32xf32> to vector<2x8xf32>
    %223 = vector.broadcast %6 : vector<1x1xf32> to vector<2x8xf32>
    %224 = arith.addf %222, %223 : vector<2x8xf32>
    %cst_109 = arith.constant dense<0xFF800000> : vector<2xf32>
    %225 = vector.multi_reduction <maximumf>, %224, %cst_109 [1] : vector<2x8xf32> to vector<2xf32>
    %226 = vector.shape_cast %225 : vector<2xf32> to vector<2x1xf32>
    %227 = vector.broadcast %226 : vector<2x1xf32> to vector<2x8xf32>
    %228 = arith.subf %224, %227 : vector<2x8xf32>
    %229 = math.exp %228 : vector<2x8xf32>
    %cst_110 = arith.constant dense<0.000000e+00> : vector<2xf32>
    %230 = vector.multi_reduction <add>, %229, %cst_110 [1] : vector<2x8xf32> to vector<2xf32>
    %231 = vector.shape_cast %230 : vector<2xf32> to vector<2x1xf32>
    %232 = vector.broadcast %231 : vector<2x1xf32> to vector<2x8xf32>
    %233 = arith.divf %229, %232 : vector<2x8xf32>
    %234 = vector.shape_cast %233 : vector<2x8xf32> to vector<2x8x1xf32>
    %235 = vector.broadcast %234 : vector<2x8x1xf32> to vector<2x8x64xf32>
    %236 = arith.mulf %235, %0 : vector<2x8x64xf32>
    %cst_111 = arith.constant dense<0.000000e+00> : vector<2x64xf32>
    %237 = vector.multi_reduction <add>, %236, %cst_111 [1] : vector<2x8x64xf32> to vector<2x64xf32>
    %c2 = arith.constant 2 : index
    %c0_112 = arith.constant 0 : index
    %238 = vector.load %arg22[%c2, %c0_112] : memref<12x32xf32, #tpu.memory_space<vmem>>, vector<2x32xf32>
    tpu.vector_store %arg22[%c2, %c0_112], %210 {strides = array<i32>} : memref<12x32xf32, #tpu.memory_space<vmem>>, vector<2x32xf32>,
    %c2_113 = arith.constant 2 : index
    %c0_114 = arith.constant 0 : index
    %239 = vector.load %arg23[%c2_113, %c0_114] : memref<12x64xf32, #tpu.memory_space<vmem>>, vector<2x64xf32>
    tpu.vector_store %arg23[%c2_113, %c0_114], %237 {strides = array<i32>} : memref<12x64xf32, #tpu.memory_space<vmem>>, vector<2x64xf32>,
    %c2_115 = arith.constant 2 : index
    %c0_116 = arith.constant 0 : index
    %c0_117 = arith.constant 0 : index
    %240 = vector.load %arg0[%c2_115, %c0_116, %c0_117] : memref<6x2x16xbf16, #tpu.memory_space<vmem>>, vector<1x2x16xbf16>
    %241 = vector.shape_cast %240 : vector<1x2x16xbf16> to vector<2x16xbf16>
    %c0_118 = arith.constant 0 : index
    %c0_119 = arith.constant 0 : index
    %242 = vector.load %arg4[%c0_118, %c0_119] : memref<16x128xbf16, #tpu.memory_space<vmem>>, vector<16x128xbf16>
    %cst_120 = arith.constant dense<0.000000e+00> : vector<2x128xf32>
    %243 = tpu.matmul %241, %242, %cst_120 {dimension_numbers = #tpu.dot_dimension_numbers<[1], [0], [0], [1], [0, 0, 1, 1], [], []>} : vector<2x16xbf16>, vector<16x128xbf16>, vector<2x128xf32> -> vector<2x128xf32>
    %244 = arith.truncf %237 : vector<2x64xf32> to vector<2x64xbf16>
    %c0_121 = arith.constant 0 : index
    %c0_122 = arith.constant 0 : index
    %245 = vector.load %arg5[%c0_121, %c0_122] : memref<64x128xbf16, #tpu.memory_space<vmem>>, vector<64x128xbf16>
    %cst_123 = arith.constant dense<0.000000e+00> : vector<2x128xf32>
    %246 = tpu.matmul %244, %245, %cst_123 {dimension_numbers = #tpu.dot_dimension_numbers<[1], [0], [0], [1], [0, 0, 1, 1], [], []>} : vector<2x64xbf16>, vector<64x128xbf16>, vector<2x128xf32> -> vector<2x128xf32>
    %247 = arith.addf %243, %246 : vector<2x128xf32>
    %248 = arith.truncf %169 : vector<2x32xf32> to vector<2x32xbf16>
    %c0_124 = arith.constant 0 : index
    %c0_125 = arith.constant 0 : index
    %249 = vector.load %arg6[%c0_124, %c0_125] : memref<32x128xbf16, #tpu.memory_space<vmem>>, vector<32x128xbf16>
    %cst_126 = arith.constant dense<0.000000e+00> : vector<2x128xf32>
    %250 = tpu.matmul %248, %249, %cst_126 {dimension_numbers = #tpu.dot_dimension_numbers<[1], [0], [0], [1], [0, 0, 1, 1], [], []>} : vector<2x32xbf16>, vector<32x128xbf16>, vector<2x128xf32> -> vector<2x128xf32>
    %251 = arith.addf %247, %250 : vector<2x128xf32>
    %252 = arith.addf %251, %2 : vector<2x128xf32>
    %253 = vector.extract_strided_slice %252 {offsets = [0, 0], sizes = [2, 32], strides = [1, 1]} : vector<2x128xf32> to vector<2x32xf32>
    %cst_127 = arith.constant 5.000000e-01 : f32
    %254 = vector.broadcast %cst_127 : f32 to vector<2x32xf32>
    %255 = arith.mulf %254, %253 : vector<2x32xf32>
    %256 = math.tanh %255 : vector<2x32xf32>
    %cst_128 = arith.constant 5.000000e-01 : f32
    %257 = vector.broadcast %cst_128 : f32 to vector<2x32xf32>
    %258 = arith.mulf %257, %256 : vector<2x32xf32>
    %cst_129 = arith.constant 5.000000e-01 : f32
    %259 = vector.broadcast %cst_129 : f32 to vector<2x32xf32>
    %260 = arith.addf %258, %259 : vector<2x32xf32>
    %261 = vector.extract_strided_slice %252 {offsets = [0, 32], sizes = [2, 32], strides = [1, 1]} : vector<2x128xf32> to vector<2x32xf32>
    %cst_130 = arith.constant 5.000000e-01 : f32
    %262 = vector.broadcast %cst_130 : f32 to vector<2x32xf32>
    %263 = arith.mulf %262, %261 : vector<2x32xf32>
    %264 = math.tanh %263 : vector<2x32xf32>
    %cst_131 = arith.constant 5.000000e-01 : f32
    %265 = vector.broadcast %cst_131 : f32 to vector<2x32xf32>
    %266 = arith.mulf %265, %264 : vector<2x32xf32>
    %cst_132 = arith.constant 5.000000e-01 : f32
    %267 = vector.broadcast %cst_132 : f32 to vector<2x32xf32>
    %268 = arith.addf %266, %267 : vector<2x32xf32>
    %269 = vector.extract_strided_slice %252 {offsets = [0, 64], sizes = [2, 32], strides = [1, 1]} : vector<2x128xf32> to vector<2x32xf32>
    %270 = math.tanh %269 : vector<2x32xf32>
    %271 = vector.extract_strided_slice %252 {offsets = [0, 96], sizes = [2, 32], strides = [1, 1]} : vector<2x128xf32> to vector<2x32xf32>
    %cst_133 = arith.constant 5.000000e-01 : f32
    %272 = vector.broadcast %cst_133 : f32 to vector<2x32xf32>
    %273 = arith.mulf %272, %271 : vector<2x32xf32>
    %274 = math.tanh %273 : vector<2x32xf32>
    %cst_134 = arith.constant 5.000000e-01 : f32
    %275 = vector.broadcast %cst_134 : f32 to vector<2x32xf32>
    %276 = arith.mulf %275, %274 : vector<2x32xf32>
    %cst_135 = arith.constant 5.000000e-01 : f32
    %277 = vector.broadcast %cst_135 : f32 to vector<2x32xf32>
    %278 = arith.addf %276, %277 : vector<2x32xf32>
    %279 = arith.mulf %268, %167 : vector<2x32xf32>
    %280 = arith.mulf %260, %270 : vector<2x32xf32>
    %281 = arith.addf %279, %280 : vector<2x32xf32>
    %282 = math.tanh %281 : vector<2x32xf32>
    %283 = arith.mulf %278, %282 : vector<2x32xf32>
    %284 = arith.truncf %283 : vector<2x32xf32> to vector<2x32xbf16>
    %c0_136 = arith.constant 0 : index
    %c0_137 = arith.constant 0 : index
    %285 = vector.load %arg7[%c0_136, %c0_137] : memref<32x128xbf16, #tpu.memory_space<vmem>>, vector<32x128xbf16>
    %cst_138 = arith.constant dense<0.000000e+00> : vector<2x128xf32>
    %286 = tpu.matmul %284, %285, %cst_138 {dimension_numbers = #tpu.dot_dimension_numbers<[1], [0], [0], [1], [0, 0, 1, 1], [], []>} : vector<2x32xbf16>, vector<32x128xbf16>, vector<2x128xf32> -> vector<2x128xf32>
    %287 = arith.truncf %210 : vector<2x32xf32> to vector<2x32xbf16>
    %c0_139 = arith.constant 0 : index
    %c0_140 = arith.constant 0 : index
    %288 = vector.load %arg8[%c0_139, %c0_140] : memref<32x128xbf16, #tpu.memory_space<vmem>>, vector<32x128xbf16>
    %cst_141 = arith.constant dense<0.000000e+00> : vector<2x128xf32>
    %289 = tpu.matmul %287, %288, %cst_141 {dimension_numbers = #tpu.dot_dimension_numbers<[1], [0], [0], [1], [0, 0, 1, 1], [], []>} : vector<2x32xbf16>, vector<32x128xbf16>, vector<2x128xf32> -> vector<2x128xf32>
    %290 = arith.addf %286, %289 : vector<2x128xf32>
    %c0_142 = arith.constant 0 : index
    %c0_143 = arith.constant 0 : index
    %291 = vector.load %arg9[%c0_142, %c0_143] : memref<1x128xf32, #tpu.memory_space<vmem>>, vector<1x128xf32>
    %292 = vector.broadcast %291 : vector<1x128xf32> to vector<2x128xf32>
    %293 = arith.addf %290, %292 : vector<2x128xf32>
    %294 = vector.extract_strided_slice %293 {offsets = [0, 0], sizes = [2, 32], strides = [1, 1]} : vector<2x128xf32> to vector<2x32xf32>
    %cst_144 = arith.constant 5.000000e-01 : f32
    %295 = vector.broadcast %cst_144 : f32 to vector<2x32xf32>
    %296 = arith.mulf %295, %294 : vector<2x32xf32>
    %297 = math.tanh %296 : vector<2x32xf32>
    %cst_145 = arith.constant 5.000000e-01 : f32
    %298 = vector.broadcast %cst_145 : f32 to vector<2x32xf32>
    %299 = arith.mulf %298, %297 : vector<2x32xf32>
    %cst_146 = arith.constant 5.000000e-01 : f32
    %300 = vector.broadcast %cst_146 : f32 to vector<2x32xf32>
    %301 = arith.addf %299, %300 : vector<2x32xf32>
    %302 = vector.extract_strided_slice %293 {offsets = [0, 32], sizes = [2, 32], strides = [1, 1]} : vector<2x128xf32> to vector<2x32xf32>
    %cst_147 = arith.constant 5.000000e-01 : f32
    %303 = vector.broadcast %cst_147 : f32 to vector<2x32xf32>
    %304 = arith.mulf %303, %302 : vector<2x32xf32>
    %305 = math.tanh %304 : vector<2x32xf32>
    %cst_148 = arith.constant 5.000000e-01 : f32
    %306 = vector.broadcast %cst_148 : f32 to vector<2x32xf32>
    %307 = arith.mulf %306, %305 : vector<2x32xf32>
    %cst_149 = arith.constant 5.000000e-01 : f32
    %308 = vector.broadcast %cst_149 : f32 to vector<2x32xf32>
    %309 = arith.addf %307, %308 : vector<2x32xf32>
    %310 = vector.extract_strided_slice %293 {offsets = [0, 64], sizes = [2, 32], strides = [1, 1]} : vector<2x128xf32> to vector<2x32xf32>
    %311 = math.tanh %310 : vector<2x32xf32>
    %312 = vector.extract_strided_slice %293 {offsets = [0, 96], sizes = [2, 32], strides = [1, 1]} : vector<2x128xf32> to vector<2x32xf32>
    %cst_150 = arith.constant 5.000000e-01 : f32
    %313 = vector.broadcast %cst_150 : f32 to vector<2x32xf32>
    %314 = arith.mulf %313, %312 : vector<2x32xf32>
    %315 = math.tanh %314 : vector<2x32xf32>
    %cst_151 = arith.constant 5.000000e-01 : f32
    %316 = vector.broadcast %cst_151 : f32 to vector<2x32xf32>
    %317 = arith.mulf %316, %315 : vector<2x32xf32>
    %cst_152 = arith.constant 5.000000e-01 : f32
    %318 = vector.broadcast %cst_152 : f32 to vector<2x32xf32>
    %319 = arith.addf %317, %318 : vector<2x32xf32>
    %320 = arith.mulf %309, %208 : vector<2x32xf32>
    %321 = arith.mulf %301, %311 : vector<2x32xf32>
    %322 = arith.addf %320, %321 : vector<2x32xf32>
    %323 = math.tanh %322 : vector<2x32xf32>
    %324 = arith.mulf %319, %323 : vector<2x32xf32>
    %325 = arith.truncf %324 : vector<2x32xf32> to vector<2x32xbf16>
    %c0_153 = arith.constant 0 : index
    %c0_154 = arith.constant 0 : index
    %326 = vector.load %arg10[%c0_153, %c0_154] : memref<32x32xbf16, #tpu.memory_space<vmem>>, vector<32x32xbf16>
    %cst_155 = arith.constant dense<0.000000e+00> : vector<2x32xf32>
    %327 = tpu.matmul %325, %326, %cst_155 {dimension_numbers = #tpu.dot_dimension_numbers<[1], [0], [0], [1], [0, 0, 1, 1], [], []>} : vector<2x32xbf16>, vector<32x32xbf16>, vector<2x32xf32> -> vector<2x32xf32>
    %c0_156 = arith.constant 0 : index
    %c0_157 = arith.constant 0 : index
    %328 = vector.load %arg11[%c0_156, %c0_157] : memref<1x32xf32, #tpu.memory_space<vmem>>, vector<1x32xf32>
    %329 = vector.broadcast %328 : vector<1x32xf32> to vector<2x32xf32>
    %330 = arith.addf %327, %329 : vector<2x32xf32>
    %331 = vector.shape_cast %330 : vector<2x32xf32> to vector<2x1x32xf32>
    %332 = vector.broadcast %331 : vector<2x1x32xf32> to vector<2x8x32xf32>
    %333 = arith.addf %332, %1 : vector<2x8x32xf32>
    %334 = math.tanh %333 : vector<2x8x32xf32>
    %335 = arith.mulf %334, %5 : vector<2x8x32xf32>
    %cst_158 = arith.constant dense<0.000000e+00> : vector<2x8xf32>
    %336 = vector.multi_reduction <add>, %335, %cst_158 [2] : vector<2x8x32xf32> to vector<2x8xf32>
    %337 = vector.broadcast %6 : vector<1x1xf32> to vector<2x8xf32>
    %338 = arith.addf %336, %337 : vector<2x8xf32>
    %cst_159 = arith.constant dense<0xFF800000> : vector<2xf32>
    %339 = vector.multi_reduction <maximumf>, %338, %cst_159 [1] : vector<2x8xf32> to vector<2xf32>
    %340 = vector.shape_cast %339 : vector<2xf32> to vector<2x1xf32>
    %341 = vector.broadcast %340 : vector<2x1xf32> to vector<2x8xf32>
    %342 = arith.subf %338, %341 : vector<2x8xf32>
    %343 = math.exp %342 : vector<2x8xf32>
    %cst_160 = arith.constant dense<0.000000e+00> : vector<2xf32>
    %344 = vector.multi_reduction <add>, %343, %cst_160 [1] : vector<2x8xf32> to vector<2xf32>
    %345 = vector.shape_cast %344 : vector<2xf32> to vector<2x1xf32>
    %346 = vector.broadcast %345 : vector<2x1xf32> to vector<2x8xf32>
    %347 = arith.divf %343, %346 : vector<2x8xf32>
    %348 = vector.shape_cast %347 : vector<2x8xf32> to vector<2x8x1xf32>
    %349 = vector.broadcast %348 : vector<2x8x1xf32> to vector<2x8x64xf32>
    %350 = arith.mulf %349, %0 : vector<2x8x64xf32>
    %cst_161 = arith.constant dense<0.000000e+00> : vector<2x64xf32>
    %351 = vector.multi_reduction <add>, %350, %cst_161 [1] : vector<2x8x64xf32> to vector<2x64xf32>
    %c4 = arith.constant 4 : index
    %c0_162 = arith.constant 0 : index
    %352 = vector.load %arg22[%c4, %c0_162] : memref<12x32xf32, #tpu.memory_space<vmem>>, vector<2x32xf32>
    tpu.vector_store %arg22[%c4, %c0_162], %324 {strides = array<i32>} : memref<12x32xf32, #tpu.memory_space<vmem>>, vector<2x32xf32>,
    %c4_163 = arith.constant 4 : index
    %c0_164 = arith.constant 0 : index
    %353 = vector.load %arg23[%c4_163, %c0_164] : memref<12x64xf32, #tpu.memory_space<vmem>>, vector<2x64xf32>
    tpu.vector_store %arg23[%c4_163, %c0_164], %351 {strides = array<i32>} : memref<12x64xf32, #tpu.memory_space<vmem>>, vector<2x64xf32>,
    %c3 = arith.constant 3 : index
    %c0_165 = arith.constant 0 : index
    %c0_166 = arith.constant 0 : index
    %354 = vector.load %arg0[%c3, %c0_165, %c0_166] : memref<6x2x16xbf16, #tpu.memory_space<vmem>>, vector<1x2x16xbf16>
    %355 = vector.shape_cast %354 : vector<1x2x16xbf16> to vector<2x16xbf16>
    %c0_167 = arith.constant 0 : index
    %c0_168 = arith.constant 0 : index
    %356 = vector.load %arg4[%c0_167, %c0_168] : memref<16x128xbf16, #tpu.memory_space<vmem>>, vector<16x128xbf16>
    %cst_169 = arith.constant dense<0.000000e+00> : vector<2x128xf32>
    %357 = tpu.matmul %355, %356, %cst_169 {dimension_numbers = #tpu.dot_dimension_numbers<[1], [0], [0], [1], [0, 0, 1, 1], [], []>} : vector<2x16xbf16>, vector<16x128xbf16>, vector<2x128xf32> -> vector<2x128xf32>
    %358 = arith.truncf %351 : vector<2x64xf32> to vector<2x64xbf16>
    %c0_170 = arith.constant 0 : index
    %c0_171 = arith.constant 0 : index
    %359 = vector.load %arg5[%c0_170, %c0_171] : memref<64x128xbf16, #tpu.memory_space<vmem>>, vector<64x128xbf16>
    %cst_172 = arith.constant dense<0.000000e+00> : vector<2x128xf32>
    %360 = tpu.matmul %358, %359, %cst_172 {dimension_numbers = #tpu.dot_dimension_numbers<[1], [0], [0], [1], [0, 0, 1, 1], [], []>} : vector<2x64xbf16>, vector<64x128xbf16>, vector<2x128xf32> -> vector<2x128xf32>
    %361 = arith.addf %357, %360 : vector<2x128xf32>
    %362 = arith.truncf %283 : vector<2x32xf32> to vector<2x32xbf16>
    %c0_173 = arith.constant 0 : index
    %c0_174 = arith.constant 0 : index
    %363 = vector.load %arg6[%c0_173, %c0_174] : memref<32x128xbf16, #tpu.memory_space<vmem>>, vector<32x128xbf16>
    %cst_175 = arith.constant dense<0.000000e+00> : vector<2x128xf32>
    %364 = tpu.matmul %362, %363, %cst_175 {dimension_numbers = #tpu.dot_dimension_numbers<[1], [0], [0], [1], [0, 0, 1, 1], [], []>} : vector<2x32xbf16>, vector<32x128xbf16>, vector<2x128xf32> -> vector<2x128xf32>
    %365 = arith.addf %361, %364 : vector<2x128xf32>
    %366 = arith.addf %365, %2 : vector<2x128xf32>
    %367 = vector.extract_strided_slice %366 {offsets = [0, 0], sizes = [2, 32], strides = [1, 1]} : vector<2x128xf32> to vector<2x32xf32>
    %cst_176 = arith.constant 5.000000e-01 : f32
    %368 = vector.broadcast %cst_176 : f32 to vector<2x32xf32>
    %369 = arith.mulf %368, %367 : vector<2x32xf32>
    %370 = math.tanh %369 : vector<2x32xf32>
    %cst_177 = arith.constant 5.000000e-01 : f32
    %371 = vector.broadcast %cst_177 : f32 to vector<2x32xf32>
    %372 = arith.mulf %371, %370 : vector<2x32xf32>
    %cst_178 = arith.constant 5.000000e-01 : f32
    %373 = vector.broadcast %cst_178 : f32 to vector<2x32xf32>
    %374 = arith.addf %372, %373 : vector<2x32xf32>
    %375 = vector.extract_strided_slice %366 {offsets = [0, 32], sizes = [2, 32], strides = [1, 1]} : vector<2x128xf32> to vector<2x32xf32>
    %cst_179 = arith.constant 5.000000e-01 : f32
    %376 = vector.broadcast %cst_179 : f32 to vector<2x32xf32>
    %377 = arith.mulf %376, %375 : vector<2x32xf32>
    %378 = math.tanh %377 : vector<2x32xf32>
    %cst_180 = arith.constant 5.000000e-01 : f32
    %379 = vector.broadcast %cst_180 : f32 to vector<2x32xf32>
    %380 = arith.mulf %379, %378 : vector<2x32xf32>
    %cst_181 = arith.constant 5.000000e-01 : f32
    %381 = vector.broadcast %cst_181 : f32 to vector<2x32xf32>
    %382 = arith.addf %380, %381 : vector<2x32xf32>
    %383 = vector.extract_strided_slice %366 {offsets = [0, 64], sizes = [2, 32], strides = [1, 1]} : vector<2x128xf32> to vector<2x32xf32>
    %384 = math.tanh %383 : vector<2x32xf32>
    %385 = vector.extract_strided_slice %366 {offsets = [0, 96], sizes = [2, 32], strides = [1, 1]} : vector<2x128xf32> to vector<2x32xf32>
    %cst_182 = arith.constant 5.000000e-01 : f32
    %386 = vector.broadcast %cst_182 : f32 to vector<2x32xf32>
    %387 = arith.mulf %386, %385 : vector<2x32xf32>
    %388 = math.tanh %387 : vector<2x32xf32>
    %cst_183 = arith.constant 5.000000e-01 : f32
    %389 = vector.broadcast %cst_183 : f32 to vector<2x32xf32>
    %390 = arith.mulf %389, %388 : vector<2x32xf32>
    %cst_184 = arith.constant 5.000000e-01 : f32
    %391 = vector.broadcast %cst_184 : f32 to vector<2x32xf32>
    %392 = arith.addf %390, %391 : vector<2x32xf32>
    %393 = arith.mulf %382, %281 : vector<2x32xf32>
    %394 = arith.mulf %374, %384 : vector<2x32xf32>
    %395 = arith.addf %393, %394 : vector<2x32xf32>
    %396 = math.tanh %395 : vector<2x32xf32>
    %397 = arith.mulf %392, %396 : vector<2x32xf32>
    %398 = arith.truncf %397 : vector<2x32xf32> to vector<2x32xbf16>
    %c0_185 = arith.constant 0 : index
    %c0_186 = arith.constant 0 : index
    %399 = vector.load %arg7[%c0_185, %c0_186] : memref<32x128xbf16, #tpu.memory_space<vmem>>, vector<32x128xbf16>
    %cst_187 = arith.constant dense<0.000000e+00> : vector<2x128xf32>
    %400 = tpu.matmul %398, %399, %cst_187 {dimension_numbers = #tpu.dot_dimension_numbers<[1], [0], [0], [1], [0, 0, 1, 1], [], []>} : vector<2x32xbf16>, vector<32x128xbf16>, vector<2x128xf32> -> vector<2x128xf32>
    %401 = arith.truncf %324 : vector<2x32xf32> to vector<2x32xbf16>
    %c0_188 = arith.constant 0 : index
    %c0_189 = arith.constant 0 : index
    %402 = vector.load %arg8[%c0_188, %c0_189] : memref<32x128xbf16, #tpu.memory_space<vmem>>, vector<32x128xbf16>
    %cst_190 = arith.constant dense<0.000000e+00> : vector<2x128xf32>
    %403 = tpu.matmul %401, %402, %cst_190 {dimension_numbers = #tpu.dot_dimension_numbers<[1], [0], [0], [1], [0, 0, 1, 1], [], []>} : vector<2x32xbf16>, vector<32x128xbf16>, vector<2x128xf32> -> vector<2x128xf32>
    %404 = arith.addf %400, %403 : vector<2x128xf32>
    %c0_191 = arith.constant 0 : index
    %c0_192 = arith.constant 0 : index
    %405 = vector.load %arg9[%c0_191, %c0_192] : memref<1x128xf32, #tpu.memory_space<vmem>>, vector<1x128xf32>
    %406 = vector.broadcast %405 : vector<1x128xf32> to vector<2x128xf32>
    %407 = arith.addf %404, %406 : vector<2x128xf32>
    %408 = vector.extract_strided_slice %407 {offsets = [0, 0], sizes = [2, 32], strides = [1, 1]} : vector<2x128xf32> to vector<2x32xf32>
    %cst_193 = arith.constant 5.000000e-01 : f32
    %409 = vector.broadcast %cst_193 : f32 to vector<2x32xf32>
    %410 = arith.mulf %409, %408 : vector<2x32xf32>
    %411 = math.tanh %410 : vector<2x32xf32>
    %cst_194 = arith.constant 5.000000e-01 : f32
    %412 = vector.broadcast %cst_194 : f32 to vector<2x32xf32>
    %413 = arith.mulf %412, %411 : vector<2x32xf32>
    %cst_195 = arith.constant 5.000000e-01 : f32
    %414 = vector.broadcast %cst_195 : f32 to vector<2x32xf32>
    %415 = arith.addf %413, %414 : vector<2x32xf32>
    %416 = vector.extract_strided_slice %407 {offsets = [0, 32], sizes = [2, 32], strides = [1, 1]} : vector<2x128xf32> to vector<2x32xf32>
    %cst_196 = arith.constant 5.000000e-01 : f32
    %417 = vector.broadcast %cst_196 : f32 to vector<2x32xf32>
    %418 = arith.mulf %417, %416 : vector<2x32xf32>
    %419 = math.tanh %418 : vector<2x32xf32>
    %cst_197 = arith.constant 5.000000e-01 : f32
    %420 = vector.broadcast %cst_197 : f32 to vector<2x32xf32>
    %421 = arith.mulf %420, %419 : vector<2x32xf32>
    %cst_198 = arith.constant 5.000000e-01 : f32
    %422 = vector.broadcast %cst_198 : f32 to vector<2x32xf32>
    %423 = arith.addf %421, %422 : vector<2x32xf32>
    %424 = vector.extract_strided_slice %407 {offsets = [0, 64], sizes = [2, 32], strides = [1, 1]} : vector<2x128xf32> to vector<2x32xf32>
    %425 = math.tanh %424 : vector<2x32xf32>
    %426 = vector.extract_strided_slice %407 {offsets = [0, 96], sizes = [2, 32], strides = [1, 1]} : vector<2x128xf32> to vector<2x32xf32>
    %cst_199 = arith.constant 5.000000e-01 : f32
    %427 = vector.broadcast %cst_199 : f32 to vector<2x32xf32>
    %428 = arith.mulf %427, %426 : vector<2x32xf32>
    %429 = math.tanh %428 : vector<2x32xf32>
    %cst_200 = arith.constant 5.000000e-01 : f32
    %430 = vector.broadcast %cst_200 : f32 to vector<2x32xf32>
    %431 = arith.mulf %430, %429 : vector<2x32xf32>
    %cst_201 = arith.constant 5.000000e-01 : f32
    %432 = vector.broadcast %cst_201 : f32 to vector<2x32xf32>
    %433 = arith.addf %431, %432 : vector<2x32xf32>
    %434 = arith.mulf %423, %322 : vector<2x32xf32>
    %435 = arith.mulf %415, %425 : vector<2x32xf32>
    %436 = arith.addf %434, %435 : vector<2x32xf32>
    %437 = math.tanh %436 : vector<2x32xf32>
    %438 = arith.mulf %433, %437 : vector<2x32xf32>
    %439 = arith.truncf %438 : vector<2x32xf32> to vector<2x32xbf16>
    %c0_202 = arith.constant 0 : index
    %c0_203 = arith.constant 0 : index
    %440 = vector.load %arg10[%c0_202, %c0_203] : memref<32x32xbf16, #tpu.memory_space<vmem>>, vector<32x32xbf16>
    %cst_204 = arith.constant dense<0.000000e+00> : vector<2x32xf32>
    %441 = tpu.matmul %439, %440, %cst_204 {dimension_numbers = #tpu.dot_dimension_numbers<[1], [0], [0], [1], [0, 0, 1, 1], [], []>} : vector<2x32xbf16>, vector<32x32xbf16>, vector<2x32xf32> -> vector<2x32xf32>
    %c0_205 = arith.constant 0 : index
    %c0_206 = arith.constant 0 : index
    %442 = vector.load %arg11[%c0_205, %c0_206] : memref<1x32xf32, #tpu.memory_space<vmem>>, vector<1x32xf32>
    %443 = vector.broadcast %442 : vector<1x32xf32> to vector<2x32xf32>
    %444 = arith.addf %441, %443 : vector<2x32xf32>
    %445 = vector.shape_cast %444 : vector<2x32xf32> to vector<2x1x32xf32>
    %446 = vector.broadcast %445 : vector<2x1x32xf32> to vector<2x8x32xf32>
    %447 = arith.addf %446, %1 : vector<2x8x32xf32>
    %448 = math.tanh %447 : vector<2x8x32xf32>
    %449 = arith.mulf %448, %5 : vector<2x8x32xf32>
    %cst_207 = arith.constant dense<0.000000e+00> : vector<2x8xf32>
    %450 = vector.multi_reduction <add>, %449, %cst_207 [2] : vector<2x8x32xf32> to vector<2x8xf32>
    %451 = vector.broadcast %6 : vector<1x1xf32> to vector<2x8xf32>
    %452 = arith.addf %450, %451 : vector<2x8xf32>
    %cst_208 = arith.constant dense<0xFF800000> : vector<2xf32>
    %453 = vector.multi_reduction <maximumf>, %452, %cst_208 [1] : vector<2x8xf32> to vector<2xf32>
    %454 = vector.shape_cast %453 : vector<2xf32> to vector<2x1xf32>
    %455 = vector.broadcast %454 : vector<2x1xf32> to vector<2x8xf32>
    %456 = arith.subf %452, %455 : vector<2x8xf32>
    %457 = math.exp %456 : vector<2x8xf32>
    %cst_209 = arith.constant dense<0.000000e+00> : vector<2xf32>
    %458 = vector.multi_reduction <add>, %457, %cst_209 [1] : vector<2x8xf32> to vector<2xf32>
    %459 = vector.shape_cast %458 : vector<2xf32> to vector<2x1xf32>
    %460 = vector.broadcast %459 : vector<2x1xf32> to vector<2x8xf32>
    %461 = arith.divf %457, %460 : vector<2x8xf32>
    %462 = vector.shape_cast %461 : vector<2x8xf32> to vector<2x8x1xf32>
    %463 = vector.broadcast %462 : vector<2x8x1xf32> to vector<2x8x64xf32>
    %464 = arith.mulf %463, %0 : vector<2x8x64xf32>
    %cst_210 = arith.constant dense<0.000000e+00> : vector<2x64xf32>
    %465 = vector.multi_reduction <add>, %464, %cst_210 [1] : vector<2x8x64xf32> to vector<2x64xf32>
    %c6 = arith.constant 6 : index
    %c0_211 = arith.constant 0 : index
    %466 = vector.load %arg22[%c6, %c0_211] : memref<12x32xf32, #tpu.memory_space<vmem>>, vector<2x32xf32>
    tpu.vector_store %arg22[%c6, %c0_211], %438 {strides = array<i32>} : memref<12x32xf32, #tpu.memory_space<vmem>>, vector<2x32xf32>,
    %c6_212 = arith.constant 6 : index
    %c0_213 = arith.constant 0 : index
    %467 = vector.load %arg23[%c6_212, %c0_213] : memref<12x64xf32, #tpu.memory_space<vmem>>, vector<2x64xf32>
    tpu.vector_store %arg23[%c6_212, %c0_213], %465 {strides = array<i32>} : memref<12x64xf32, #tpu.memory_space<vmem>>, vector<2x64xf32>,
    %c4_214 = arith.constant 4 : index
    %c0_215 = arith.constant 0 : index
    %c0_216 = arith.constant 0 : index
    %468 = vector.load %arg0[%c4_214, %c0_215, %c0_216] : memref<6x2x16xbf16, #tpu.memory_space<vmem>>, vector<1x2x16xbf16>
    %469 = vector.shape_cast %468 : vector<1x2x16xbf16> to vector<2x16xbf16>
    %c0_217 = arith.constant 0 : index
    %c0_218 = arith.constant 0 : index
    %470 = vector.load %arg4[%c0_217, %c0_218] : memref<16x128xbf16, #tpu.memory_space<vmem>>, vector<16x128xbf16>
    %cst_219 = arith.constant dense<0.000000e+00> : vector<2x128xf32>
    %471 = tpu.matmul %469, %470, %cst_219 {dimension_numbers = #tpu.dot_dimension_numbers<[1], [0], [0], [1], [0, 0, 1, 1], [], []>} : vector<2x16xbf16>, vector<16x128xbf16>, vector<2x128xf32> -> vector<2x128xf32>
    %472 = arith.truncf %465 : vector<2x64xf32> to vector<2x64xbf16>
    %c0_220 = arith.constant 0 : index
    %c0_221 = arith.constant 0 : index
    %473 = vector.load %arg5[%c0_220, %c0_221] : memref<64x128xbf16, #tpu.memory_space<vmem>>, vector<64x128xbf16>
    %cst_222 = arith.constant dense<0.000000e+00> : vector<2x128xf32>
    %474 = tpu.matmul %472, %473, %cst_222 {dimension_numbers = #tpu.dot_dimension_numbers<[1], [0], [0], [1], [0, 0, 1, 1], [], []>} : vector<2x64xbf16>, vector<64x128xbf16>, vector<2x128xf32> -> vector<2x128xf32>
    %475 = arith.addf %471, %474 : vector<2x128xf32>
    %476 = arith.truncf %397 : vector<2x32xf32> to vector<2x32xbf16>
    %c0_223 = arith.constant 0 : index
    %c0_224 = arith.constant 0 : index
    %477 = vector.load %arg6[%c0_223, %c0_224] : memref<32x128xbf16, #tpu.memory_space<vmem>>, vector<32x128xbf16>
    %cst_225 = arith.constant dense<0.000000e+00> : vector<2x128xf32>
    %478 = tpu.matmul %476, %477, %cst_225 {dimension_numbers = #tpu.dot_dimension_numbers<[1], [0], [0], [1], [0, 0, 1, 1], [], []>} : vector<2x32xbf16>, vector<32x128xbf16>, vector<2x128xf32> -> vector<2x128xf32>
    %479 = arith.addf %475, %478 : vector<2x128xf32>
    %480 = arith.addf %479, %2 : vector<2x128xf32>
    %481 = vector.extract_strided_slice %480 {offsets = [0, 0], sizes = [2, 32], strides = [1, 1]} : vector<2x128xf32> to vector<2x32xf32>
    %cst_226 = arith.constant 5.000000e-01 : f32
    %482 = vector.broadcast %cst_226 : f32 to vector<2x32xf32>
    %483 = arith.mulf %482, %481 : vector<2x32xf32>
    %484 = math.tanh %483 : vector<2x32xf32>
    %cst_227 = arith.constant 5.000000e-01 : f32
    %485 = vector.broadcast %cst_227 : f32 to vector<2x32xf32>
    %486 = arith.mulf %485, %484 : vector<2x32xf32>
    %cst_228 = arith.constant 5.000000e-01 : f32
    %487 = vector.broadcast %cst_228 : f32 to vector<2x32xf32>
    %488 = arith.addf %486, %487 : vector<2x32xf32>
    %489 = vector.extract_strided_slice %480 {offsets = [0, 32], sizes = [2, 32], strides = [1, 1]} : vector<2x128xf32> to vector<2x32xf32>
    %cst_229 = arith.constant 5.000000e-01 : f32
    %490 = vector.broadcast %cst_229 : f32 to vector<2x32xf32>
    %491 = arith.mulf %490, %489 : vector<2x32xf32>
    %492 = math.tanh %491 : vector<2x32xf32>
    %cst_230 = arith.constant 5.000000e-01 : f32
    %493 = vector.broadcast %cst_230 : f32 to vector<2x32xf32>
    %494 = arith.mulf %493, %492 : vector<2x32xf32>
    %cst_231 = arith.constant 5.000000e-01 : f32
    %495 = vector.broadcast %cst_231 : f32 to vector<2x32xf32>
    %496 = arith.addf %494, %495 : vector<2x32xf32>
    %497 = vector.extract_strided_slice %480 {offsets = [0, 64], sizes = [2, 32], strides = [1, 1]} : vector<2x128xf32> to vector<2x32xf32>
    %498 = math.tanh %497 : vector<2x32xf32>
    %499 = vector.extract_strided_slice %480 {offsets = [0, 96], sizes = [2, 32], strides = [1, 1]} : vector<2x128xf32> to vector<2x32xf32>
    %cst_232 = arith.constant 5.000000e-01 : f32
    %500 = vector.broadcast %cst_232 : f32 to vector<2x32xf32>
    %501 = arith.mulf %500, %499 : vector<2x32xf32>
    %502 = math.tanh %501 : vector<2x32xf32>
    %cst_233 = arith.constant 5.000000e-01 : f32
    %503 = vector.broadcast %cst_233 : f32 to vector<2x32xf32>
    %504 = arith.mulf %503, %502 : vector<2x32xf32>
    %cst_234 = arith.constant 5.000000e-01 : f32
    %505 = vector.broadcast %cst_234 : f32 to vector<2x32xf32>
    %506 = arith.addf %504, %505 : vector<2x32xf32>
    %507 = arith.mulf %496, %395 : vector<2x32xf32>
    %508 = arith.mulf %488, %498 : vector<2x32xf32>
    %509 = arith.addf %507, %508 : vector<2x32xf32>
    %510 = math.tanh %509 : vector<2x32xf32>
    %511 = arith.mulf %506, %510 : vector<2x32xf32>
    %512 = arith.truncf %511 : vector<2x32xf32> to vector<2x32xbf16>
    %c0_235 = arith.constant 0 : index
    %c0_236 = arith.constant 0 : index
    %513 = vector.load %arg7[%c0_235, %c0_236] : memref<32x128xbf16, #tpu.memory_space<vmem>>, vector<32x128xbf16>
    %cst_237 = arith.constant dense<0.000000e+00> : vector<2x128xf32>
    %514 = tpu.matmul %512, %513, %cst_237 {dimension_numbers = #tpu.dot_dimension_numbers<[1], [0], [0], [1], [0, 0, 1, 1], [], []>} : vector<2x32xbf16>, vector<32x128xbf16>, vector<2x128xf32> -> vector<2x128xf32>
    %515 = arith.truncf %438 : vector<2x32xf32> to vector<2x32xbf16>
    %c0_238 = arith.constant 0 : index
    %c0_239 = arith.constant 0 : index
    %516 = vector.load %arg8[%c0_238, %c0_239] : memref<32x128xbf16, #tpu.memory_space<vmem>>, vector<32x128xbf16>
    %cst_240 = arith.constant dense<0.000000e+00> : vector<2x128xf32>
    %517 = tpu.matmul %515, %516, %cst_240 {dimension_numbers = #tpu.dot_dimension_numbers<[1], [0], [0], [1], [0, 0, 1, 1], [], []>} : vector<2x32xbf16>, vector<32x128xbf16>, vector<2x128xf32> -> vector<2x128xf32>
    %518 = arith.addf %514, %517 : vector<2x128xf32>
    %c0_241 = arith.constant 0 : index
    %c0_242 = arith.constant 0 : index
    %519 = vector.load %arg9[%c0_241, %c0_242] : memref<1x128xf32, #tpu.memory_space<vmem>>, vector<1x128xf32>
    %520 = vector.broadcast %519 : vector<1x128xf32> to vector<2x128xf32>
    %521 = arith.addf %518, %520 : vector<2x128xf32>
    %522 = vector.extract_strided_slice %521 {offsets = [0, 0], sizes = [2, 32], strides = [1, 1]} : vector<2x128xf32> to vector<2x32xf32>
    %cst_243 = arith.constant 5.000000e-01 : f32
    %523 = vector.broadcast %cst_243 : f32 to vector<2x32xf32>
    %524 = arith.mulf %523, %522 : vector<2x32xf32>
    %525 = math.tanh %524 : vector<2x32xf32>
    %cst_244 = arith.constant 5.000000e-01 : f32
    %526 = vector.broadcast %cst_244 : f32 to vector<2x32xf32>
    %527 = arith.mulf %526, %525 : vector<2x32xf32>
    %cst_245 = arith.constant 5.000000e-01 : f32
    %528 = vector.broadcast %cst_245 : f32 to vector<2x32xf32>
    %529 = arith.addf %527, %528 : vector<2x32xf32>
    %530 = vector.extract_strided_slice %521 {offsets = [0, 32], sizes = [2, 32], strides = [1, 1]} : vector<2x128xf32> to vector<2x32xf32>
    %cst_246 = arith.constant 5.000000e-01 : f32
    %531 = vector.broadcast %cst_246 : f32 to vector<2x32xf32>
    %532 = arith.mulf %531, %530 : vector<2x32xf32>
    %533 = math.tanh %532 : vector<2x32xf32>
    %cst_247 = arith.constant 5.000000e-01 : f32
    %534 = vector.broadcast %cst_247 : f32 to vector<2x32xf32>
    %535 = arith.mulf %534, %533 : vector<2x32xf32>
    %cst_248 = arith.constant 5.000000e-01 : f32
    %536 = vector.broadcast %cst_248 : f32 to vector<2x32xf32>
    %537 = arith.addf %535, %536 : vector<2x32xf32>
    %538 = vector.extract_strided_slice %521 {offsets = [0, 64], sizes = [2, 32], strides = [1, 1]} : vector<2x128xf32> to vector<2x32xf32>
    %539 = math.tanh %538 : vector<2x32xf32>
    %540 = vector.extract_strided_slice %521 {offsets = [0, 96], sizes = [2, 32], strides = [1, 1]} : vector<2x128xf32> to vector<2x32xf32>
    %cst_249 = arith.constant 5.000000e-01 : f32
    %541 = vector.broadcast %cst_249 : f32 to vector<2x32xf32>
    %542 = arith.mulf %541, %540 : vector<2x32xf32>
    %543 = math.tanh %542 : vector<2x32xf32>
    %cst_250 = arith.constant 5.000000e-01 : f32
    %544 = vector.broadcast %cst_250 : f32 to vector<2x32xf32>
    %545 = arith.mulf %544, %543 : vector<2x32xf32>
    %cst_251 = arith.constant 5.000000e-01 : f32
    %546 = vector.broadcast %cst_251 : f32 to vector<2x32xf32>
    %547 = arith.addf %545, %546 : vector<2x32xf32>
    %548 = arith.mulf %537, %436 : vector<2x32xf32>
    %549 = arith.mulf %529, %539 : vector<2x32xf32>
    %550 = arith.addf %548, %549 : vector<2x32xf32>
    %551 = math.tanh %550 : vector<2x32xf32>
    %552 = arith.mulf %547, %551 : vector<2x32xf32>
    %553 = arith.truncf %552 : vector<2x32xf32> to vector<2x32xbf16>
    %c0_252 = arith.constant 0 : index
    %c0_253 = arith.constant 0 : index
    %554 = vector.load %arg10[%c0_252, %c0_253] : memref<32x32xbf16, #tpu.memory_space<vmem>>, vector<32x32xbf16>
    %cst_254 = arith.constant dense<0.000000e+00> : vector<2x32xf32>
    %555 = tpu.matmul %553, %554, %cst_254 {dimension_numbers = #tpu.dot_dimension_numbers<[1], [0], [0], [1], [0, 0, 1, 1], [], []>} : vector<2x32xbf16>, vector<32x32xbf16>, vector<2x32xf32> -> vector<2x32xf32>
    %c0_255 = arith.constant 0 : index
    %c0_256 = arith.constant 0 : index
    %556 = vector.load %arg11[%c0_255, %c0_256] : memref<1x32xf32, #tpu.memory_space<vmem>>, vector<1x32xf32>
    %557 = vector.broadcast %556 : vector<1x32xf32> to vector<2x32xf32>
    %558 = arith.addf %555, %557 : vector<2x32xf32>
    %559 = vector.shape_cast %558 : vector<2x32xf32> to vector<2x1x32xf32>
    %560 = vector.broadcast %559 : vector<2x1x32xf32> to vector<2x8x32xf32>
    %561 = arith.addf %560, %1 : vector<2x8x32xf32>
    %562 = math.tanh %561 : vector<2x8x32xf32>
    %563 = arith.mulf %562, %5 : vector<2x8x32xf32>
    %cst_257 = arith.constant dense<0.000000e+00> : vector<2x8xf32>
    %564 = vector.multi_reduction <add>, %563, %cst_257 [2] : vector<2x8x32xf32> to vector<2x8xf32>
    %565 = vector.broadcast %6 : vector<1x1xf32> to vector<2x8xf32>
    %566 = arith.addf %564, %565 : vector<2x8xf32>
    %cst_258 = arith.constant dense<0xFF800000> : vector<2xf32>
    %567 = vector.multi_reduction <maximumf>, %566, %cst_258 [1] : vector<2x8xf32> to vector<2xf32>
    %568 = vector.shape_cast %567 : vector<2xf32> to vector<2x1xf32>
    %569 = vector.broadcast %568 : vector<2x1xf32> to vector<2x8xf32>
    %570 = arith.subf %566, %569 : vector<2x8xf32>
    %571 = math.exp %570 : vector<2x8xf32>
    %cst_259 = arith.constant dense<0.000000e+00> : vector<2xf32>
    %572 = vector.multi_reduction <add>, %571, %cst_259 [1] : vector<2x8xf32> to vector<2xf32>
    %573 = vector.shape_cast %572 : vector<2xf32> to vector<2x1xf32>
    %574 = vector.broadcast %573 : vector<2x1xf32> to vector<2x8xf32>
    %575 = arith.divf %571, %574 : vector<2x8xf32>
    %576 = vector.shape_cast %575 : vector<2x8xf32> to vector<2x8x1xf32>
    %577 = vector.broadcast %576 : vector<2x8x1xf32> to vector<2x8x64xf32>
    %578 = arith.mulf %577, %0 : vector<2x8x64xf32>
    %cst_260 = arith.constant dense<0.000000e+00> : vector<2x64xf32>
    %579 = vector.multi_reduction <add>, %578, %cst_260 [1] : vector<2x8x64xf32> to vector<2x64xf32>
    %c8 = arith.constant 8 : index
    %c0_261 = arith.constant 0 : index
    %580 = vector.load %arg22[%c8, %c0_261] : memref<12x32xf32, #tpu.memory_space<vmem>>, vector<2x32xf32>
    tpu.vector_store %arg22[%c8, %c0_261], %552 {strides = array<i32>} : memref<12x32xf32, #tpu.memory_space<vmem>>, vector<2x32xf32>,
    %c8_262 = arith.constant 8 : index
    %c0_263 = arith.constant 0 : index
    %581 = vector.load %arg23[%c8_262, %c0_263] : memref<12x64xf32, #tpu.memory_space<vmem>>, vector<2x64xf32>
    tpu.vector_store %arg23[%c8_262, %c0_263], %579 {strides = array<i32>} : memref<12x64xf32, #tpu.memory_space<vmem>>, vector<2x64xf32>,
    %c5 = arith.constant 5 : index
    %c0_264 = arith.constant 0 : index
    %c0_265 = arith.constant 0 : index
    %582 = vector.load %arg0[%c5, %c0_264, %c0_265] : memref<6x2x16xbf16, #tpu.memory_space<vmem>>, vector<1x2x16xbf16>
    %583 = vector.shape_cast %582 : vector<1x2x16xbf16> to vector<2x16xbf16>
    %c0_266 = arith.constant 0 : index
    %c0_267 = arith.constant 0 : index
    %584 = vector.load %arg4[%c0_266, %c0_267] : memref<16x128xbf16, #tpu.memory_space<vmem>>, vector<16x128xbf16>
    %cst_268 = arith.constant dense<0.000000e+00> : vector<2x128xf32>
    %585 = tpu.matmul %583, %584, %cst_268 {dimension_numbers = #tpu.dot_dimension_numbers<[1], [0], [0], [1], [0, 0, 1, 1], [], []>} : vector<2x16xbf16>, vector<16x128xbf16>, vector<2x128xf32> -> vector<2x128xf32>
    %586 = arith.truncf %579 : vector<2x64xf32> to vector<2x64xbf16>
    %c0_269 = arith.constant 0 : index
    %c0_270 = arith.constant 0 : index
    %587 = vector.load %arg5[%c0_269, %c0_270] : memref<64x128xbf16, #tpu.memory_space<vmem>>, vector<64x128xbf16>
    %cst_271 = arith.constant dense<0.000000e+00> : vector<2x128xf32>
    %588 = tpu.matmul %586, %587, %cst_271 {dimension_numbers = #tpu.dot_dimension_numbers<[1], [0], [0], [1], [0, 0, 1, 1], [], []>} : vector<2x64xbf16>, vector<64x128xbf16>, vector<2x128xf32> -> vector<2x128xf32>
    %589 = arith.addf %585, %588 : vector<2x128xf32>
    %590 = arith.truncf %511 : vector<2x32xf32> to vector<2x32xbf16>
    %c0_272 = arith.constant 0 : index
    %c0_273 = arith.constant 0 : index
    %591 = vector.load %arg6[%c0_272, %c0_273] : memref<32x128xbf16, #tpu.memory_space<vmem>>, vector<32x128xbf16>
    %cst_274 = arith.constant dense<0.000000e+00> : vector<2x128xf32>
    %592 = tpu.matmul %590, %591, %cst_274 {dimension_numbers = #tpu.dot_dimension_numbers<[1], [0], [0], [1], [0, 0, 1, 1], [], []>} : vector<2x32xbf16>, vector<32x128xbf16>, vector<2x128xf32> -> vector<2x128xf32>
    %593 = arith.addf %589, %592 : vector<2x128xf32>
    %594 = arith.addf %593, %2 : vector<2x128xf32>
    %595 = vector.extract_strided_slice %594 {offsets = [0, 0], sizes = [2, 32], strides = [1, 1]} : vector<2x128xf32> to vector<2x32xf32>
    %cst_275 = arith.constant 5.000000e-01 : f32
    %596 = vector.broadcast %cst_275 : f32 to vector<2x32xf32>
    %597 = arith.mulf %596, %595 : vector<2x32xf32>
    %598 = math.tanh %597 : vector<2x32xf32>
    %cst_276 = arith.constant 5.000000e-01 : f32
    %599 = vector.broadcast %cst_276 : f32 to vector<2x32xf32>
    %600 = arith.mulf %599, %598 : vector<2x32xf32>
    %cst_277 = arith.constant 5.000000e-01 : f32
    %601 = vector.broadcast %cst_277 : f32 to vector<2x32xf32>
    %602 = arith.addf %600, %601 : vector<2x32xf32>
    %603 = vector.extract_strided_slice %594 {offsets = [0, 32], sizes = [2, 32], strides = [1, 1]} : vector<2x128xf32> to vector<2x32xf32>
    %cst_278 = arith.constant 5.000000e-01 : f32
    %604 = vector.broadcast %cst_278 : f32 to vector<2x32xf32>
    %605 = arith.mulf %604, %603 : vector<2x32xf32>
    %606 = math.tanh %605 : vector<2x32xf32>
    %cst_279 = arith.constant 5.000000e-01 : f32
    %607 = vector.broadcast %cst_279 : f32 to vector<2x32xf32>
    %608 = arith.mulf %607, %606 : vector<2x32xf32>
    %cst_280 = arith.constant 5.000000e-01 : f32
    %609 = vector.broadcast %cst_280 : f32 to vector<2x32xf32>
    %610 = arith.addf %608, %609 : vector<2x32xf32>
    %611 = vector.extract_strided_slice %594 {offsets = [0, 64], sizes = [2, 32], strides = [1, 1]} : vector<2x128xf32> to vector<2x32xf32>
    %612 = math.tanh %611 : vector<2x32xf32>
    %613 = vector.extract_strided_slice %594 {offsets = [0, 96], sizes = [2, 32], strides = [1, 1]} : vector<2x128xf32> to vector<2x32xf32>
    %cst_281 = arith.constant 5.000000e-01 : f32
    %614 = vector.broadcast %cst_281 : f32 to vector<2x32xf32>
    %615 = arith.mulf %614, %613 : vector<2x32xf32>
    %616 = math.tanh %615 : vector<2x32xf32>
    %cst_282 = arith.constant 5.000000e-01 : f32
    %617 = vector.broadcast %cst_282 : f32 to vector<2x32xf32>
    %618 = arith.mulf %617, %616 : vector<2x32xf32>
    %cst_283 = arith.constant 5.000000e-01 : f32
    %619 = vector.broadcast %cst_283 : f32 to vector<2x32xf32>
    %620 = arith.addf %618, %619 : vector<2x32xf32>
    %621 = arith.mulf %610, %509 : vector<2x32xf32>
    %622 = arith.mulf %602, %612 : vector<2x32xf32>
    %623 = arith.addf %621, %622 : vector<2x32xf32>
    %624 = math.tanh %623 : vector<2x32xf32>
    %625 = arith.mulf %620, %624 : vector<2x32xf32>
    %626 = arith.truncf %625 : vector<2x32xf32> to vector<2x32xbf16>
    %c0_284 = arith.constant 0 : index
    %c0_285 = arith.constant 0 : index
    %627 = vector.load %arg7[%c0_284, %c0_285] : memref<32x128xbf16, #tpu.memory_space<vmem>>, vector<32x128xbf16>
    %cst_286 = arith.constant dense<0.000000e+00> : vector<2x128xf32>
    %628 = tpu.matmul %626, %627, %cst_286 {dimension_numbers = #tpu.dot_dimension_numbers<[1], [0], [0], [1], [0, 0, 1, 1], [], []>} : vector<2x32xbf16>, vector<32x128xbf16>, vector<2x128xf32> -> vector<2x128xf32>
    %629 = arith.truncf %552 : vector<2x32xf32> to vector<2x32xbf16>
    %c0_287 = arith.constant 0 : index
    %c0_288 = arith.constant 0 : index
    %630 = vector.load %arg8[%c0_287, %c0_288] : memref<32x128xbf16, #tpu.memory_space<vmem>>, vector<32x128xbf16>
    %cst_289 = arith.constant dense<0.000000e+00> : vector<2x128xf32>
    %631 = tpu.matmul %629, %630, %cst_289 {dimension_numbers = #tpu.dot_dimension_numbers<[1], [0], [0], [1], [0, 0, 1, 1], [], []>} : vector<2x32xbf16>, vector<32x128xbf16>, vector<2x128xf32> -> vector<2x128xf32>
    %632 = arith.addf %628, %631 : vector<2x128xf32>
    %c0_290 = arith.constant 0 : index
    %c0_291 = arith.constant 0 : index
    %633 = vector.load %arg9[%c0_290, %c0_291] : memref<1x128xf32, #tpu.memory_space<vmem>>, vector<1x128xf32>
    %634 = vector.broadcast %633 : vector<1x128xf32> to vector<2x128xf32>
    %635 = arith.addf %632, %634 : vector<2x128xf32>
    %636 = vector.extract_strided_slice %635 {offsets = [0, 0], sizes = [2, 32], strides = [1, 1]} : vector<2x128xf32> to vector<2x32xf32>
    %cst_292 = arith.constant 5.000000e-01 : f32
    %637 = vector.broadcast %cst_292 : f32 to vector<2x32xf32>
    %638 = arith.mulf %637, %636 : vector<2x32xf32>
    %639 = math.tanh %638 : vector<2x32xf32>
    %cst_293 = arith.constant 5.000000e-01 : f32
    %640 = vector.broadcast %cst_293 : f32 to vector<2x32xf32>
    %641 = arith.mulf %640, %639 : vector<2x32xf32>
    %cst_294 = arith.constant 5.000000e-01 : f32
    %642 = vector.broadcast %cst_294 : f32 to vector<2x32xf32>
    %643 = arith.addf %641, %642 : vector<2x32xf32>
    %644 = vector.extract_strided_slice %635 {offsets = [0, 32], sizes = [2, 32], strides = [1, 1]} : vector<2x128xf32> to vector<2x32xf32>
    %cst_295 = arith.constant 5.000000e-01 : f32
    %645 = vector.broadcast %cst_295 : f32 to vector<2x32xf32>
    %646 = arith.mulf %645, %644 : vector<2x32xf32>
    %647 = math.tanh %646 : vector<2x32xf32>
    %cst_296 = arith.constant 5.000000e-01 : f32
    %648 = vector.broadcast %cst_296 : f32 to vector<2x32xf32>
    %649 = arith.mulf %648, %647 : vector<2x32xf32>
    %cst_297 = arith.constant 5.000000e-01 : f32
    %650 = vector.broadcast %cst_297 : f32 to vector<2x32xf32>
    %651 = arith.addf %649, %650 : vector<2x32xf32>
    %652 = vector.extract_strided_slice %635 {offsets = [0, 64], sizes = [2, 32], strides = [1, 1]} : vector<2x128xf32> to vector<2x32xf32>
    %653 = math.tanh %652 : vector<2x32xf32>
    %654 = vector.extract_strided_slice %635 {offsets = [0, 96], sizes = [2, 32], strides = [1, 1]} : vector<2x128xf32> to vector<2x32xf32>
    %cst_298 = arith.constant 5.000000e-01 : f32
    %655 = vector.broadcast %cst_298 : f32 to vector<2x32xf32>
    %656 = arith.mulf %655, %654 : vector<2x32xf32>
    %657 = math.tanh %656 : vector<2x32xf32>
    %cst_299 = arith.constant 5.000000e-01 : f32
    %658 = vector.broadcast %cst_299 : f32 to vector<2x32xf32>
    %659 = arith.mulf %658, %657 : vector<2x32xf32>
    %cst_300 = arith.constant 5.000000e-01 : f32
    %660 = vector.broadcast %cst_300 : f32 to vector<2x32xf32>
    %661 = arith.addf %659, %660 : vector<2x32xf32>
    %662 = arith.mulf %651, %550 : vector<2x32xf32>
    %663 = arith.mulf %643, %653 : vector<2x32xf32>
    %664 = arith.addf %662, %663 : vector<2x32xf32>
    %665 = math.tanh %664 : vector<2x32xf32>
    %666 = arith.mulf %661, %665 : vector<2x32xf32>
    %667 = arith.truncf %666 : vector<2x32xf32> to vector<2x32xbf16>
    %c0_301 = arith.constant 0 : index
    %c0_302 = arith.constant 0 : index
    %668 = vector.load %arg10[%c0_301, %c0_302] : memref<32x32xbf16, #tpu.memory_space<vmem>>, vector<32x32xbf16>
    %cst_303 = arith.constant dense<0.000000e+00> : vector<2x32xf32>
    %669 = tpu.matmul %667, %668, %cst_303 {dimension_numbers = #tpu.dot_dimension_numbers<[1], [0], [0], [1], [0, 0, 1, 1], [], []>} : vector<2x32xbf16>, vector<32x32xbf16>, vector<2x32xf32> -> vector<2x32xf32>
    %c0_304 = arith.constant 0 : index
    %c0_305 = arith.constant 0 : index
    %670 = vector.load %arg11[%c0_304, %c0_305] : memref<1x32xf32, #tpu.memory_space<vmem>>, vector<1x32xf32>
    %671 = vector.broadcast %670 : vector<1x32xf32> to vector<2x32xf32>
    %672 = arith.addf %669, %671 : vector<2x32xf32>
    %673 = vector.shape_cast %672 : vector<2x32xf32> to vector<2x1x32xf32>
    %674 = vector.broadcast %673 : vector<2x1x32xf32> to vector<2x8x32xf32>
    %675 = arith.addf %674, %1 : vector<2x8x32xf32>
    %676 = math.tanh %675 : vector<2x8x32xf32>
    %677 = arith.mulf %676, %5 : vector<2x8x32xf32>
    %cst_306 = arith.constant dense<0.000000e+00> : vector<2x8xf32>
    %678 = vector.multi_reduction <add>, %677, %cst_306 [2] : vector<2x8x32xf32> to vector<2x8xf32>
    %679 = vector.broadcast %6 : vector<1x1xf32> to vector<2x8xf32>
    %680 = arith.addf %678, %679 : vector<2x8xf32>
    %cst_307 = arith.constant dense<0xFF800000> : vector<2xf32>
    %681 = vector.multi_reduction <maximumf>, %680, %cst_307 [1] : vector<2x8xf32> to vector<2xf32>
    %682 = vector.shape_cast %681 : vector<2xf32> to vector<2x1xf32>
    %683 = vector.broadcast %682 : vector<2x1xf32> to vector<2x8xf32>
    %684 = arith.subf %680, %683 : vector<2x8xf32>
    %685 = math.exp %684 : vector<2x8xf32>
    %cst_308 = arith.constant dense<0.000000e+00> : vector<2xf32>
    %686 = vector.multi_reduction <add>, %685, %cst_308 [1] : vector<2x8xf32> to vector<2xf32>
    %687 = vector.shape_cast %686 : vector<2xf32> to vector<2x1xf32>
    %688 = vector.broadcast %687 : vector<2x1xf32> to vector<2x8xf32>
    %689 = arith.divf %685, %688 : vector<2x8xf32>
    %690 = vector.shape_cast %689 : vector<2x8xf32> to vector<2x8x1xf32>
    %691 = vector.broadcast %690 : vector<2x8x1xf32> to vector<2x8x64xf32>
    %692 = arith.mulf %691, %0 : vector<2x8x64xf32>
    %cst_309 = arith.constant dense<0.000000e+00> : vector<2x64xf32>
    %693 = vector.multi_reduction <add>, %692, %cst_309 [1] : vector<2x8x64xf32> to vector<2x64xf32>
    %c10 = arith.constant 10 : index
    %c0_310 = arith.constant 0 : index
    %694 = vector.load %arg22[%c10, %c0_310] : memref<12x32xf32, #tpu.memory_space<vmem>>, vector<2x32xf32>
    tpu.vector_store %arg22[%c10, %c0_310], %666 {strides = array<i32>} : memref<12x32xf32, #tpu.memory_space<vmem>>, vector<2x32xf32>,
    %c10_311 = arith.constant 10 : index
    %c0_312 = arith.constant 0 : index
    %695 = vector.load %arg23[%c10_311, %c0_312] : memref<12x64xf32, #tpu.memory_space<vmem>>, vector<2x64xf32>
    tpu.vector_store %arg23[%c10_311, %c0_312], %693 {strides = array<i32>} : memref<12x64xf32, #tpu.memory_space<vmem>>, vector<2x64xf32>,
    %c0_313 = arith.constant 0 : index
    %c0_314 = arith.constant 0 : index
    %c0_315 = arith.constant 0 : index
    %696 = vector.load %arg20[%c0_313, %c0_314, %c0_315] : memref<2x2x32xf32, #tpu.memory_space<vmem>>, vector<1x2x32xf32>
    %697 = vector.shape_cast %696 : vector<1x2x32xf32> to vector<2x32xf32>
    %698 = vector.shape_cast %625 : vector<2x32xf32> to vector<1x2x32xf32>
    tpu.vector_store %arg20[%c0_313, %c0_314, %c0_315], %698 {strides = array<i32>} : memref<2x2x32xf32, #tpu.memory_space<vmem>>, vector<1x2x32xf32>,
    %c0_316 = arith.constant 0 : index
    %c0_317 = arith.constant 0 : index
    %c0_318 = arith.constant 0 : index
    %699 = vector.load %arg21[%c0_316, %c0_317, %c0_318] : memref<2x2x32xf32, #tpu.memory_space<vmem>>, vector<1x2x32xf32>
    %700 = vector.shape_cast %699 : vector<1x2x32xf32> to vector<2x32xf32>
    %701 = vector.shape_cast %623 : vector<2x32xf32> to vector<1x2x32xf32>
    tpu.vector_store %arg21[%c0_316, %c0_317, %c0_318], %701 {strides = array<i32>} : memref<2x2x32xf32, #tpu.memory_space<vmem>>, vector<1x2x32xf32>,
    %c1_319 = arith.constant 1 : index
    %c0_320 = arith.constant 0 : index
    %c0_321 = arith.constant 0 : index
    %702 = vector.load %arg20[%c1_319, %c0_320, %c0_321] : memref<2x2x32xf32, #tpu.memory_space<vmem>>, vector<1x2x32xf32>
    %703 = vector.shape_cast %702 : vector<1x2x32xf32> to vector<2x32xf32>
    %704 = vector.shape_cast %666 : vector<2x32xf32> to vector<1x2x32xf32>
    tpu.vector_store %arg20[%c1_319, %c0_320, %c0_321], %704 {strides = array<i32>} : memref<2x2x32xf32, #tpu.memory_space<vmem>>, vector<1x2x32xf32>,
    %c1_322 = arith.constant 1 : index
    %c0_323 = arith.constant 0 : index
    %c0_324 = arith.constant 0 : index
    %705 = vector.load %arg21[%c1_322, %c0_323, %c0_324] : memref<2x2x32xf32, #tpu.memory_space<vmem>>, vector<1x2x32xf32>
    %706 = vector.shape_cast %705 : vector<1x2x32xf32> to vector<2x32xf32>
    %707 = vector.shape_cast %664 : vector<2x32xf32> to vector<1x2x32xf32>
    tpu.vector_store %arg21[%c1_322, %c0_323, %c0_324], %707 {strides = array<i32>} : memref<2x2x32xf32, #tpu.memory_space<vmem>>, vector<1x2x32xf32>,
    %c0_325 = arith.constant 0 : index
    %c0_326 = arith.constant 0 : index
    %708 = vector.load %arg22[%c0_325, %c0_326] : memref<12x32xf32, #tpu.memory_space<vmem>>, vector<12x32xf32>
    %c0_327 = arith.constant 0 : index
    %c0_328 = arith.constant 0 : index
    %709 = vector.load %arg23[%c0_327, %c0_328] : memref<12x64xf32, #tpu.memory_space<vmem>>, vector<12x64xf32>
    %710 = arith.truncf %708 : vector<12x32xf32> to vector<12x32xbf16>
    %c0_329 = arith.constant 0 : index
    %c0_330 = arith.constant 0 : index
    %711 = vector.load %arg14[%c0_329, %c0_330] : memref<32x16xbf16, #tpu.memory_space<vmem>>, vector<32x16xbf16>
    %cst_331 = arith.constant dense<0.000000e+00> : vector<12x16xf32>
    %712 = tpu.matmul %710, %711, %cst_331 {dimension_numbers = #tpu.dot_dimension_numbers<[1], [0], [0], [1], [0, 0, 1, 1], [], []>} : vector<12x32xbf16>, vector<32x16xbf16>, vector<12x16xf32> -> vector<12x16xf32>
    %713 = arith.truncf %709 : vector<12x64xf32> to vector<12x64xbf16>
    %c0_332 = arith.constant 0 : index
    %c0_333 = arith.constant 0 : index
    %714 = vector.load %arg15[%c0_332, %c0_333] : memref<64x16xbf16, #tpu.memory_space<vmem>>, vector<64x16xbf16>
    %cst_334 = arith.constant dense<0.000000e+00> : vector<12x16xf32>
    %715 = tpu.matmul %713, %714, %cst_334 {dimension_numbers = #tpu.dot_dimension_numbers<[1], [0], [0], [1], [0, 0, 1, 1], [], []>} : vector<12x64xbf16>, vector<64x16xbf16>, vector<12x16xf32> -> vector<12x16xf32>
    %716 = arith.addf %712, %715 : vector<12x16xf32>
    %c0_335 = arith.constant 0 : index
    %c0_336 = arith.constant 0 : index
    %717 = vector.load %arg16[%c0_335, %c0_336] : memref<1x16xf32, #tpu.memory_space<vmem>>, vector<1x16xf32>
    %718 = vector.broadcast %717 : vector<1x16xf32> to vector<12x16xf32>
    %719 = arith.addf %716, %718 : vector<12x16xf32>
    %720 = arith.truncf %719 : vector<12x16xf32> to vector<12x16xbf16>
    %c0_337 = arith.constant 0 : index
    %c0_338 = arith.constant 0 : index
    %721 = vector.load %arg17[%c0_337, %c0_338] : memref<16x128xbf16, #tpu.memory_space<vmem>>, vector<16x128xbf16>
    %cst_339 = arith.constant dense<0.000000e+00> : vector<12x128xf32>
    %722 = tpu.matmul %720, %721, %cst_339 {dimension_numbers = #tpu.dot_dimension_numbers<[1], [0], [0], [1], [0, 0, 1, 1], [], []>} : vector<12x16xbf16>, vector<16x128xbf16>, vector<12x128xf32> -> vector<12x128xf32>
    %c0_340 = arith.constant 0 : index
    %c0_341 = arith.constant 0 : index
    %723 = vector.load %arg18[%c0_340, %c0_341] : memref<1x128xf32, #tpu.memory_space<vmem>>, vector<1x128xf32>
    %724 = vector.broadcast %723 : vector<1x128xf32> to vector<12x128xf32>
    %725 = arith.addf %722, %724 : vector<12x128xf32>
    %cst_342 = arith.constant dense<0xFF800000> : vector<12xf32>
    %726 = vector.multi_reduction <maximumf>, %725, %cst_342 [1] : vector<12x128xf32> to vector<12xf32>
    %727 = vector.shape_cast %726 : vector<12xf32> to vector<12x1xf32>
    %728 = vector.broadcast %727 : vector<12x1xf32> to vector<12x128xf32>
    %729 = arith.subf %725, %728 : vector<12x128xf32>
    %730 = math.exp %729 : vector<12x128xf32>
    %cst_343 = arith.constant dense<0.000000e+00> : vector<12xf32>
    %731 = vector.multi_reduction <add>, %730, %cst_343 [1] : vector<12x128xf32> to vector<12xf32>
    %732 = vector.shape_cast %731 : vector<12xf32> to vector<12x1xf32>
    %733 = math.log %732 : vector<12x1xf32>
    %734 = vector.broadcast %733 : vector<12x1xf32> to vector<12x128xf32>
    %735 = arith.subf %729, %734 : vector<12x128xf32>
    %c0_344 = arith.constant 0 : index
    %c0_345 = arith.constant 0 : index
    %736 = vector.load %arg19[%c0_344, %c0_345] : memref<12x128xf32, #tpu.memory_space<vmem>>, vector<12x128xf32>
    tpu.vector_store %arg19[%c0_344, %c0_345], %735 {strides = array<i32>} : memref<12x128xf32, #tpu.memory_space<vmem>>, vector<12x128xf32>,
    return
  }
}

</mosaic_0001>

<bundles_post_ra>
// kernel: bahdanau_forward.1
= control target key start
LH: loop header
LB: loop body
LE: loop exit
PB: predicated region body
PF: predicated region fallthrough
CT: control target
= control target key end

     0   :  { %s4229_s0 = inlined_call_operand.vmem [shape: bf16[6,2,16], index: 0, kind: input, shape index: {}]   ;;  %s4230_s1 = inlined_call_operand.vmem [shape: f32[2,128], index: 1, kind: input, shape index: {}]   ;;  %s4231_s2 = inlined_call_operand.vmem [shape: f32[2,8,64], index: 2, kind: input, shape index: {}]   ;;  %s4232_s3 = inlined_call_operand.vmem [shape: f32[2,8,32], index: 3, kind: input, shape index: {}]   ;;  %s4233_s4 = inlined_call_operand.vmem [shape: bf16[16,128], index: 4, kind: input, shape index: {}]   ;;  %s4234_s5 = inlined_call_operand.vmem [shape: bf16[64,128], index: 5, kind: input, shape index: {}]   ;;  %s4235_s6 = inlined_call_operand.vmem [shape: bf16[32,128], index: 6, kind: input, shape index: {}]   ;;  %s4236_s7 = inlined_call_operand.vmem [shape: bf16[32,128], index: 7, kind: input, shape index: {}]   ;;  %s4237_s8 = inlined_call_operand.vmem [shape: bf16[32,128], index: 8, kind: input, shape index: {}]   ;;  %s4238_s9 = inlined_call_operand.vmem [shape: f32[1,128], index: 9, kind: input, shape index: {}]   ;;  %s4239_s10 = inlined_call_operand.vmem [shape: bf16[32,32], index: 10, kind: input, shape index: {}]   ;;  %s4240_s11 = inlined_call_operand.vmem [shape: f32[1,32], index: 11, kind: input, shape index: {}]   ;;  %s4241_s12 = inlined_call_operand.vmem [shape: f32[1,32], index: 12, kind: input, shape index: {}]   ;;  %s4242_s13 = inlined_call_operand.<no memory space> [shape: f32[1,1], index: 13, kind: input, shape index: {}]   ;;  %s4243_s14 = inlined_call_operand.vmem [shape: bf16[32,16], index: 14, kind: input, shape index: {}]   ;;  %s4244_s15 = inlined_call_operand.vmem [shape: bf16[64,16], index: 15, kind: input, shape index: {}]   ;;  %s4245_s16 = inlined_call_operand.vmem [shape: f32[1,16], index: 16, kind: input, shape index: {}]   ;;  %s4246_s17 = inlined_call_operand.vmem [shape: bf16[16,128], index: 17, kind: input, shape index: {}]   ;;  %s4247_s18 = inlined_call_operand.vmem [shape: f32[1,128], index: 18, kind: input, shape index: {}]   ;;  %s4248_s19 = inlined_call_operand.vmem [shape: f32[12,128], index: 19, kind: output, shape index: {0}]   ;;  %s4249_s20 = inlined_call_operand.hbm [shape: f32[2,2,32], index: 20, kind: output, shape index: {1}]   ;;  %s4250_s21 = inlined_call_operand.hbm [shape: f32[2,2,32], index: 21, kind: output, shape index: {2}]  }
   0x1   :  { %4259 = sst [smem:[#allocation11_spill]] %s4229_s0  ;;  %v27_v0 = vstv %s4242_s13 }
   0x2   :  { %4260 = sst [smem:[#allocation12_spill]] %s4230_s1  ;;  %28 = vst [vmem:[#allocation4] sm:$0x1] %v27_v0 }
   0x3   :  { %4261 = sst [smem:[#allocation13_spill]] %s4231_s2 }
   0x4   :  { %4262 = sst [smem:[#allocation14_spill]] %s4232_s3 }
   0x5   :  { %4263 = sst [smem:[#allocation15_spill]] %s4233_s4 }
   0x6   :  { %4264 = sst [smem:[#allocation16_spill]] %s4234_s5 }
   0x7   :  { %29 = vsyncpa [#allocation6], 0  ;;  %s4265_s3 = sld [smem:[#allocation16_spill]]  ;;  %v3040_v2 = vld [vmem:[%s4235_s6 + $0x8] sm:$0xff]  ;;  %v3355_v5 = vmov 0   ;;  %v3039_v6 = vld [vmem:[%s4235_s6] sm:$0xff] }
   0x8   :  { %s4266_s22 = sld [smem:[#allocation15_spill]]  ;;  %3126 = vset.pattern.permute.xlu1 %v3355_v5  ;;  %3128 = vset.pattern.permute.xlu0 %v3355_v5  ;;  %vm138_vm0 = vcmask 130048  }
   0x9   :  { %180 = vmatpush.bf16.msra.mxu2 %v3040_v2  ;;  %s4267_s2 = sld [smem:[#allocation11_spill]]  ;;  %3127 = vset.pattern.permute.xlu2 %v3355_v5 }
   0xd   :  { %v3038_v1 = vld [vmem:[%s4265_s3 + $0x18] sm:$0xff]  ;;  %v3037_v3 = vld [vmem:[%s4265_s3 + $0x10] sm:$0xff]  ;;  %v3036_v8 = vld [vmem:[%s4265_s3 + $0x8] sm:$0xff]  ;;  %181 = vmatpush.bf16.msra.mxu2 %v3039_v6 }
   0xe   :  { %v3034_v4 = vld [vmem:[%s4266_s22] sm:$0xff]  ;;  %123 = vmatpush.bf16.msra.mxu0 %v3038_v1 }
   0xf   :  { %v80_v7 = vld [vmem:[%s4267_s2] sm:$0x1]  ;;  %149 = vmatpush.bf16.msra.mxu1 %v3034_v4 }
  0x12   :  { %124 = vmatpush.bf16.msra.mxu0 %v3037_v3  ;;  %2673 = vmatmul.msk.bf16.vlgmr.msra.gmra.mxu1 %vm138_vm0, %v80_v7 }
  0x13   :  { %30 = vsyncpa [#allocation8], 0  ;;  %182 = vmatmul.bf16.vlgmr.msra.gmra.mxu2 %v3355_v5  ;;  %v3035_v9 = vld [vmem:[%s4265_s3] sm:$0xff]  ;;  %s4268_s4 = sld [smem:[#allocation12_spill]]  ;;  %s3356_s30 = smov 64   ;;  %v3044_v31 = vld [vmem:[%s4237_s8 + $0x8] sm:$0xff] }
  0x14   :  { %s4257_s5 = smov 32   ;;  %v3042_v32 = vld [vmem:[%s4236_s7 + $0x8] sm:$0xff]  ;;  %238 = vmatpush.bf16.msra.mxu3 %v3044_v31  ;;  %v3043_v33 = vld [vmem:[%s4237_s8] sm:$0xff]  ;;  %vm171_vm1 = vcmask 261120   ;;  %s4269_s27 = sld [smem:[#allocation14_spill]]  ;;  %vm375_vm2 = vcmask 1041409  }
  0x15   :  { %269 = vmatpush.bf16.msrb.mxu1 %v3042_v32  ;;  %v3041_v34 = vld [vmem:[%s4236_s7] sm:$0xff]  ;;  %v3053_v38 = vld [vmem:[%s4235_s6 + $0x8] sm:$0xff]  ;;  %vm378_vm3 = vcmask 58368   ;;  %s4270_s29 = sld [smem:[#allocation13_spill]]  ;;  %vm115_vm12 = vcmask 523264   ;;  %vm479_vm13 = vcmask 517120  }
  0x16   :  { %125 = vmatpush.bf16.msra.mxu0 %v3036_v8  ;;  %v3052_v39 = vld [vmem:[%s4235_s6] sm:$0xff]  ;;  %v3046_v61 = vld [vmem:[%s4239_s10 + $0x8] sm:$0xff] }
  0x17   :  { %v3129_v43 = vld [vmem:[%s4238_s9] ss:$0 sm:$0xff]  ;;  %336 = vmatpush.bf16.msrb.mxu2 %v3046_v61  ;;  %v3057_v2 = vld [vmem:[%s4237_s8 + $0x8] sm:$0xff] }
  0x18   :  { %239 = vmatpush.bf16.msra.mxu3 %v3043_v33  ;;  %v3045_v62 = vld [vmem:[%s4239_s10] sm:$0xff] }
  0x19   :  { %v3503_v15 = vld [vmem:[%s4268_s4] sm:$0x3]  ;;  %270 = vmatpush.bf16.msrb.mxu1 %v3041_v34 }
  0x1a   :  { %126 = vmatpush.bf16.msra.mxu0 %v3035_v9  ;;  %v3056_v3 = vld [vmem:[%s4237_s8] sm:$0xff] }
  0x1b   :  { %240 = vmatmul.bf16.vlgmr.msra.gmra.mxu3 %v3355_v5  ;;  %337 = vmatpush.bf16.msrb.mxu2 %v3045_v62  ;;  %v3130_v6 = vld [vmem:[%s4240_s11] ss:$0 sm:$0xff] }
  0x1c   :  { %v3569_v9 = vld [vmem:[%s4269_s27] sm:$0xff] }
  0x1d   :  { %127 = vmatmul.bf16.vlgmr.msra.gmra.mxu0 %v3355_v5  ;;  %585 = vmatpush.bf16.msra.mxu1 %v3053_v38  ;;  %v3132_v5 = vld [vmem:[#allocation4] ss:$0 sm:$0xff] }
  0x1f   :  { %643 = vmatpush.bf16.msra.mxu2 %v3057_v2 }
  0x21   :  { %586 = vmatpush.bf16.msra.mxu1 %v3052_v39 }
  0x23   :  { %644 = vmatpush.bf16.msra.mxu2 %v3056_v3 }
  0x8f   :  { %v151_v10 = vpop.f32.mrf.mxu1 }
  0x96   :  { %v183_v11 = vpop.f32.mrf.mxu2 }
  0x97   :  { %v153_v12 = vpop.f32.mrf.mxu1 }
  0x98   :  { %v3574_v12 = vld [vmem:[%s4269_s27 + $0x8] sm:$0xff] }
  0x9a   :  { %v128_v13 = vpop.f32.mrf.mxu0 }
  0x9b   :  { %v152_v14 = vadd.f32 %v151_v10, %v128_v13 }
  0x9d   :  { %v187_v16 = vadd.f32 %v183_v11, %v152_v14 }
  0x9e   :  { %v185_v18 = vpop.f32.mrf.mxu2  ;;  %v241_v40 = vpop.f32.mrf.mxu3 }
  0x9f   :  { %v188_v17 = vadd.f32 %v187_v16, %v3503_v15  ;;  %v3581_v18 = vld [vmem:[%s4241_s12] ss:$0 sm:$0xff] }
  0xa1   :  { %3145 = vtanh.f32 %v188_v17  ;;  %v189_v21 = vmul.f32 0.5, %v188_v17 }
  0xa2   :  { %v130_v19 = vpop.f32.mrf.mxu0 }
  0xa3   :  { %3147 = vtanh.f32 %v189_v21 }
  0xa6   :  { %v243_v42 = vpop.f32.mrf.mxu3 }
  0xa7   :  { %v3146_v20 = vpop.eup %3145 }
  0xa8   :  { %196 = vrot.lane.b32.xlu0 %v3146_v20, %s3356_s30 }
  0xa9   :  { %v3148_v22 = vpop.eup %3147 }
  0xaa   :  { %v191_v23 = vmul.f32 0.5, %v3148_v22 }
  0xac   :  { %v192_v24 = vadd.f32 0.5, %v191_v23 }
  0xae   :  { %v194_v27 = vmul.f32 0.0, %v192_v24 }
 0x11a   :  { %v197_v25 = vpop.permute.xlu0 %196 }
 0x11b   :  { %v199_v26 = vmul.f32 %v197_v25, %v192_v24 }
 0x11d   :  { %201 = vrot.lane.b32.xlu0 %v199_v26, %s4257_s5 }
 0x18f   :  { %v202_v28 = vpop.permute.xlu0 %201 }
 0x190   :  { %v3508_v29 = vadd.f32 %v202_v28, %v194_v27  ;;  %v371_v27 = vlaneseq }
 0x192   :  { %3149 = vtanh.f32 %v3508_v29  ;;  %v3591_v31 = vand.u32 127, %v371_v27  ;;  %v3049_v27 = vld [vmem:[%s4265_s3 + $0x8] sm:$0xff] }
 0x198   :  { %v3150_v30 = vpop.eup %3149 }
 0x199   :  { %207 = vrot.lane.b32.xlu1 %v3150_v30, %s3356_s30 }
 0x20b   :  { %v208_v35 = vpop.permute.xlu1 %207 }
 0x20c   :  { %v210_v36 = vmul.f32 %v208_v35, %v192_v24 }
 0x20e   :  { %v211_v37 = vpack.c.bf16 %v210_v36, %v210_v36 }
 0x210   :  { %246 = vrot.lane.b32.xlu1 %v211_v37, %s4257_s5 }
 0x282   :  { %v247_v41 = vpop.permute.xlu1 %246 }
 0x283   :  { %2698 = vmatmul.msk.bf16.vlgmr.msrb.gmra.mxu1 %vm171_vm1, %v247_v41 }
 0x293   :  { %2739 = vmatmul.msk.bf16.vlgmr.msra.gmra.mxu1 %vm171_vm1, %v247_v41 }
 0x300   :  { %v272_v44 = vpop.f32.mrf.mxu1 }
 0x301   :  { %v273_v45 = vadd.f32 %v272_v44, %v241_v40 }
 0x303   :  { %v280_v46 = vadd.f32 %v3129_v43, %v273_v45 }
 0x305   :  { %3151 = vtanh.f32 %v280_v46  ;;  %v281_v51 = vmul.f32 0.5, %v280_v46 }
 0x307   :  { %3153 = vtanh.f32 %v281_v51 }
 0x308   :  { %v274_v47 = vpop.f32.mrf.mxu1 }
 0x30b   :  { %v3152_v48 = vpop.eup %3151 }
 0x30c   :  { %288 = vrot.lane.b32.xlu2 %v3152_v48, %s3356_s30 }
 0x30d   :  { %v3154_v52 = vpop.eup %3153 }
 0x30e   :  { %v283_v53 = vmul.f32 0.5, %v3154_v52 }
 0x310   :  { %v3537_v49 = vpop.f32.mrf.mxu1  ;;  %v284_v54 = vadd.f32 0.5, %v283_v53 }
 0x312   :  { %v286_v57 = vmul.f32 0.0, %v284_v54 }
 0x318   :  { %v590_v50 = vpop.f32.mrf.mxu1 }
 0x366   :  { %v289_v55 = vpop.permute.xlu2 %288 }
 0x367   :  { %v291_v56 = vmul.f32 %v289_v55, %v284_v54 }
 0x369   :  { %293 = vrot.lane.b32.xlu2 %v291_v56, %s4257_s5 }
 0x3c3   :  { %v294_v58 = vpop.permute.xlu2 %293 }
 0x3c4   :  { %v3540_v59 = vadd.f32 %v294_v58, %v286_v57 }
 0x3c6   :  { %3155 = vtanh.f32 %v3540_v59 }
 0x3cc   :  { %v3156_v60 = vpop.eup %3155 }
 0x3cd   :  { %299 = vrot.lane.b32.xlu0 %v3156_v60, %s3356_s30 }
 0x43f   :  { %v300_v63 = vpop.permute.xlu0 %299 }
 0x440   :  { %v3550_v0 = vmul.f32 %v300_v63, %v284_v54 }
 0x442   :  { %v303_v1 = vpack.c.bf16 %v3550_v0, %v3550_v0 }
 0x444   :  { %313 = vrot.lane.b32.xlu1 %v303_v1, %s4257_s5 }
 0x44c   :  { %364 = vperm.xlu1 %3126, %v3132_v5  }
 0x4b6   :  { %v314_v4 = vpop.permute.xlu1 %313 }
 0x4b7   :  { %2707 = vmatmul.msk.bf16.vlgmr.msrb.gmra.mxu2 %vm171_vm1, %v314_v4 }
 0x4be   :  { %v3589_v28 = vpop.permute.xlu1 %364 }
 0x4c7   :  { %2748 = vmatmul.msk.bf16.vlgmr.msra.gmra.mxu2 %vm171_vm1, %v314_v4 }
 0x53a   :  { %v339_v7 = vpop.f32.mrf.mxu2 }
 0x53b   :  { %v340_v8 = vadd.f32 %v3130_v6, %v339_v7 }
 0x53d   :  { %v344_v10 = vrot.slane %v340_v8, 1  ;;  %v345_v11 = vperm.slane %v340_v8, 0 }
 0x53f   :  { %v346_v13 = vperm.slane %v344_v10, 0  ;;  %v349_v14 = vadd.f32 %v345_v11, %v3569_v9 }
 0x541   :  { %v350_v16 = vadd.f32 %v346_v13, %v3574_v12  ;;  %3157 = vtanh.f32 %v349_v14 }
 0x542   :  { %v341_v17 = vpop.f32.mrf.mxu2 }
 0x543   :  { %3159 = vtanh.f32 %v350_v16 }
 0x547   :  { %v3158_v19 = vpop.eup %3157 }
 0x548   :  { %v353_v20 = vmul.f32 %v3158_v19, %v3581_v18 }
 0x549   :  { %v3160_v21 = vpop.eup %3159 }
 0x54a   :  { %v3584_v22 = vpop.f32.mrf.mxu2  ;;  %v355_v23 = vsel %vm171_vm1, %v353_v20, 0.0  ;;  %v354_v24 = vmul.f32 %v3160_v21, %v3581_v18 }
 0x54b   :  { %356 = vadd.xlane.f32.xlu2 %v355_v23  ;;  %v3051_v23 = vld [vmem:[%s4265_s3 + $0x18] sm:$0xff] }
 0x54c   :  { %v358_v25 = vsel %vm171_vm1, %v354_v24, 0.0  ;;  %532 = vmatpush.bf16.msrb.mxu3 %v3051_v23  ;;  %v3050_v24 = vld [vmem:[%s4265_s3 + $0x10] sm:$0xff] }
 0x54d   :  { %359 = vadd.xlane.f32.xlu0 %v358_v25 }
 0x550   :  { %533 = vmatpush.bf16.msrb.mxu3 %v3050_v24  ;;  %v3066_v24 = vld [vmem:[%s4235_s6 + $0x8] sm:$0xff] }
 0x552   :  { %v648_v26 = vpop.f32.mrf.mxu2 }
 0x553   :  { %v3612_v26 = vld [vmem:[%s4270_s29] sm:$0xff] }
 0x554   :  { %534 = vmatpush.bf16.msrb.mxu3 %v3049_v27 }
 0x5be   :  { %v357_v30 = vpop.xlane.xlu2 %356 }
 0x5bf   :  { %v367_v32 = vadd.f32 %v3589_v28, %v357_v30 }
 0x5c0   :  { %v360_v33 = vpop.xlane.xlu0 %359 }
 0x5c1   :  { %v368_v34 = vadd.f32 %v3589_v28, %v360_v33  ;;  %v373_v35 = vperm.slane %v367_v32, %v3591_v31  ;;  %v3048_v33 = vld [vmem:[%s4265_s3] sm:$0xff] }
 0x5c2   :  { %535 = vmatpush.bf16.msrb.mxu3 %v3048_v33 }
 0x5c3   :  { %v374_v36 = vperm.slane %v368_v34, %v3591_v31 }
 0x5c5   :  { %v376_v37 = vsel %vm375_vm2, %v374_v36, %v373_v35 }
 0x5c6   :  { %v379_v38 = vsel %vm378_vm3, %v376_v37, -inf }
 0x5c7   :  { %380 = vmax.xlane.f32.xlu1 %v379_v38 }
 0x63a   :  { %v381_v39 = vpop.xlane.xlu1 %380 }
 0x63b   :  { %v383_v40 = vperm.slane %v381_v39, 0  ;;  %v384_v41 = vperm.slane %v381_v39, 1  ;;  %v3632_v39 = vld [vmem:[%s4270_s29 + $0x8] sm:$0xff] }
 0x63d   :  { %v387_v42 = vsub.f32 %v367_v32, %v383_v40  ;;  %v388_v43 = vsub.f32 %v368_v34, %v384_v41  ;;  %v3047_v32 = vld [vmem:[%s4266_s22] sm:$0xff] }
 0x63e   :  { %557 = vmatpush.bf16.msrb.mxu0 %v3047_v32  ;;  %v2708_v34 = vld [vmem:[%s4267_s2 + $0x1] sm:$0x1] }
 0x63f   :  { %v389_v44 = vmul.f32 1.442695, %v387_v42  ;;  %v391_v45 = vmul.f32 1.442695, %v388_v43 }
 0x641   :  { %3161 = vpow2.f32 %v389_v44  ;;  %2730 = vmatmul.msk.bf16.vlgmr.msrb.gmra.mxu0 %vm138_vm0, %v2708_v34 }
 0x642   :  { %3163 = vpow2.f32 %v391_v45 }
 0x647   :  { %v3162_v46 = vpop.eup %3161 }
 0x648   :  { %v3164_v47 = vpop.eup %3163  ;;  %396 = vperm.xlu2 %3127, %v3162_v46  }
 0x649   :  { %399 = vperm.xlu0 %3128, %v3164_v47  }
 0x6a2   :  { %v397_v48 = vpop.permute.xlu2 %396 }
 0x6a3   :  { %v401_v51 = vperm.slane %v397_v48, %v3591_v31 }
 0x6bb   :  { %v400_v50 = vpop.permute.xlu0 %399 }
 0x6bc   :  { %v402_v52 = vperm.slane %v400_v50, %v3591_v31 }
 0x6be   :  { %v403_v53 = vsel %vm375_vm2, %v402_v52, %v401_v51 }
 0x6bf   :  { %v405_v54 = vsel %vm378_vm3, %v403_v53, 0.0 }
 0x6c0   :  { %406 = vadd.xlane.f32.xlu1 %v405_v54 }
 0x733   :  { %v407_v55 = vpop.xlane.xlu1 %406 }
 0x734   :  { %v409_v56 = vperm.slane %v407_v55, 0  ;;  %v410_v57 = vperm.slane %v407_v55, 1 }
 0x736   :  { %3165 = vrcp.f32 %v409_v56  ;;  %v424_v2 = vand.u32 2147483648, %v409_v56  ;;  %v439_v3 = vand.u32 2147483648, %v410_v57  ;;  %v422_v5 = vand.u32 2147483647, %v409_v56 }
 0x737   :  { %3167 = vrcp.f32 %v410_v57  ;;  %v437_v7 = vand.u32 2147483647, %v410_v57  ;;  %vm418_vm6 = vweird.f32 %v409_v56  ;;  %vm433_vm7 = vweird.f32 %v410_v57 }
 0x738   :  { %v425_v11 = vor.u32 1.1754944e-38, %v424_v2  ;;  %v440_v13 = vor.u32 1.1754944e-38, %v439_v3  ;;  %vm423_vm10 = vcmp.eq.f32.partialorder %v422_v5, 8.507059e+37 }
 0x739   :  { %vm438_vm11 = vcmp.eq.f32.partialorder %v437_v7, 8.507059e+37 }
 0x73c   :  { %v3166_v58 = vpop.eup %3165 }
 0x73d   :  { %v3168_v60 = vpop.eup %3167  ;;  %v414_v61 = vmul.f32 %v3166_v58, %v409_v56  ;;  %vm419_vm4 = vweird.f32 %v3166_v58 }
 0x73e   :  { %v429_v62 = vmul.f32 %v3168_v60, %v410_v57  ;;  %vm434_vm5 = vweird.f32 %v3168_v60  ;;  %vm420_vm8 = vmor %vm418_vm6, %vm419_vm4 }
 0x73f   :  { %v415_v63 = vsub.f32 1.0, %v414_v61  ;;  %vm435_vm9 = vmor %vm433_vm7, %vm434_vm5  ;;  %v559_v61 = vpop.f32.mrf.mxu0 }
 0x740   :  { %v430_v1 = vsub.f32 1.0, %v429_v62 }
 0x741   :  { %v416_v4 = vmul.f32 %v3166_v58, %v415_v63 }
 0x742   :  { %v431_v6 = vmul.f32 %v3168_v60, %v430_v1 }
 0x743   :  { %v417_v8 = vadd.f32 %v3166_v58, %v416_v4 }
 0x744   :  { %v432_v10 = vadd.f32 %v3168_v60, %v431_v6 }
 0x745   :  { %v421_v14 = vsel %vm420_vm8, %v3166_v58, %v417_v8 }
 0x746   :  { %v436_v16 = vsel %vm435_vm9, %v3168_v60, %v432_v10  ;;  %v426_v17 = vsel %vm423_vm10, %v425_v11, %v421_v14 }
 0x747   :  { %v441_v19 = vsel %vm438_vm11, %v440_v13, %v436_v16  ;;  %v427_v20 = vmul.f32 %v3162_v46, %v426_v17  ;;  %v561_v62 = vpop.f32.mrf.mxu0 }
 0x748   :  { %v442_v21 = vmul.f32 %v3164_v47, %v441_v19  ;;  %v3055_v19 = vld [vmem:[%s4236_s7 + $0x8] sm:$0xff] }
 0x749   :  { %445 = vperm.xlu2 %3127, %v427_v20   ;;  %674 = vmatpush.bf16.msra.mxu3 %v3055_v19  ;;  %v3054_v20 = vld [vmem:[%s4236_s7] sm:$0xff] }
 0x74a   :  { %450 = vperm.xlu1 %3126, %v442_v21  }
 0x74d   :  { %675 = vmatpush.bf16.msra.mxu3 %v3054_v20 }
 0x7a3   :  { %v446_v25 = vpop.permute.xlu2 %445 }
 0x7a4   :  { %v453_v30 = vmul.f32 %v446_v25, %v3612_v26  ;;  %v3065_v25 = vld [vmem:[%s4235_s6] sm:$0xff] }
 0x7a6   :  { %v455_v35 = vsel %vm115_vm12, %v453_v30, 0.0  ;;  %v3133_v30 = vld [vmem:[%s4238_s9] ss:$0 sm:$0xff] }
 0x7a7   :  { %v456_v36 = vrot.slane %v455_v35, 4 }
 0x7a9   :  { %v457_v37 = vadd.f32 %v456_v36, %v455_v35 }
 0x7ab   :  { %v458_v38 = vrot.slane %v457_v37, 2 }
 0x7ad   :  { %v459_v42 = vadd.f32 %v458_v38, %v457_v37 }
 0x7af   :  { %v460_v45 = vrot.slane %v459_v42, 1 }
 0x7b1   :  { %v461_v48 = vadd.f32 %v460_v45, %v459_v42 }
 0x7b3   :  { %v485_v52 = vpack.c.bf16 %v461_v48, %v461_v48 }
 0x7b5   :  { %v497_v56 = vunpack.c.l.b16 %v485_v52 }
 0x7bc   :  { %v451_v40 = vpop.permute.xlu1 %450 }
 0x7bd   :  { %v454_v41 = vmul.f32 %v451_v40, %v3632_v39 }
 0x7bf   :  { %v462_v43 = vsel %vm115_vm12, %v454_v41, 0.0 }
 0x7c0   :  { %v463_v44 = vrot.slane %v462_v43, 4 }
 0x7c2   :  { %v464_v46 = vadd.f32 %v463_v44, %v462_v43 }
 0x7c4   :  { %v465_v47 = vrot.slane %v464_v46, 2 }
 0x7c6   :  { %v466_v50 = vadd.f32 %v465_v47, %v464_v46 }
 0x7c8   :  { %v467_v51 = vrot.slane %v466_v50, 1 }
 0x7ca   :  { %v468_v53 = vadd.f32 %v467_v51, %v466_v50  ;;  %v3059_v50 = vld [vmem:[%s4239_s10 + $0x8] sm:$0xff]  ;;  %v3058_v51 = vld [vmem:[%s4239_s10] sm:$0xff] }
 0x7cb   :  { %741 = vmatpush.bf16.msra.mxu0 %v3059_v50 }
 0x7cc   :  { %v477_v54 = vsel %vm375_vm2, %v468_v53, %v461_v48  ;;  %v486_v55 = vpack.c.bf16 %v468_v53, %v468_v53 }
 0x7cd   :  { %480 = vst.msk [vmem:[#allocation3] sm:$0x3] %vm479_vm13, %v477_v54  ;;  %v3070_v54 = vld [vmem:[%s4237_s8 + $0x8] sm:$0xff] }
 0x7ce   :  { %v498_v57 = vunpack.c.l.b16 %v486_v55  ;;  %v3069_v55 = vld [vmem:[%s4237_s8] sm:$0xff] }
 0x7cf   :  { %742 = vmatpush.bf16.msra.mxu0 %v3058_v51 }
 0x7d0   :  { %v499_v58 = vsel %vm375_vm2, %v498_v57, %v497_v56  ;;  %v3134_v57 = vld [vmem:[%s4240_s11] ss:$0 sm:$0xff] }
 0x7d1   :  { %v500_v60 = vpack.c.b16 %v499_v58, %v499_v58 }
 0x7d3   :  { %2725 = vmatmul.msk.bf16.vlgmr.msrb.gmra.mxu3 %vm115_vm12, %v500_v60  ;;  %1036 = vmatpush.bf16.msrb.mxu0 %v3070_v54 }
 0x7d4   :  { %978 = vmatpush.bf16.msrb.mxu3 %v3066_v24 }
 0x7d7   :  { %1037 = vmatpush.bf16.msrb.mxu0 %v3069_v55 }
 0x7d8   :  { %979 = vmatpush.bf16.msrb.mxu3 %v3065_v25 }
 0x856   :  { %v537_v63 = vpop.f32.mrf.mxu3 }
 0x857   :  { %v560_v1 = vadd.f32 %v559_v61, %v537_v63 }
 0x859   :  { %v592_v2 = vadd.f32 %v3537_v49, %v560_v1 }
 0x85b   :  { %v593_v3 = vadd.f32 %v592_v2, %v3503_v15 }
 0x85d   :  { %3169 = vtanh.f32 %v593_v3  ;;  %v594_v6 = vmul.f32 0.5, %v593_v3 }
 0x85e   :  { %v539_v4 = vpop.f32.mrf.mxu3 }
 0x85f   :  { %3171 = vtanh.f32 %v594_v6 }
 0x863   :  { %v3170_v5 = vpop.eup %3169 }
 0x864   :  { %601 = vrot.lane.b32.xlu2 %v3170_v5, %s3356_s30 }
 0x865   :  { %v3172_v7 = vpop.eup %3171 }
 0x866   :  { %v596_v8 = vmul.f32 0.5, %v3172_v7 }
 0x868   :  { %v597_v10 = vadd.f32 0.5, %v596_v8 }
 0x86a   :  { %v599_v14 = vmul.f32 %v597_v10, %v3508_v29 }
 0x8be   :  { %v602_v11 = vpop.permute.xlu2 %601 }
 0x8bf   :  { %v604_v13 = vmul.f32 %v602_v11, %v597_v10 }
 0x8c1   :  { %606 = vrot.lane.b32.xlu2 %v604_v13, %s4257_s5 }
 0x91b   :  { %v607_v16 = vpop.permute.xlu2 %606 }
 0x91c   :  { %v3645_v49 = vadd.f32 %v607_v16, %v599_v14 }
 0x91e   :  { %3173 = vtanh.f32 %v3645_v49 }
 0x924   :  { %v3174_v17 = vpop.eup %3173 }
 0x925   :  { %612 = vrot.lane.b32.xlu2 %v3174_v17, %s3356_s30 }
 0x97f   :  { %v613_v21 = vpop.permute.xlu2 %612 }
 0x980   :  { %v615_v29 = vmul.f32 %v613_v21, %v597_v10 }
 0x982   :  { %v616_v23 = vpack.c.bf16 %v615_v29, %v615_v29 }
 0x984   :  { %651 = vrot.lane.b32.xlu0 %v616_v23, %s4257_s5 }
 0x9f6   :  { %v652_v27 = vpop.permute.xlu0 %651 }
 0x9f7   :  { %2757 = vmatmul.msk.bf16.vlgmr.msra.gmra.mxu3 %vm171_vm1, %v652_v27 }
 0xa07   :  { %2798 = vmatmul.msk.bf16.vlgmr.msrb.gmra.mxu3 %vm171_vm1, %v652_v27 }
 0xa7a   :  { %v677_v32 = vpop.f32.mrf.mxu3 }
 0xa7b   :  { %v678_v33 = vadd.f32 %v677_v32, %v3584_v22 }
 0xa7d   :  { %v685_v34 = vadd.f32 %v3133_v30, %v678_v33 }
 0xa7f   :  { %3175 = vtanh.f32 %v685_v34  ;;  %v686_v40 = vmul.f32 0.5, %v685_v34 }
 0xa81   :  { %3177 = vtanh.f32 %v686_v40 }
 0xa82   :  { %v679_v35 = vpop.f32.mrf.mxu3 }
 0xa85   :  { %v3176_v36 = vpop.eup %3175 }
 0xa86   :  { %693 = vrot.lane.b32.xlu1 %v3176_v36, %s3356_s30 }
 0xa87   :  { %v3178_v41 = vpop.eup %3177 }
 0xa88   :  { %v688_v42 = vmul.f32 0.5, %v3178_v41 }
 0xa8a   :  { %v3669_v37 = vpop.f32.mrf.mxu3  ;;  %v689_v43 = vadd.f32 0.5, %v688_v42 }
 0xa8c   :  { %v691_v22 = vmul.f32 %v689_v43, %v3540_v59 }
 0xa92   :  { %v983_v38 = vpop.f32.mrf.mxu3 }
 0xaf8   :  { %v694_v44 = vpop.permute.xlu1 %693 }
 0xaf9   :  { %v696_v45 = vmul.f32 %v694_v44, %v689_v43 }
 0xafb   :  { %698 = vrot.lane.b32.xlu2 %v696_v45, %s4257_s5 }
 0xb55   :  { %v699_v46 = vpop.permute.xlu2 %698 }
 0xb56   :  { %v3673_v47 = vadd.f32 %v699_v46, %v691_v22 }
 0xb58   :  { %3179 = vtanh.f32 %v3673_v47 }
 0xb5e   :  { %v3180_v48 = vpop.eup %3179 }
 0xb5f   :  { %704 = vrot.lane.b32.xlu0 %v3180_v48, %s3356_s30 }
 0xbd1   :  { %v705_v52 = vpop.permute.xlu0 %704 }
 0xbd2   :  { %v3683_v59 = vmul.f32 %v705_v52, %v689_v43 }
 0xbd4   :  { %v708_v53 = vpack.c.bf16 %v3683_v59, %v3683_v59 }
 0xbd6   :  { %718 = vrot.lane.b32.xlu1 %v708_v53, %s4257_s5  ;;  %s4271_s5 = smov 32  }
 0xc48   :  { %v719_v56 = vpop.permute.xlu1 %718 }
 0xc49   :  { %2766 = vmatmul.msk.bf16.vlgmr.msra.gmra.mxu0 %vm171_vm1, %v719_v56 }
 0xc59   :  { %2807 = vmatmul.msk.bf16.vlgmr.msrb.gmra.mxu0 %vm171_vm1, %v719_v56 }
 0xcc6   :  { %v744_v58 = vpop.f32.mrf.mxu0 }
 0xcc7   :  { %v745_v60 = vadd.f32 %v3134_v57, %v744_v58 }
 0xcc9   :  { %v749_v61 = vrot.slane %v745_v60, 1  ;;  %v750_v62 = vperm.slane %v745_v60, 0 }
 0xccb   :  { %v751_v63 = vperm.slane %v749_v61, 0  ;;  %v754_v1 = vadd.f32 %v750_v62, %v3569_v9 }
 0xccd   :  { %v755_v2 = vadd.f32 %v751_v63, %v3574_v12  ;;  %3181 = vtanh.f32 %v754_v1 }
 0xcce   :  { %v746_v3 = vpop.f32.mrf.mxu0 }
 0xccf   :  { %3183 = vtanh.f32 %v755_v2 }
 0xcd3   :  { %v3182_v4 = vpop.eup %3181 }
 0xcd4   :  { %v758_v5 = vmul.f32 %v3182_v4, %v3581_v18 }
 0xcd5   :  { %v3184_v6 = vpop.eup %3183 }
 0xcd6   :  { %v3702_v7 = vpop.f32.mrf.mxu0  ;;  %v760_v8 = vsel %vm171_vm1, %v758_v5, 0.0  ;;  %v759_v10 = vmul.f32 %v3184_v6, %v3581_v18 }
 0xcd7   :  { %761 = vadd.xlane.f32.xlu2 %v760_v8 }
 0xcd8   :  { %v763_v11 = vsel %vm171_vm1, %v759_v10, 0.0 }
 0xcd9   :  { %764 = vadd.xlane.f32.xlu0 %v763_v11  ;;  %v3060_v11 = vld [vmem:[%s4266_s22] sm:$0xff] }
 0xcda   :  { %950 = vmatpush.bf16.msrb.mxu2 %v3060_v11 }
 0xcde   :  { %v1041_v13 = vpop.f32.mrf.mxu0 }
 0xcdf   :  { %v3064_v13 = vld [vmem:[%s4265_s3 + $0x18] sm:$0xff] }
 0xce0   :  { %925 = vmatpush.bf16.msrb.mxu1 %v3064_v13  ;;  %v3079_v13 = vld [vmem:[%s4235_s6 + $0x8] sm:$0xff] }
 0xd4a   :  { %v762_v14 = vpop.xlane.xlu2 %761 }
 0xd4b   :  { %v766_v16 = vadd.f32 %v762_v14, %v3589_v28  ;;  %v2767_v14 = vld [vmem:[%s4267_s2 + $0x2] sm:$0x1] }
 0xd4c   :  { %v765_v17 = vpop.xlane.xlu0 %764  ;;  %2789 = vmatmul.msk.bf16.vlgmr.msrb.gmra.mxu2 %vm138_vm0, %v2767_v14  ;;  %v3078_v14 = vld [vmem:[%s4235_s6] sm:$0xff] }
 0xd4d   :  { %v767_v19 = vadd.f32 %v765_v17, %v3589_v28  ;;  %v770_v20 = vperm.slane %v766_v16, %v3591_v31  ;;  %v3062_v17 = vld [vmem:[%s4265_s3 + $0x8] sm:$0xff] }
 0xd4f   :  { %v771_v21 = vperm.slane %v767_v19, %v3591_v31 }
 0xd51   :  { %v772_v29 = vsel %vm375_vm2, %v771_v21, %v770_v20 }
 0xd52   :  { %v774_v23 = vsel %vm378_vm3, %v772_v29, -inf }
 0xd53   :  { %775 = vmax.xlane.f32.xlu1 %v774_v23 }
 0xdc6   :  { %v776_v24 = vpop.xlane.xlu1 %775 }
 0xdc7   :  { %v778_v25 = vperm.slane %v776_v24, 0  ;;  %v779_v27 = vperm.slane %v776_v24, 1 }
 0xdc9   :  { %v782_v30 = vsub.f32 %v766_v16, %v778_v25  ;;  %v783_v32 = vsub.f32 %v767_v19, %v779_v27  ;;  %v3063_v16 = vld [vmem:[%s4265_s3 + $0x10] sm:$0xff]  ;;  %v3061_v19 = vld [vmem:[%s4265_s3] sm:$0xff] }
 0xdca   :  { %926 = vmatpush.bf16.msrb.mxu1 %v3063_v16 }
 0xdcb   :  { %v784_v33 = vmul.f32 1.442695, %v782_v30  ;;  %v786_v34 = vmul.f32 1.442695, %v783_v32 }
 0xdcd   :  { %3185 = vpow2.f32 %v784_v33 }
 0xdce   :  { %3187 = vpow2.f32 %v786_v34  ;;  %927 = vmatpush.bf16.msrb.mxu1 %v3062_v17  ;;  %v3135_v17 = vld [vmem:[%s4238_s9] ss:$0 sm:$0xff] }
 0xdd2   :  { %928 = vmatpush.bf16.msrb.mxu1 %v3061_v19 }
 0xdd3   :  { %v3186_v35 = vpop.eup %3185 }
 0xdd4   :  { %v3188_v36 = vpop.eup %3187  ;;  %791 = vperm.xlu2 %3127, %v3186_v35  }
 0xdd5   :  { %794 = vperm.xlu0 %3128, %v3188_v36  }
 0xe2e   :  { %v792_v38 = vpop.permute.xlu2 %791 }
 0xe2f   :  { %v796_v41 = vperm.slane %v792_v38, %v3591_v31 }
 0xe47   :  { %v795_v40 = vpop.permute.xlu0 %794 }
 0xe48   :  { %v797_v42 = vperm.slane %v795_v40, %v3591_v31 }
 0xe4a   :  { %v798_v43 = vsel %vm375_vm2, %v797_v42, %v796_v41 }
 0xe4b   :  { %v800_v44 = vsel %vm378_vm3, %v798_v43, 0.0 }
 0xe4c   :  { %801 = vadd.xlane.f32.xlu1 %v800_v44 }
 0xebf   :  { %v802_v45 = vpop.xlane.xlu1 %801 }
 0xec0   :  { %v804_v22 = vperm.slane %v802_v45, 0  ;;  %v805_v46 = vperm.slane %v802_v45, 1 }
 0xec2   :  { %3189 = vrcp.f32 %v804_v22  ;;  %v819_v55 = vand.u32 2147483648, %v804_v22  ;;  %v834_v56 = vand.u32 2147483648, %v805_v46  ;;  %v817_v58 = vand.u32 2147483647, %v804_v22 }
 0xec3   :  { %3191 = vrcp.f32 %v805_v46  ;;  %v832_v61 = vand.u32 2147483647, %v805_v46  ;;  %vm813_vm4 = vweird.f32 %v804_v22  ;;  %vm828_vm5 = vweird.f32 %v805_v46 }
 0xec4   :  { %v820_v1 = vor.u32 1.1754944e-38, %v819_v55  ;;  %v835_v2 = vor.u32 1.1754944e-38, %v834_v56  ;;  %vm818_vm8 = vcmp.eq.f32.partialorder %v817_v58, 8.507059e+37 }
 0xec5   :  { %vm833_vm9 = vcmp.eq.f32.partialorder %v832_v61, 8.507059e+37 }
 0xec8   :  { %v3190_v48 = vpop.eup %3189 }
 0xec9   :  { %v3192_v50 = vpop.eup %3191  ;;  %v809_v51 = vmul.f32 %v3190_v48, %v804_v22  ;;  %vm814_vm14 = vweird.f32 %v3190_v48 }
 0xeca   :  { %v824_v52 = vmul.f32 %v3192_v50, %v805_v46  ;;  %vm829_vm15 = vweird.f32 %v3192_v50  ;;  %vm815_vm6 = vmor %vm813_vm4, %vm814_vm14 }
 0xecb   :  { %v810_v53 = vsub.f32 1.0, %v809_v51  ;;  %vm830_vm7 = vmor %vm828_vm5, %vm829_vm15 }
 0xecc   :  { %v825_v54 = vsub.f32 1.0, %v824_v52  ;;  %v952_v52 = vpop.f32.mrf.mxu2 }
 0xecd   :  { %v811_v57 = vmul.f32 %v3190_v48, %v810_v53 }
 0xece   :  { %v826_v60 = vmul.f32 %v3192_v50, %v825_v54 }
 0xecf   :  { %v812_v62 = vadd.f32 %v3190_v48, %v811_v57 }
 0xed0   :  { %v827_v63 = vadd.f32 %v3192_v50, %v826_v60 }
 0xed1   :  { %v816_v3 = vsel %vm815_vm6, %v3190_v48, %v812_v62 }
 0xed2   :  { %v831_v4 = vsel %vm830_vm7, %v3192_v50, %v827_v63  ;;  %v821_v5 = vsel %vm818_vm8, %v820_v1, %v816_v3 }
 0xed3   :  { %v836_v6 = vsel %vm833_vm9, %v835_v2, %v831_v4  ;;  %v822_v8 = vmul.f32 %v3186_v35, %v821_v5 }
 0xed4   :  { %v837_v10 = vmul.f32 %v3188_v36, %v836_v6  ;;  %v954_v53 = vpop.f32.mrf.mxu2  ;;  %v3068_v6 = vld [vmem:[%s4236_s7 + $0x8] sm:$0xff] }
 0xed5   :  { %840 = vperm.xlu1 %3126, %v822_v8   ;;  %1067 = vmatpush.bf16.msra.mxu1 %v3068_v6  ;;  %v3067_v8 = vld [vmem:[%s4236_s7] sm:$0xff] }
 0xed6   :  { %845 = vperm.xlu0 %3128, %v837_v10  }
 0xed9   :  { %1068 = vmatpush.bf16.msra.mxu1 %v3067_v8 }
 0xf47   :  { %v841_v20 = vpop.permute.xlu1 %840 }
 0xf48   :  { %v846_v21 = vpop.permute.xlu0 %845  ;;  %v848_v29 = vmul.f32 %v841_v20, %v3612_v26 }
 0xf49   :  { %v849_v23 = vmul.f32 %v846_v21, %v3632_v39 }
 0xf4a   :  { %v850_v24 = vsel %vm115_vm12, %v848_v29, 0.0 }
 0xf4b   :  { %v857_v25 = vsel %vm115_vm12, %v849_v23, 0.0  ;;  %v851_v27 = vrot.slane %v850_v24, 4 }
 0xf4c   :  { %v858_v30 = vrot.slane %v857_v25, 4 }
 0xf4d   :  { %v852_v32 = vadd.f32 %v851_v27, %v850_v24 }
 0xf4e   :  { %v859_v33 = vadd.f32 %v858_v30, %v857_v25 }
 0xf4f   :  { %v853_v34 = vrot.slane %v852_v32, 2 }
 0xf50   :  { %v860_v35 = vrot.slane %v859_v33, 2 }
 0xf51   :  { %v854_v36 = vadd.f32 %v853_v34, %v852_v32 }
 0xf52   :  { %v861_v38 = vadd.f32 %v860_v35, %v859_v33 }
 0xf53   :  { %v855_v40 = vrot.slane %v854_v36, 1 }
 0xf54   :  { %v862_v41 = vrot.slane %v861_v38, 1 }
 0xf55   :  { %v856_v42 = vadd.f32 %v855_v40, %v854_v36 }
 0xf56   :  { %v863_v43 = vadd.f32 %v862_v41, %v861_v38  ;;  %v3072_v41 = vld [vmem:[%s4239_s10 + $0x8] sm:$0xff] }
 0xf57   :  { %v878_v44 = vpack.c.bf16 %v856_v42, %v856_v42  ;;  %1134 = vmatpush.bf16.msra.mxu2 %v3072_v41 }
 0xf58   :  { %v879_v45 = vpack.c.bf16 %v863_v43, %v863_v43  ;;  %v871_v22 = vsel %vm375_vm2, %v863_v43, %v856_v42  ;;  %v3071_v42 = vld [vmem:[%s4239_s10] sm:$0xff] }
 0xf59   :  { %873 = vst.msk [vmem:[#allocation3 + $0x2] sm:$0x3] %vm479_vm13, %v871_v22  ;;  %v890_v46 = vunpack.c.l.b16 %v878_v44  ;;  %v3082_v22 = vld [vmem:[%s4237_s8] sm:$0xff] }
 0xf5a   :  { %v891_v48 = vunpack.c.l.b16 %v879_v45  ;;  %v3083_v45 = vld [vmem:[%s4237_s8 + $0x8] sm:$0xff] }
 0xf5b   :  { %1135 = vmatpush.bf16.msra.mxu2 %v3071_v42 }
 0xf5c   :  { %v892_v50 = vsel %vm375_vm2, %v891_v48, %v890_v46  ;;  %v3136_v48 = vld [vmem:[%s4240_s11] ss:$0 sm:$0xff] }
 0xf5d   :  { %v893_v51 = vpack.c.b16 %v892_v50, %v892_v50 }
 0xf5f   :  { %2784 = vmatmul.msk.bf16.vlgmr.msrb.gmra.mxu1 %vm115_vm12, %v893_v51  ;;  %1429 = vmatpush.bf16.msrb.mxu2 %v3083_v45 }
 0xf60   :  { %1371 = vmatpush.bf16.msrb.mxu1 %v3079_v13 }
 0xf63   :  { %1430 = vmatpush.bf16.msrb.mxu2 %v3082_v22 }
 0xf64   :  { %1372 = vmatpush.bf16.msrb.mxu1 %v3078_v14 }
 0xfdc   :  { %v930_v54 = vpop.f32.mrf.mxu1 }
 0xfdd   :  { %v953_v55 = vadd.f32 %v952_v52, %v930_v54 }
 0xfdf   :  { %v985_v56 = vadd.f32 %v3669_v37, %v953_v55 }
 0xfe1   :  { %v986_v57 = vadd.f32 %v985_v56, %v3503_v15 }
 0xfe3   :  { %3193 = vtanh.f32 %v986_v57  ;;  %v987_v61 = vmul.f32 0.5, %v986_v57 }
 0xfe4   :  { %v932_v58 = vpop.f32.mrf.mxu1 }
 0xfe5   :  { %3195 = vtanh.f32 %v987_v61 }
 0xfe9   :  { %v3194_v60 = vpop.eup %3193 }
 0xfea   :  { %994 = vrot.lane.b32.xlu2 %v3194_v60, %s3356_s30 }
 0xfeb   :  { %v3196_v62 = vpop.eup %3195 }
 0xfec   :  { %v989_v63 = vmul.f32 0.5, %v3196_v62 }
 0xfee   :  { %v990_v1 = vadd.f32 0.5, %v989_v63 }
 0xff0   :  { %v992_v4 = vmul.f32 %v990_v1, %v3645_v49 }
0x1044   :  { %v995_v2 = vpop.permute.xlu2 %994 }
0x1045   :  { %v997_v3 = vmul.f32 %v995_v2, %v990_v1 }
0x1047   :  { %999 = vrot.lane.b32.xlu0 %v997_v3, %s4271_s5 }
0x10b9   :  { %v1000_v5 = vpop.permute.xlu0 %999 }
0x10ba   :  { %v3749_v37 = vadd.f32 %v1000_v5, %v992_v4 }
0x10bc   :  { %3197 = vtanh.f32 %v3749_v37 }
0x10c2   :  { %v3198_v15 = vpop.eup %3197 }
0x10c3   :  { %1005 = vrot.lane.b32.xlu2 %v3198_v15, %s3356_s30 }
0x111d   :  { %v1006_v10 = vpop.permute.xlu2 %1005 }
0x111e   :  { %v1008_v49 = vmul.f32 %v1006_v10, %v990_v1 }
0x1120   :  { %v1009_v11 = vpack.c.bf16 %v1008_v49, %v1008_v49 }
0x1122   :  { %1044 = vrot.lane.b32.xlu1 %v1009_v11, %s4271_s5 }
0x1194   :  { %v1045_v16 = vpop.permute.xlu1 %1044 }
0x1195   :  { %2816 = vmatmul.msk.bf16.vlgmr.msra.gmra.mxu1 %vm171_vm1, %v1045_v16 }
0x11a5   :  { %2857 = vmatmul.msk.bf16.vlgmr.msrb.gmra.mxu1 %vm171_vm1, %v1045_v16 }
0x1212   :  { %v1070_v19 = vpop.f32.mrf.mxu1 }
0x1213   :  { %v1071_v20 = vadd.f32 %v1070_v19, %v3702_v7 }
0x1215   :  { %v1078_v21 = vadd.f32 %v3135_v17, %v1071_v20 }
0x1217   :  { %3199 = vtanh.f32 %v1078_v21  ;;  %v1079_v27 = vmul.f32 0.5, %v1078_v21 }
0x1219   :  { %3201 = vtanh.f32 %v1079_v27 }
0x121a   :  { %v1072_v29 = vpop.f32.mrf.mxu1 }
0x121d   :  { %v3200_v23 = vpop.eup %3199 }
0x121e   :  { %1086 = vrot.lane.b32.xlu0 %v3200_v23, %s3356_s30 }
0x121f   :  { %v3202_v30 = vpop.eup %3201 }
0x1220   :  { %v1081_v32 = vmul.f32 0.5, %v3202_v30 }
0x1222   :  { %v3773_v24 = vpop.f32.mrf.mxu1  ;;  %v1082_v33 = vadd.f32 0.5, %v1081_v32 }
0x1224   :  { %v1084_v7 = vmul.f32 %v1082_v33, %v3673_v47 }
0x122a   :  { %v1376_v25 = vpop.f32.mrf.mxu1 }
0x1290   :  { %v1087_v34 = vpop.permute.xlu0 %1086 }
0x1291   :  { %v1089_v35 = vmul.f32 %v1087_v34, %v1082_v33 }
0x1293   :  { %1091 = vrot.lane.b32.xlu2 %v1089_v35, %s4271_s5 }
0x12ed   :  { %v1092_v36 = vpop.permute.xlu2 %1091 }
0x12ee   :  { %v3777_v38 = vadd.f32 %v1092_v36, %v1084_v7 }
0x12f0   :  { %3203 = vtanh.f32 %v3777_v38 }
0x12f6   :  { %v3204_v40 = vpop.eup %3203 }
0x12f7   :  { %1097 = vrot.lane.b32.xlu1 %v3204_v40, %s3356_s30 }
0x1369   :  { %v1098_v43 = vpop.permute.xlu1 %1097 }
0x136a   :  { %v3787_v47 = vmul.f32 %v1098_v43, %v1082_v33 }
0x136c   :  { %v1101_v44 = vpack.c.bf16 %v3787_v47, %v3787_v47 }
0x136e   :  { %1111 = vrot.lane.b32.xlu0 %v1101_v44, %s4271_s5 }
0x13e0   :  { %v1112_v46 = vpop.permute.xlu0 %1111 }
0x13e1   :  { %2825 = vmatmul.msk.bf16.vlgmr.msra.gmra.mxu2 %vm171_vm1, %v1112_v46 }
0x13f1   :  { %2866 = vmatmul.msk.bf16.vlgmr.msrb.gmra.mxu2 %vm171_vm1, %v1112_v46 }
0x1464   :  { %v1137_v50 = vpop.f32.mrf.mxu2 }
0x1465   :  { %v1138_v51 = vadd.f32 %v3136_v48, %v1137_v50 }
0x1467   :  { %v1142_v52 = vrot.slane %v1138_v51, 1  ;;  %v1143_v53 = vperm.slane %v1138_v51, 0 }
0x1469   :  { %v1144_v54 = vperm.slane %v1142_v52, 0  ;;  %v1147_v55 = vadd.f32 %v1143_v53, %v3569_v9 }
0x146b   :  { %v1148_v56 = vadd.f32 %v1144_v54, %v3574_v12  ;;  %3205 = vtanh.f32 %v1147_v55 }
0x146c   :  { %v1139_v57 = vpop.f32.mrf.mxu2 }
0x146d   :  { %3207 = vtanh.f32 %v1148_v56 }
0x1471   :  { %v3206_v58 = vpop.eup %3205 }
0x1472   :  { %v1151_v60 = vmul.f32 %v3206_v58, %v3581_v18 }
0x1473   :  { %v3208_v61 = vpop.eup %3207 }
0x1474   :  { %v3806_v62 = vpop.f32.mrf.mxu2  ;;  %v1153_v63 = vsel %vm171_vm1, %v1151_v60, 0.0  ;;  %v1152_v1 = vmul.f32 %v3208_v61, %v3581_v18  ;;  %v3077_v61 = vld [vmem:[%s4265_s3 + $0x18] sm:$0xff] }
0x1475   :  { %1154 = vadd.xlane.f32.xlu2 %v1153_v63  ;;  %1318 = vmatpush.bf16.msra.mxu3 %v3077_v61  ;;  %v3076_v63 = vld [vmem:[%s4265_s3 + $0x10] sm:$0xff] }
0x1476   :  { %v1156_v2 = vsel %vm171_vm1, %v1152_v1, 0.0 }
0x1477   :  { %1157 = vadd.xlane.f32.xlu1 %v1156_v2 }
0x1479   :  { %1319 = vmatpush.bf16.msra.mxu3 %v3076_v63  ;;  %v3137_v63 = vld [vmem:[%s4238_s9] ss:$0 sm:$0xff] }
0x147c   :  { %v1434_v9 = vpop.f32.mrf.mxu2 }
0x147d   :  { %v3075_v9 = vld [vmem:[%s4265_s3 + $0x8] sm:$0xff] }
0x147e   :  { %1320 = vmatpush.bf16.msra.mxu3 %v3075_v9 }
0x14e8   :  { %v1155_v3 = vpop.xlane.xlu2 %1154 }
0x14e9   :  { %v1159_v12 = vadd.f32 %v1155_v3, %v3589_v28  ;;  %v3073_v3 = vld [vmem:[%s4266_s22] sm:$0xff] }
0x14ea   :  { %v1158_v4 = vpop.xlane.xlu1 %1157  ;;  %1343 = vmatpush.bf16.msra.mxu0 %v3073_v3 }
0x14eb   :  { %v1160_v5 = vadd.f32 %v1158_v4, %v3589_v28  ;;  %v1163_v15 = vperm.slane %v1159_v12, %v3591_v31 }
0x14ed   :  { %v1164_v6 = vperm.slane %v1160_v5, %v3591_v31 }
0x14ef   :  { %v1165_v8 = vsel %vm375_vm2, %v1164_v6, %v1163_v15 }
0x14f0   :  { %v1167_v10 = vsel %vm378_vm3, %v1165_v8, -inf }
0x14f1   :  { %1168 = vmax.xlane.f32.xlu0 %v1167_v10 }
0x1564   :  { %v1169_v18 = vpop.xlane.xlu0 %1168 }
0x1565   :  { %v1171_v49 = vperm.slane %v1169_v18, 0  ;;  %v1172_v11 = vperm.slane %v1169_v18, 1 }
0x1567   :  { %v1175_v13 = vsub.f32 %v1159_v12, %v1171_v49  ;;  %v1176_v14 = vsub.f32 %v1160_v5, %v1172_v11  ;;  %v3074_v12 = vld [vmem:[%s4265_s3] sm:$0xff] }
0x1568   :  { %1321 = vmatpush.bf16.msra.mxu3 %v3074_v12 }
0x1569   :  { %v1177_v16 = vmul.f32 1.442695, %v1175_v13  ;;  %v1179_v17 = vmul.f32 1.442695, %v1176_v14 }
0x156b   :  { %3209 = vpow2.f32 %v1177_v16 }
0x156c   :  { %3211 = vpow2.f32 %v1179_v17 }
0x1571   :  { %v3210_v19 = vpop.eup %3209 }
0x1572   :  { %v3212_v20 = vpop.eup %3211  ;;  %1184 = vperm.xlu2 %3127, %v3210_v19  }
0x1573   :  { %1187 = vperm.xlu1 %3126, %v3212_v20  }
0x15cc   :  { %v1185_v21 = vpop.permute.xlu2 %1184 }
0x15cd   :  { %v1189_v23 = vperm.slane %v1185_v21, %v3591_v31 }
0x15e5   :  { %v1188_v29 = vpop.permute.xlu1 %1187 }
0x15e6   :  { %v1190_v25 = vperm.slane %v1188_v29, %v3591_v31 }
0x15e8   :  { %v1191_v27 = vsel %vm375_vm2, %v1190_v25, %v1189_v23 }
0x15e9   :  { %v1193_v30 = vsel %vm378_vm3, %v1191_v27, 0.0 }
0x15ea   :  { %1194 = vadd.xlane.f32.xlu0 %v1193_v30 }
0x165d   :  { %v1195_v32 = vpop.xlane.xlu0 %1194 }
0x165e   :  { %v1197_v33 = vperm.slane %v1195_v32, 0  ;;  %v1198_v34 = vperm.slane %v1195_v32, 1 }
0x1660   :  { %3213 = vrcp.f32 %v1197_v33  ;;  %v1212_v43 = vand.u32 2147483648, %v1197_v33  ;;  %v1227_v44 = vand.u32 2147483648, %v1198_v34  ;;  %v1210_v22 = vand.u32 2147483647, %v1197_v33 }
0x1661   :  { %3215 = vrcp.f32 %v1198_v34  ;;  %v1225_v48 = vand.u32 2147483647, %v1198_v34  ;;  %vm1206_vm14 = vweird.f32 %v1197_v33  ;;  %vm1221_vm15 = vweird.f32 %v1198_v34 }
0x1662   :  { %v1213_v52 = vor.u32 1.1754944e-38, %v1212_v43  ;;  %v1228_v53 = vor.u32 1.1754944e-38, %v1227_v44  ;;  %vm1211_vm6 = vcmp.eq.f32.partialorder %v1210_v22, 8.507059e+37 }
0x1663   :  { %vm1226_vm7 = vcmp.eq.f32.partialorder %v1225_v48, 8.507059e+37 }
0x1666   :  { %v3214_v35 = vpop.eup %3213 }
0x1667   :  { %v3216_v7 = vpop.eup %3215  ;;  %v1202_v36 = vmul.f32 %v3214_v35, %v1197_v33  ;;  %vm1207_vm10 = vweird.f32 %v3214_v35 }
0x1668   :  { %v1217_v40 = vmul.f32 %v3216_v7, %v1198_v34  ;;  %vm1222_vm11 = vweird.f32 %v3216_v7  ;;  %vm1208_vm4 = vmor %vm1206_vm14, %vm1207_vm10 }
0x1669   :  { %v1203_v41 = vsub.f32 1.0, %v1202_v36  ;;  %vm1223_vm5 = vmor %vm1221_vm15, %vm1222_vm11 }
0x166a   :  { %v1218_v42 = vsub.f32 1.0, %v1217_v40  ;;  %v3852_v40 = vld [vmem:[%s4268_s4] sm:$0x3] }
0x166b   :  { %v1204_v45 = vmul.f32 %v3214_v35, %v1203_v41 }
0x166c   :  { %v1219_v46 = vmul.f32 %v3216_v7, %v1218_v42 }
0x166d   :  { %v1205_v50 = vadd.f32 %v3214_v35, %v1204_v45 }
0x166e   :  { %v1220_v51 = vadd.f32 %v3216_v7, %v1219_v46 }
0x166f   :  { %v1209_v54 = vsel %vm1208_vm4, %v3214_v35, %v1205_v50 }
0x1670   :  { %v1224_v55 = vsel %vm1223_vm5, %v3216_v7, %v1220_v51  ;;  %v1214_v56 = vsel %vm1211_vm6, %v1213_v52, %v1209_v54  ;;  %v3081_v54 = vld [vmem:[%s4236_s7 + $0x8] sm:$0xff] }
0x1671   :  { %v1229_v57 = vsel %vm1226_vm7, %v1228_v53, %v1224_v55  ;;  %v1215_v58 = vmul.f32 %v3210_v19, %v1214_v56  ;;  %1460 = vmatpush.bf16.msrb.mxu3 %v3081_v54  ;;  %v3080_v55 = vld [vmem:[%s4236_s7] sm:$0xff] }
0x1672   :  { %v1230_v60 = vmul.f32 %v3212_v20, %v1229_v57 }
0x1673   :  { %1233 = vperm.xlu0 %3128, %v1215_v58   ;;  %v3092_v58 = vld [vmem:[%s4235_s6 + $0x8] sm:$0xff] }
0x1674   :  { %1238 = vperm.xlu2 %3127, %v1230_v60   ;;  %v3091_v60 = vld [vmem:[%s4235_s6] sm:$0xff] }
0x1675   :  { %1461 = vmatpush.bf16.msrb.mxu3 %v3080_v55 }
0x16ce   :  { %v1239_v1 = vpop.permute.xlu2 %1238 }
0x16cf   :  { %v1242_v2 = vmul.f32 %v1239_v1, %v3632_v39  ;;  %v2826_v39 = vld [vmem:[%s4267_s2 + $0x3] sm:$0x1] }
0x16d0   :  { %2848 = vmatmul.msk.bf16.vlgmr.msra.gmra.mxu0 %vm138_vm0, %v2826_v39 }
0x16d1   :  { %v1250_v4 = vsel %vm115_vm12, %v1242_v2, 0.0 }
0x16d2   :  { %v1251_v5 = vrot.slane %v1250_v4, 4 }
0x16d4   :  { %v1252_v15 = vadd.f32 %v1251_v5, %v1250_v4 }
0x16d6   :  { %v1253_v6 = vrot.slane %v1252_v15, 2 }
0x16d8   :  { %v1254_v18 = vadd.f32 %v1253_v6, %v1252_v15 }
0x16da   :  { %v1255_v13 = vrot.slane %v1254_v18, 1 }
0x16dc   :  { %v1256_v17 = vadd.f32 %v1255_v13, %v1254_v18 }
0x16de   :  { %v1272_v21 = vpack.c.bf16 %v1256_v17, %v1256_v17 }
0x16e0   :  { %v1284_v27 = vunpack.c.l.b16 %v1272_v21  ;;  %v3095_v21 = vld [vmem:[%s4237_s8] sm:$0xff] }
0x16e5   :  { %v1234_v8 = vpop.permute.xlu0 %1233 }
0x16e6   :  { %v1241_v10 = vmul.f32 %v1234_v8, %v3612_v26 }
0x16e8   :  { %v1243_v49 = vsel %vm115_vm12, %v1241_v10, 0.0 }
0x16e9   :  { %v1244_v11 = vrot.slane %v1243_v49, 4 }
0x16eb   :  { %v1245_v14 = vadd.f32 %v1244_v11, %v1243_v49 }
0x16ed   :  { %v1246_v16 = vrot.slane %v1245_v14, 2 }
0x16ef   :  { %v1247_v19 = vadd.f32 %v1246_v16, %v1245_v14  ;;  %v3085_v14 = vld [vmem:[%s4239_s10 + $0x8] sm:$0xff]  ;;  %v3084_v16 = vld [vmem:[%s4239_s10] sm:$0xff] }
0x16f0   :  { %1527 = vmatpush.bf16.msrb.mxu0 %v3085_v14 }
0x16f1   :  { %v1248_v20 = vrot.slane %v1247_v19, 1 }
0x16f3   :  { %v1249_v29 = vadd.f32 %v1248_v20, %v1247_v19  ;;  %v3096_v20 = vld [vmem:[%s4237_s8 + $0x8] sm:$0xff] }
0x16f4   :  { %1528 = vmatpush.bf16.msrb.mxu0 %v3084_v16 }
0x16f5   :  { %v1264_v23 = vsel %vm375_vm2, %v1256_v17, %v1249_v29  ;;  %v1271_v25 = vpack.c.bf16 %v1249_v29, %v1249_v29 }
0x16f6   :  { %1266 = vst.msk [vmem:[#allocation3 + $0x4] sm:$0x3] %vm479_vm13, %v1264_v23  ;;  %v3138_v23 = vld [vmem:[%s4240_s11] ss:$0 sm:$0xff] }
0x16f7   :  { %v1283_v30 = vunpack.c.l.b16 %v1271_v25 }
0x16f8   :  { %1822 = vmatpush.bf16.msra.mxu0 %v3096_v20 }
0x16f9   :  { %v1285_v26 = vsel %vm375_vm2, %v1284_v27, %v1283_v30 }
0x16fa   :  { %v1286_v32 = vpack.c.b16 %v1285_v26, %v1285_v26 }
0x16fc   :  { %2843 = vmatmul.msk.bf16.vlgmr.msra.gmra.mxu3 %vm115_vm12, %v1286_v32  ;;  %1823 = vmatpush.bf16.msra.mxu0 %v3095_v21 }
0x16fd   :  { %1764 = vmatpush.bf16.msra.mxu3 %v3092_v58 }
0x1701   :  { %1765 = vmatpush.bf16.msra.mxu3 %v3091_v60 }
0x174d   :  { %v1345_v33 = vpop.f32.mrf.mxu0 }
0x1755   :  { %v1347_v34 = vpop.f32.mrf.mxu0 }
0x177f   :  { %v1323_v35 = vpop.f32.mrf.mxu3 }
0x1780   :  { %v1346_v7 = vadd.f32 %v1345_v33, %v1323_v35  ;;  %v3915_v33 = vld [vmem:[%s4269_s27] sm:$0xff]  ;;  %v3921_v35 = vld [vmem:[%s4269_s27 + $0x8] sm:$0xff]  ;;  %s3360_s27 = smov 2  }
0x1782   :  { %v1378_v36 = vadd.f32 %v3773_v24, %v1346_v7 }
0x1784   :  { %v1379_v41 = vadd.f32 %v3852_v40, %v1378_v36 }
0x1786   :  { %3217 = vtanh.f32 %v1379_v41  ;;  %v1380_v44 = vmul.f32 0.5, %v1379_v41 }
0x1787   :  { %v1325_v42 = vpop.f32.mrf.mxu3 }
0x1788   :  { %3219 = vtanh.f32 %v1380_v44  ;;  %v3927_v42 = vld [vmem:[%s4241_s12] ss:$0 sm:$0xff]  ;;  %s2621_s12 = sshll.u32 %s4249_s20, 4  ;;  %s2622_s12 = int_to_ptr.hbm [resolvable:$true] %s2621_s12 }
0x178c   :  { %v3218_v43 = vpop.eup %3217 }
0x178d   :  { %1387 = vrot.lane.b32.xlu1 %v3218_v43, %s3356_s30 }
0x178e   :  { %v3220_v45 = vpop.eup %3219 }
0x178f   :  { %v1382_v22 = vmul.f32 0.5, %v3220_v45 }
0x1791   :  { %v1383_v46 = vadd.f32 0.5, %v1382_v22 }
0x1793   :  { %v1385_v24 = vmul.f32 %v1383_v46, %v3749_v37 }
0x17ff   :  { %v1388_v48 = vpop.permute.xlu1 %1387 }
0x1800   :  { %v1390_v50 = vmul.f32 %v1388_v48, %v1383_v46 }
0x1802   :  { %1392 = vrot.lane.b32.xlu2 %v1390_v50, %s4271_s5 }
0x185c   :  { %v1393_v51 = vpop.permute.xlu2 %1392 }
0x185d   :  { %v3858_v52 = vadd.f32 %v1393_v51, %v1385_v24 }
0x185f   :  { %3221 = vtanh.f32 %v3858_v52 }
0x1865   :  { %v3222_v53 = vpop.eup %3221 }
0x1866   :  { %1398 = vrot.lane.b32.xlu0 %v3222_v53, %s3356_s30 }
0x18d8   :  { %v1399_v56 = vpop.permute.xlu0 %1398 }
0x18d9   :  { %v1401_v37 = vmul.f32 %v1399_v56, %v1383_v46 }
0x18db   :  { %v1402_v57 = vpack.c.bf16 %v1401_v37, %v1401_v37 }
0x18dd   :  { %1437 = vrot.lane.b32.xlu1 %v1402_v57, %s4271_s5 }
0x194f   :  { %v1438_v61 = vpop.permute.xlu1 %1437 }
0x1950   :  { %2875 = vmatmul.msk.bf16.vlgmr.msrb.gmra.mxu3 %vm171_vm1, %v1438_v61 }
0x1960   :  { %2916 = vmatmul.msk.bf16.vlgmr.msra.gmra.mxu3 %vm171_vm1, %v1438_v61 }
0x19d3   :  { %v1463_v1 = vpop.f32.mrf.mxu3 }
0x19d4   :  { %v1464_v2 = vadd.f32 %v1463_v1, %v3806_v62 }
0x19d6   :  { %v1471_v9 = vadd.f32 %v3137_v63, %v1464_v2 }
0x19d8   :  { %3223 = vtanh.f32 %v1471_v9  ;;  %v1472_v5 = vmul.f32 0.5, %v1471_v9 }
0x19da   :  { %3225 = vtanh.f32 %v1472_v5 }
0x19db   :  { %v1465_v3 = vpop.f32.mrf.mxu3 }
0x19de   :  { %v3224_v12 = vpop.eup %3223 }
0x19df   :  { %1479 = vrot.lane.b32.xlu2 %v3224_v12, %s3356_s30 }
0x19e0   :  { %v3226_v15 = vpop.eup %3225 }
0x19e1   :  { %v1474_v6 = vmul.f32 0.5, %v3226_v15 }
0x19e3   :  { %v3882_v4 = vpop.f32.mrf.mxu3  ;;  %v1475_v8 = vadd.f32 0.5, %v1474_v6 }
0x19e5   :  { %v1477_v62 = vmul.f32 %v1475_v8, %v3777_v38 }
0x19eb   :  { %v1769_v39 = vpop.f32.mrf.mxu3 }
0x1a39   :  { %v1480_v10 = vpop.permute.xlu2 %1479 }
0x1a3a   :  { %v1482_v18 = vmul.f32 %v1480_v10, %v1475_v8 }
0x1a3c   :  { %1484 = vrot.lane.b32.xlu0 %v1482_v18, %s4271_s5 }
0x1aae   :  { %v1485_v49 = vpop.permute.xlu0 %1484 }
0x1aaf   :  { %v3886_v11 = vadd.f32 %v1485_v49, %v1477_v62 }
0x1ab1   :  { %3227 = vtanh.f32 %v3886_v11 }
0x1ab7   :  { %v3228_v13 = vpop.eup %3227 }
0x1ab8   :  { %1490 = vrot.lane.b32.xlu1 %v3228_v13, %s3356_s30 }
0x1b2a   :  { %v1491_v17 = vpop.permute.xlu1 %1490 }
0x1b2b   :  { %v3896_v38 = vmul.f32 %v1491_v17, %v1475_v8 }
0x1b2d   :  { %v1494_v19 = vpack.c.bf16 %v3896_v38, %v3896_v38 }
0x1b2f   :  { %1504 = vrot.lane.b32.xlu2 %v1494_v19, %s4271_s5 }
0x1b89   :  { %v1505_v29 = vpop.permute.xlu2 %1504 }
0x1b8a   :  { %2884 = vmatmul.msk.bf16.vlgmr.msrb.gmra.mxu0 %vm171_vm1, %v1505_v29 }
0x1b9a   :  { %2925 = vmatmul.msk.bf16.vlgmr.msra.gmra.mxu0 %vm171_vm1, %v1505_v29 }
0x1c07   :  { %v1530_v25 = vpop.f32.mrf.mxu0 }
0x1c08   :  { %v1531_v27 = vadd.f32 %v3138_v23, %v1530_v25 }
0x1c0a   :  { %v1535_v30 = vrot.slane %v1531_v27, 1  ;;  %v1536_v26 = vperm.slane %v1531_v27, 0 }
0x1c0c   :  { %v1537_v32 = vperm.slane %v1535_v30, 0  ;;  %v1540_v34 = vadd.f32 %v3915_v33, %v1536_v26 }
0x1c0e   :  { %v1541_v7 = vadd.f32 %v3921_v35, %v1537_v32  ;;  %3229 = vtanh.f32 %v1540_v34 }
0x1c0f   :  { %v1532_v36 = vpop.f32.mrf.mxu0 }
0x1c10   :  { %3231 = vtanh.f32 %v1541_v7 }
0x1c14   :  { %v3230_v41 = vpop.eup %3229 }
0x1c15   :  { %v1544_v43 = vmul.f32 %v3927_v42, %v3230_v41 }
0x1c16   :  { %v3232_v44 = vpop.eup %3231 }
0x1c17   :  { %v3930_v45 = vpop.f32.mrf.mxu0  ;;  %v1546_v22 = vsel %vm171_vm1, %v1544_v43, 0.0  ;;  %v1545_v46 = vmul.f32 %v3927_v42, %v3232_v44 }
0x1c18   :  { %1547 = vadd.xlane.f32.xlu0 %v1546_v22 }
0x1c19   :  { %v1549_v48 = vsel %vm171_vm1, %v1545_v46, 0.0 }
0x1c1a   :  { %1550 = vadd.xlane.f32.xlu1 %v1549_v48  ;;  %v3086_v48 = vld [vmem:[%s4266_s22] sm:$0xff] }
0x1c1b   :  { %1736 = vmatpush.bf16.msra.mxu2 %v3086_v48  ;;  %v3094_v48 = vld [vmem:[%s4236_s7 + $0x8] sm:$0xff] }
0x1c1f   :  { %v1827_v50 = vpop.f32.mrf.mxu0 }
0x1c20   :  { %v3090_v50 = vld [vmem:[%s4265_s3 + $0x18] sm:$0xff] }
0x1c21   :  { %1711 = vmatpush.bf16.msra.mxu1 %v3090_v50  ;;  %v3093_v50 = vld [vmem:[%s4236_s7] sm:$0xff] }
0x1c8b   :  { %v1548_v24 = vpop.xlane.xlu0 %1547 }
0x1c8c   :  { %v1552_v51 = vadd.f32 %v1548_v24, %v3589_v28  ;;  %v2885_v24 = vld [vmem:[%s4267_s2 + $0x4] sm:$0x1] }
0x1c8d   :  { %v1551_v53 = vpop.xlane.xlu1 %1550  ;;  %2907 = vmatmul.msk.bf16.vlgmr.msra.gmra.mxu2 %vm138_vm0, %v2885_v24 }
0x1c8e   :  { %v1553_v54 = vadd.f32 %v1551_v53, %v3589_v28  ;;  %v1556_v55 = vperm.slane %v1552_v51, %v3591_v31 }
0x1c90   :  { %v1557_v56 = vperm.slane %v1553_v54, %v3591_v31 }
0x1c92   :  { %v1558_v37 = vsel %vm375_vm2, %v1557_v56, %v1556_v55  ;;  %v3964_v55 = vld [vmem:[%s4270_s29] sm:$0xff] }
0x1c93   :  { %v1560_v57 = vsel %vm378_vm3, %v1558_v37, -inf  ;;  %v3087_v37 = vld [vmem:[%s4265_s3] sm:$0xff] }
0x1c94   :  { %1561 = vmax.xlane.f32.xlu2 %v1560_v57 }
0x1d07   :  { %v1562_v58 = vpop.xlane.xlu2 %1561 }
0x1d08   :  { %v1564_v60 = vperm.slane %v1562_v58, 0  ;;  %v1565_v61 = vperm.slane %v1562_v58, 1 }
0x1d0a   :  { %v1568_v63 = vsub.f32 %v1552_v51, %v1564_v60  ;;  %v1569_v1 = vsub.f32 %v1553_v54, %v1565_v61  ;;  %v3089_v51 = vld [vmem:[%s4265_s3 + $0x10] sm:$0xff]  ;;  %v3088_v54 = vld [vmem:[%s4265_s3 + $0x8] sm:$0xff] }
0x1d0b   :  { %1712 = vmatpush.bf16.msra.mxu1 %v3089_v51 }
0x1d0c   :  { %v1570_v2 = vmul.f32 1.442695, %v1568_v63  ;;  %v1572_v9 = vmul.f32 1.442695, %v1569_v1  ;;  %v3974_v1 = vld [vmem:[%s4270_s29 + $0x8] sm:$0xff]  ;;  %s2634_s29 = sshll.u32 %s4250_s21, 4  ;;  %s2635_s29 = int_to_ptr.hbm [resolvable:$true] %s2634_s29 }
0x1d0e   :  { %3233 = vpow2.f32 %v1570_v2 }
0x1d0f   :  { %3235 = vpow2.f32 %v1572_v9  ;;  %1713 = vmatpush.bf16.msra.mxu1 %v3088_v54  ;;  %v3104_v54 = vld [vmem:[%s4235_s6] sm:$0xff] }
0x1d13   :  { %1714 = vmatpush.bf16.msra.mxu1 %v3087_v37  ;;  %v3139_v37 = vld [vmem:[%s4238_s9] ss:$0 sm:$0xff] }
0x1d14   :  { %v3234_v3 = vpop.eup %3233 }
0x1d15   :  { %v3236_v12 = vpop.eup %3235  ;;  %1577 = vperm.xlu0 %3128, %v3234_v3  }
0x1d16   :  { %1580 = vperm.xlu1 %3126, %v3236_v12  }
0x1d17   :  { %1853 = vmatpush.bf16.msrb.mxu1 %v3094_v48 }
0x1d1b   :  { %1854 = vmatpush.bf16.msrb.mxu1 %v3093_v50 }
0x1d87   :  { %v1578_v39 = vpop.permute.xlu0 %1577 }
0x1d88   :  { %v1581_v5 = vpop.permute.xlu1 %1580  ;;  %v1582_v15 = vperm.slane %v1578_v39, %v3591_v31 }
0x1d89   :  { %v1583_v6 = vperm.slane %v1581_v5, %v3591_v31 }
0x1d8b   :  { %v1584_v8 = vsel %vm375_vm2, %v1583_v6, %v1582_v15 }
0x1d8c   :  { %v1586_v10 = vsel %vm378_vm3, %v1584_v8, 0.0 }
0x1d8d   :  { %1587 = vadd.xlane.f32.xlu2 %v1586_v10 }
0x1e00   :  { %v1588_v18 = vpop.xlane.xlu2 %1587 }
0x1e01   :  { %v1590_v62 = vperm.slane %v1588_v18, 0  ;;  %v1591_v49 = vperm.slane %v1588_v18, 1 }
0x1e03   :  { %3237 = vrcp.f32 %v1590_v62  ;;  %v1605_v21 = vand.u32 2147483648, %v1590_v62  ;;  %v1620_v29 = vand.u32 2147483648, %v1591_v49  ;;  %v1603_v25 = vand.u32 2147483647, %v1590_v62 }
0x1e04   :  { %3239 = vrcp.f32 %v1591_v49  ;;  %v1618_v30 = vand.u32 2147483647, %v1591_v49  ;;  %vm1599_vm10 = vweird.f32 %v1590_v62  ;;  %vm1614_vm11 = vweird.f32 %v1591_v49 }
0x1e05   :  { %v1606_v34 = vor.u32 1.1754944e-38, %v1605_v21  ;;  %v1621_v7 = vor.u32 1.1754944e-38, %v1620_v29  ;;  %vm1604_vm4 = vcmp.eq.f32.partialorder %v1603_v25, 8.507059e+37 }
0x1e06   :  { %vm1619_vm5 = vcmp.eq.f32.partialorder %v1618_v30, 8.507059e+37 }
0x1e09   :  { %v3238_v13 = vpop.eup %3237 }
0x1e0a   :  { %v3240_v14 = vpop.eup %3239  ;;  %v1595_v16 = vmul.f32 %v3238_v13, %v1590_v62  ;;  %vm1600_vm8 = vweird.f32 %v3238_v13 }
0x1e0b   :  { %v1610_v17 = vmul.f32 %v3240_v14, %v1591_v49  ;;  %vm1615_vm9 = vweird.f32 %v3240_v14  ;;  %vm1601_vm14 = vmor %vm1599_vm10, %vm1600_vm8 }
0x1e0c   :  { %v1596_v19 = vsub.f32 1.0, %v1595_v16  ;;  %vm1616_vm15 = vmor %vm1614_vm11, %vm1615_vm9 }
0x1e0d   :  { %v1611_v20 = vsub.f32 1.0, %v1610_v17 }
0x1e0e   :  { %v1597_v23 = vmul.f32 %v3238_v13, %v1596_v19 }
0x1e0f   :  { %v1612_v27 = vmul.f32 %v3240_v14, %v1611_v20  ;;  %v1738_v20 = vpop.f32.mrf.mxu2 }
0x1e10   :  { %v1598_v26 = vadd.f32 %v3238_v13, %v1597_v23 }
0x1e11   :  { %v1613_v32 = vadd.f32 %v3240_v14, %v1612_v27 }
0x1e12   :  { %v1602_v36 = vsel %vm1601_vm14, %v3238_v13, %v1598_v26 }
0x1e13   :  { %v1617_v41 = vsel %vm1616_vm15, %v3240_v14, %v1613_v32  ;;  %v1607_v43 = vsel %vm1604_vm4, %v1606_v34, %v1602_v36  ;;  %vm473_vm4 = vcmask 254976  }
0x1e14   :  { %v1622_v44 = vsel %vm1619_vm5, %v1621_v7, %v1617_v41  ;;  %v1608_v22 = vmul.f32 %v3234_v3, %v1607_v43 }
0x1e15   :  { %v1623_v46 = vmul.f32 %v3236_v12, %v1622_v44 }
0x1e16   :  { %1626 = vperm.xlu2 %3127, %v1608_v22  }
0x1e17   :  { %1631 = vperm.xlu0 %3128, %v1623_v46   ;;  %v1740_v21 = vpop.f32.mrf.mxu2 }
0x1e70   :  { %v1627_v53 = vpop.permute.xlu2 %1626 }
0x1e71   :  { %v1634_v56 = vmul.f32 %v3964_v55, %v1627_v53  ;;  %v3105_v53 = vld [vmem:[%s4235_s6 + $0x8] sm:$0xff] }
0x1e73   :  { %v1636_v57 = vsel %vm115_vm12, %v1634_v56, 0.0 }
0x1e74   :  { %v1637_v58 = vrot.slane %v1636_v57, 4 }
0x1e76   :  { %v1638_v60 = vadd.f32 %v1637_v58, %v1636_v57 }
0x1e78   :  { %v1639_v61 = vrot.slane %v1638_v60, 2 }
0x1e7a   :  { %v1640_v9 = vadd.f32 %v1639_v61, %v1638_v60 }
0x1e7c   :  { %v1641_v39 = vrot.slane %v1640_v9, 1 }
0x1e7e   :  { %v1642_v6 = vadd.f32 %v1641_v39, %v1640_v9 }
0x1e80   :  { %v1664_v18 = vpack.c.bf16 %v1642_v6, %v1642_v6 }
0x1e82   :  { %v1676_v14 = vunpack.c.l.b16 %v1664_v18 }
0x1e89   :  { %v1632_v63 = vpop.permute.xlu0 %1631 }
0x1e8a   :  { %v1635_v2 = vmul.f32 %v3974_v1, %v1632_v63 }
0x1e8c   :  { %v1643_v3 = vsel %vm115_vm12, %v1635_v2, 0.0 }
0x1e8d   :  { %v1644_v12 = vrot.slane %v1643_v3, 4 }
0x1e8f   :  { %v1645_v5 = vadd.f32 %v1644_v12, %v1643_v3 }
0x1e91   :  { %v1646_v15 = vrot.slane %v1645_v5, 2 }
0x1e93   :  { %v1647_v8 = vadd.f32 %v1646_v15, %v1645_v5 }
0x1e95   :  { %v1648_v10 = vrot.slane %v1647_v8, 1 }
0x1e97   :  { %v1649_v62 = vadd.f32 %v1648_v10, %v1647_v8 }
0x1e99   :  { %v1657_v49 = vsel %vm375_vm2, %v1649_v62, %v1642_v6  ;;  %v1665_v13 = vpack.c.bf16 %v1649_v62, %v1649_v62  ;;  %v3098_v62 = vld [vmem:[%s4239_s10 + $0x8] sm:$0xff] }
0x1e9a   :  { %1659 = vst.msk [vmem:[#allocation3 + $0x6] sm:$0x3] %vm479_vm13, %v1657_v49  ;;  %1920 = vmatpush.bf16.msrb.mxu2 %v3098_v62  ;;  %v3097_v49 = vld [vmem:[%s4239_s10] sm:$0xff] }
0x1e9b   :  { %v1677_v16 = vunpack.c.l.b16 %v1665_v13 }
0x1e9d   :  { %v1678_v17 = vsel %vm375_vm2, %v1677_v16, %v1676_v14  ;;  %v3109_v16 = vld [vmem:[%s4237_s8 + $0x8] sm:$0xff] }
0x1e9e   :  { %v1679_v19 = vpack.c.b16 %v1678_v17, %v1678_v17  ;;  %1921 = vmatpush.bf16.msrb.mxu2 %v3097_v49  ;;  %v3108_v17 = vld [vmem:[%s4237_s8] sm:$0xff] }
0x1ea0   :  { %2902 = vmatmul.msk.bf16.vlgmr.msra.gmra.mxu1 %vm115_vm12, %v1679_v19 }
0x1ea1   :  { %2157 = vmatpush.bf16.msra.mxu1 %v3105_v53 }
0x1ea2   :  { %2215 = vmatpush.bf16.msra.mxu2 %v3109_v16 }
0x1ea5   :  { %2158 = vmatpush.bf16.msra.mxu1 %v3104_v54 }
0x1ea6   :  { %2216 = vmatpush.bf16.msra.mxu2 %v3108_v17 }
0x1f1d   :  { %v1716_v29 = vpop.f32.mrf.mxu1 }
0x1f1e   :  { %v1739_v23 = vadd.f32 %v1738_v20, %v1716_v29  ;;  %v3140_v20 = vld [vmem:[%s4240_s11] ss:$0 sm:$0xff] }
0x1f20   :  { %v1771_v25 = vadd.f32 %v3882_v4, %v1739_v23 }
0x1f22   :  { %v1772_v27 = vadd.f32 %v3852_v40, %v1771_v25 }
0x1f24   :  { %3241 = vtanh.f32 %v1772_v27  ;;  %v1773_v32 = vmul.f32 0.5, %v1772_v27 }
0x1f25   :  { %v1718_v30 = vpop.f32.mrf.mxu1 }
0x1f26   :  { %3243 = vtanh.f32 %v1773_v32 }
0x1f2a   :  { %v3242_v26 = vpop.eup %3241 }
0x1f2b   :  { %1780 = vrot.lane.b32.xlu0 %v3242_v26, %s3356_s30 }
0x1f2c   :  { %v3244_v34 = vpop.eup %3243 }
0x1f2d   :  { %v1775_v7 = vmul.f32 0.5, %v3244_v34 }
0x1f2f   :  { %v1776_v36 = vadd.f32 0.5, %v1775_v7 }
0x1f31   :  { %v1778_v44 = vmul.f32 %v1776_v36, %v3858_v52 }
0x1f9d   :  { %v1781_v41 = vpop.permute.xlu0 %1780 }
0x1f9e   :  { %v1783_v43 = vmul.f32 %v1781_v41, %v1776_v36 }
0x1fa0   :  { %1785 = vrot.lane.b32.xlu1 %v1783_v43, %s4271_s5 }
0x2012   :  { %v1786_v22 = vpop.permute.xlu1 %1785 }
0x2013   :  { %v3987_v4 = vadd.f32 %v1786_v22, %v1778_v44 }
0x2015   :  { %3245 = vtanh.f32 %v3987_v4 }
0x201b   :  { %v3246_v46 = vpop.eup %3245 }
0x201c   :  { %1791 = vrot.lane.b32.xlu0 %v3246_v46, %s3356_s30 }
0x208e   :  { %v1792_v24 = vpop.permute.xlu0 %1791 }
0x208f   :  { %v1794_v52 = vmul.f32 %v1792_v24, %v1776_v36 }
0x2091   :  { %v1795_v51 = vpack.c.bf16 %v1794_v52, %v1794_v52 }
0x2093   :  { %1830 = vrot.lane.b32.xlu1 %v1795_v51, %s4271_s5 }
0x2105   :  { %v1831_v56 = vpop.permute.xlu1 %1830 }
0x2106   :  { %2934 = vmatmul.msk.bf16.vlgmr.msrb.gmra.mxu1 %vm171_vm1, %v1831_v56 }
0x2116   :  { %2975 = vmatmul.msk.bf16.vlgmr.msra.gmra.mxu1 %vm171_vm1, %v1831_v56 }
0x2183   :  { %v1856_v57 = vpop.f32.mrf.mxu1 }
0x2184   :  { %v1857_v58 = vadd.f32 %v1856_v57, %v3930_v45 }
0x2186   :  { %v1864_v60 = vadd.f32 %v3139_v37, %v1857_v58 }
0x2188   :  { %3247 = vtanh.f32 %v1864_v60  ;;  %v1865_v3 = vmul.f32 0.5, %v1864_v60 }
0x218a   :  { %3249 = vtanh.f32 %v1865_v3 }
0x218b   :  { %v1858_v61 = vpop.f32.mrf.mxu1 }
0x218e   :  { %v3248_v63 = vpop.eup %3247 }
0x218f   :  { %1872 = vrot.lane.b32.xlu2 %v3248_v63, %s3356_s30 }
0x2190   :  { %v3250_v12 = vpop.eup %3249 }
0x2191   :  { %v1867_v39 = vmul.f32 0.5, %v3250_v12 }
0x2193   :  { %v4011_v2 = vpop.f32.mrf.mxu1  ;;  %v1868_v5 = vadd.f32 0.5, %v1867_v39 }
0x2195   :  { %v1870_v45 = vmul.f32 %v1868_v5, %v3886_v11 }
0x219b   :  { %v2162_v9 = vpop.f32.mrf.mxu1 }
0x21e9   :  { %v1873_v15 = vpop.permute.xlu2 %1872 }
0x21ea   :  { %v1875_v6 = vmul.f32 %v1873_v15, %v1868_v5 }
0x21ec   :  { %1877 = vrot.lane.b32.xlu0 %v1875_v6, %s4271_s5 }
0x225e   :  { %v1878_v8 = vpop.permute.xlu0 %1877 }
0x225f   :  { %v4015_v10 = vadd.f32 %v1878_v8, %v1870_v45 }
0x2261   :  { %3251 = vtanh.f32 %v4015_v10 }
0x2267   :  { %v3252_v18 = vpop.eup %3251 }
0x2268   :  { %1883 = vrot.lane.b32.xlu1 %v3252_v18, %s3356_s30 }
0x22da   :  { %v1884_v13 = vpop.permute.xlu1 %1883 }
0x22db   :  { %v4025_v11 = vmul.f32 %v1884_v13, %v1868_v5 }
0x22dd   :  { %v1887_v14 = vpack.c.bf16 %v4025_v11, %v4025_v11 }
0x22df   :  { %1897 = vrot.lane.b32.xlu2 %v1887_v14, %s4271_s5 }
0x2339   :  { %v1898_v19 = vpop.permute.xlu2 %1897 }
0x233a   :  { %2943 = vmatmul.msk.bf16.vlgmr.msrb.gmra.mxu2 %vm171_vm1, %v1898_v19 }
0x234a   :  { %2984 = vmatmul.msk.bf16.vlgmr.msra.gmra.mxu2 %vm171_vm1, %v1898_v19 }
0x23bd   :  { %v1923_v21 = vpop.f32.mrf.mxu2 }
0x23be   :  { %v1924_v29 = vadd.f32 %v3140_v20, %v1923_v21 }
0x23c0   :  { %v1928_v23 = vrot.slane %v1924_v29, 1  ;;  %v1929_v25 = vperm.slane %v1924_v29, 0 }
0x23c2   :  { %v1930_v27 = vperm.slane %v1928_v23, 0  ;;  %v1933_v30 = vadd.f32 %v3915_v33, %v1929_v25 }
0x23c4   :  { %v1934_v26 = vadd.f32 %v3921_v35, %v1930_v27  ;;  %3253 = vtanh.f32 %v1933_v30 }
0x23c5   :  { %v1925_v32 = vpop.f32.mrf.mxu2 }
0x23c6   :  { %3255 = vtanh.f32 %v1934_v26 }
0x23ca   :  { %v3254_v34 = vpop.eup %3253 }
0x23cb   :  { %v1937_v7 = vmul.f32 %v3927_v42, %v3254_v34 }
0x23cc   :  { %v3256_v36 = vpop.eup %3255 }
0x23cd   :  { %v4044_v41 = vpop.f32.mrf.mxu2  ;;  %v1939_v43 = vsel %vm171_vm1, %v1937_v7, 0.0  ;;  %v1938_v44 = vmul.f32 %v3927_v42, %v3256_v36 }
0x23ce   :  { %1940 = vadd.xlane.f32.xlu0 %v1939_v43 }
0x23cf   :  { %v1942_v22 = vsel %vm171_vm1, %v1938_v44, 0.0 }
0x23d0   :  { %1943 = vadd.xlane.f32.xlu1 %v1942_v22 }
0x23d5   :  { %v2220_v46 = vpop.f32.mrf.mxu2 }
0x2441   :  { %v1941_v48 = vpop.xlane.xlu0 %1940 }
0x2442   :  { %v1945_v50 = vadd.f32 %v1941_v48, %v3589_v28 }
0x2443   :  { %v1944_v24 = vpop.xlane.xlu1 %1943 }
0x2444   :  { %v1946_v52 = vadd.f32 %v1944_v24, %v3589_v28  ;;  %v1949_v51 = vperm.slane %v1945_v50, %v3591_v31  ;;  %v3102_v24 = vld [vmem:[%s4265_s3 + $0x10] sm:$0xff] }
0x2446   :  { %v1950_v53 = vperm.slane %v1946_v52, %v3591_v31 }
0x2448   :  { %v1951_v54 = vsel %vm375_vm2, %v1950_v53, %v1949_v51  ;;  %v3099_v51 = vld [vmem:[%s4266_s22] sm:$0xff] }
0x2449   :  { %v1953_v56 = vsel %vm378_vm3, %v1951_v54, -inf  ;;  %2129 = vmatpush.bf16.msrb.mxu0 %v3099_v51  ;;  %v3100_v53 = vld [vmem:[%s4265_s3] sm:$0xff] }
0x244a   :  { %1954 = vmax.xlane.f32.xlu2 %v1953_v56  ;;  %v2944_v54 = vld [vmem:[%s4267_s2 + $0x5] sm:$0x1] }
0x244c   :  { %2966 = vmatmul.msk.bf16.vlgmr.msrb.gmra.mxu0 %vm138_vm0, %v2944_v54  ;;  %v3141_v54 = vld [vmem:[%s4238_s9] ss:$0 sm:$0xff] }
0x24bd   :  { %v1955_v37 = vpop.xlane.xlu2 %1954 }
0x24be   :  { %v1957_v57 = vperm.slane %v1955_v37, 0  ;;  %v1958_v58 = vperm.slane %v1955_v37, 1 }
0x24c0   :  { %v1961_v60 = vsub.f32 %v1945_v50, %v1957_v57  ;;  %v1962_v61 = vsub.f32 %v1946_v52, %v1958_v58  ;;  %v3103_v50 = vld [vmem:[%s4265_s3 + $0x18] sm:$0xff]  ;;  %v3101_v52 = vld [vmem:[%s4265_s3 + $0x8] sm:$0xff] }
0x24c1   :  { %2104 = vmatpush.bf16.msrb.mxu3 %v3103_v50  ;;  %v3107_v50 = vld [vmem:[%s4236_s7 + $0x8] sm:$0xff] }
0x24c2   :  { %v1963_v63 = vmul.f32 1.442695, %v1961_v60  ;;  %v1965_v9 = vmul.f32 1.442695, %v1962_v61 }
0x24c4   :  { %3257 = vpow2.f32 %v1963_v63 }
0x24c5   :  { %3259 = vpow2.f32 %v1965_v9  ;;  %2105 = vmatpush.bf16.msrb.mxu3 %v3102_v24  ;;  %v3106_v24 = vld [vmem:[%s4236_s7] sm:$0xff] }
0x24c9   :  { %2106 = vmatpush.bf16.msrb.mxu3 %v3101_v52 }
0x24ca   :  { %v3258_v3 = vpop.eup %3257 }
0x24cb   :  { %v3260_v12 = vpop.eup %3259  ;;  %1970 = vperm.xlu2 %3127, %v3258_v3  }
0x24cc   :  { %1973 = vperm.xlu0 %3128, %v3260_v12  }
0x24cd   :  { %2107 = vmatpush.bf16.msrb.mxu3 %v3100_v53 }
0x24d1   :  { %2246 = vmatpush.bf16.msra.mxu3 %v3107_v50 }
0x24d5   :  { %2247 = vmatpush.bf16.msra.mxu3 %v3106_v24 }
0x2525   :  { %v1971_v39 = vpop.permute.xlu2 %1970 }
0x2526   :  { %v1975_v15 = vperm.slane %v1971_v39, %v3591_v31 }
0x253e   :  { %v1974_v5 = vpop.permute.xlu0 %1973 }
0x253f   :  { %v1976_v6 = vperm.slane %v1974_v5, %v3591_v31 }
0x2541   :  { %v1977_v45 = vsel %vm375_vm2, %v1976_v6, %v1975_v15 }
0x2542   :  { %v1979_v8 = vsel %vm378_vm3, %v1977_v45, 0.0 }
0x2543   :  { %1980 = vadd.xlane.f32.xlu1 %v1979_v8 }
0x25b6   :  { %v1981_v18 = vpop.xlane.xlu1 %1980 }
0x25b7   :  { %v1983_v62 = vperm.slane %v1981_v18, 0  ;;  %v1984_v49 = vperm.slane %v1981_v18, 1 }
0x25b9   :  { %3261 = vrcp.f32 %v1983_v62  ;;  %v1998_v21 = vand.u32 2147483648, %v1983_v62  ;;  %v2013_v29 = vand.u32 2147483648, %v1984_v49  ;;  %v1996_v25 = vand.u32 2147483647, %v1983_v62 }
0x25ba   :  { %3263 = vrcp.f32 %v1984_v49  ;;  %v2011_v30 = vand.u32 2147483647, %v1984_v49  ;;  %vm1992_vm8 = vweird.f32 %v1983_v62  ;;  %vm2007_vm9 = vweird.f32 %v1984_v49 }
0x25bb   :  { %v1999_v34 = vor.u32 1.1754944e-38, %v1998_v21  ;;  %v2014_v7 = vor.u32 1.1754944e-38, %v2013_v29  ;;  %vm1997_vm14 = vcmp.eq.f32.partialorder %v1996_v25, 8.507059e+37  ;;  %v2131_v21 = vpop.f32.mrf.mxu0 }
0x25bc   :  { %vm2012_vm15 = vcmp.eq.f32.partialorder %v2011_v30, 8.507059e+37 }
0x25bf   :  { %v3262_v13 = vpop.eup %3261 }
0x25c0   :  { %v3264_v14 = vpop.eup %3263  ;;  %v1988_v16 = vmul.f32 %v3262_v13, %v1983_v62  ;;  %vm1993_vm6 = vweird.f32 %v3262_v13 }
0x25c1   :  { %v2003_v17 = vmul.f32 %v3264_v14, %v1984_v49  ;;  %vm2008_vm7 = vweird.f32 %v3264_v14  ;;  %vm1994_vm10 = vmor %vm1992_vm8, %vm1993_vm6 }
0x25c2   :  { %v1989_v19 = vsub.f32 1.0, %v1988_v16  ;;  %vm2009_vm11 = vmor %vm2007_vm9, %vm2008_vm7 }
0x25c3   :  { %v2004_v20 = vsub.f32 1.0, %v2003_v17  ;;  %v2133_v29 = vpop.f32.mrf.mxu0 }
0x25c4   :  { %v1990_v23 = vmul.f32 %v3262_v13, %v1989_v19 }
0x25c5   :  { %v2005_v27 = vmul.f32 %v3264_v14, %v2004_v20 }
0x25c6   :  { %v1991_v26 = vadd.f32 %v3262_v13, %v1990_v23 }
0x25c7   :  { %v2006_v32 = vadd.f32 %v3264_v14, %v2005_v27 }
0x25c8   :  { %v1995_v36 = vsel %vm1994_vm10, %v3262_v13, %v1991_v26 }
0x25c9   :  { %v2010_v43 = vsel %vm2009_vm11, %v3264_v14, %v2006_v32  ;;  %v2000_v44 = vsel %vm1997_vm14, %v1999_v34, %v1995_v36 }
0x25ca   :  { %v2015_v22 = vsel %vm2012_vm15, %v2014_v7, %v2010_v43  ;;  %v2001_v46 = vmul.f32 %v3258_v3, %v2000_v44 }
0x25cb   :  { %v2016_v48 = vmul.f32 %v3260_v12, %v2015_v22 }
0x25cc   :  { %2019 = vperm.xlu1 %3126, %v2001_v46  }
0x25cd   :  { %2024 = vperm.xlu0 %3128, %v2016_v48  }
0x263e   :  { %v2020_v56 = vpop.permute.xlu1 %2019 }
0x263f   :  { %v2025_v37 = vpop.permute.xlu0 %2024  ;;  %v2027_v57 = vmul.f32 %v3964_v55, %v2020_v56 }
0x2640   :  { %v2028_v58 = vmul.f32 %v3974_v1, %v2025_v37 }
0x2641   :  { %v2029_v60 = vsel %vm115_vm12, %v2027_v57, 0.0 }
0x2642   :  { %v2036_v61 = vsel %vm115_vm12, %v2028_v58, 0.0  ;;  %v2030_v63 = vrot.slane %v2029_v60, 4 }
0x2643   :  { %v2037_v9 = vrot.slane %v2036_v61, 4 }
0x2644   :  { %v2031_v3 = vadd.f32 %v2030_v63, %v2029_v60 }
0x2645   :  { %v2038_v12 = vadd.f32 %v2037_v9, %v2036_v61 }
0x2646   :  { %v2032_v39 = vrot.slane %v2031_v3, 2 }
0x2647   :  { %v2039_v5 = vrot.slane %v2038_v12, 2 }
0x2648   :  { %v2033_v15 = vadd.f32 %v2032_v39, %v2031_v3 }
0x2649   :  { %v2040_v6 = vadd.f32 %v2039_v5, %v2038_v12 }
0x264a   :  { %v2034_v45 = vrot.slane %v2033_v15, 1 }
0x264b   :  { %v2041_v8 = vrot.slane %v2040_v6, 1 }
0x264c   :  { %v2035_v18 = vadd.f32 %v2034_v45, %v2033_v15  ;;  %v3111_v45 = vld [vmem:[%s4239_s10 + $0x8] sm:$0xff] }
0x264d   :  { %v2042_v62 = vadd.f32 %v2041_v8, %v2040_v6  ;;  %2313 = vmatpush.bf16.msra.mxu0 %v3111_v45  ;;  %v3110_v8 = vld [vmem:[%s4239_s10] sm:$0xff] }
0x264e   :  { %v2057_v49 = vpack.c.bf16 %v2035_v18, %v2035_v18 }
0x264f   :  { %v2058_v13 = vpack.c.bf16 %v2042_v62, %v2042_v62  ;;  %v2050_v14 = vsel %vm375_vm2, %v2042_v62, %v2035_v18 }
0x2650   :  { %2052 = vst.msk [vmem:[#allocation3 + $0x8] sm:$0x3] %vm479_vm13, %v2050_v14  ;;  %v2069_v16 = vunpack.c.l.b16 %v2057_v49 }
0x2651   :  { %v2070_v17 = vunpack.c.l.b16 %v2058_v13  ;;  %2314 = vmatpush.bf16.msra.mxu0 %v3110_v8  ;;  %v3142_v13 = vld [vmem:[%s4240_s11] ss:$0 sm:$0xff]  ;;  %s3361_s11 = smov [#allocation7]  }
0x2652   :  { %s2632_s6 = sshll.u32 %s3361_s11, 4  ;;  %s2633_s6 = int_to_ptr.vmem [resolvable:$true] %s2632_s6 }
0x2653   :  { %v2071_v19 = vsel %vm375_vm2, %v2070_v17, %v2069_v16 }
0x2654   :  { %v2072_v20 = vpack.c.b16 %v2071_v19, %v2071_v19 }
0x2656   :  { %2961 = vmatmul.msk.bf16.vlgmr.msrb.gmra.mxu3 %vm115_vm12, %v2072_v20 }
0x26d9   :  { %v2109_v23 = vpop.f32.mrf.mxu3 }
0x26da   :  { %v2132_v25 = vadd.f32 %v2131_v21, %v2109_v23 }
0x26dc   :  { %v2164_v27 = vadd.f32 %v4011_v2, %v2132_v25 }
0x26de   :  { %v2165_v30 = vadd.f32 %v3852_v40, %v2164_v27 }
0x26e0   :  { %3265 = vtanh.f32 %v2165_v30  ;;  %v2166_v34 = vmul.f32 0.5, %v2165_v30 }
0x26e1   :  { %v2111_v26 = vpop.f32.mrf.mxu3 }
0x26e2   :  { %3267 = vtanh.f32 %v2166_v34 }
0x26e6   :  { %v3266_v32 = vpop.eup %3265 }
0x26e7   :  { %2173 = vrot.lane.b32.xlu2 %v3266_v32, %s3356_s30 }
0x26e8   :  { %v3268_v7 = vpop.eup %3267 }
0x26e9   :  { %v2168_v36 = vmul.f32 0.5, %v3268_v7 }
0x26eb   :  { %v2169_v43 = vadd.f32 0.5, %v2168_v36 }
0x26ed   :  { %v2171_v46 = vmul.f32 %v2169_v43, %v3987_v4 }
0x2741   :  { %v2174_v44 = vpop.permute.xlu2 %2173 }
0x2742   :  { %v2176_v22 = vmul.f32 %v2174_v44, %v2169_v43 }
0x2744   :  { %2178 = vrot.lane.b32.xlu0 %v2176_v22, %s4271_s5 }
0x27b6   :  { %v2179_v48 = vpop.permute.xlu0 %2178 }
0x27b7   :  { %v4091_v2 = vadd.f32 %v2179_v48, %v2171_v46 }
0x27b9   :  { %3269 = vtanh.f32 %v4091_v2 }
0x27bf   :  { %v3270_v40 = vpop.eup %3269 }
0x27c0   :  { %2184 = vrot.lane.b32.xlu2 %v3270_v40, %s3356_s30 }
0x281a   :  { %v2185_v52 = vpop.permute.xlu2 %2184 }
0x281b   :  { %v4101_v4 = vmul.f32 %v2185_v52, %v2169_v43 }
0x281d   :  { %v2188_v51 = vpack.c.bf16 %v4101_v4, %v4101_v4 }
0x281f   :  { %2223 = vrot.lane.b32.xlu1 %v2188_v51, %s4271_s5 }
0x2891   :  { %v2224_v53 = vpop.permute.xlu1 %2223 }
0x2892   :  { %2993 = vmatmul.msk.bf16.vlgmr.msra.gmra.mxu3 %vm171_vm1, %v2224_v53 }
0x2915   :  { %v2249_v56 = vpop.f32.mrf.mxu3 }
0x2916   :  { %v2250_v37 = vadd.f32 %v2249_v56, %v4044_v41 }
0x2918   :  { %v2257_v57 = vadd.f32 %v3141_v54, %v2250_v37 }
0x291a   :  { %3271 = vtanh.f32 %v2257_v57  ;;  %v2258_v61 = vmul.f32 0.5, %v2257_v57 }
0x291c   :  { %3273 = vtanh.f32 %v2258_v61 }
0x291d   :  { %v2251_v58 = vpop.f32.mrf.mxu3 }
0x2920   :  { %v3272_v60 = vpop.eup %3271 }
0x2921   :  { %2265 = vrot.lane.b32.xlu0 %v3272_v60, %s3356_s30 }
0x2922   :  { %v3274_v63 = vpop.eup %3273 }
0x2923   :  { %v2260_v9 = vmul.f32 0.5, %v3274_v63 }
0x2925   :  { %v2261_v3 = vadd.f32 0.5, %v2260_v9 }
0x2927   :  { %v2263_v5 = vmul.f32 %v2261_v3, %v4015_v10 }
0x2993   :  { %v2266_v12 = vpop.permute.xlu0 %2265 }
0x2994   :  { %v2268_v39 = vmul.f32 %v2266_v12, %v2261_v3 }
0x2996   :  { %2270 = vrot.lane.b32.xlu2 %v2268_v39, %s4271_s5 }
0x29f0   :  { %v2271_v15 = vpop.permute.xlu2 %2270 }
0x29f1   :  { %v4114_v6 = vadd.f32 %v2271_v15, %v2263_v5 }
0x29f3   :  { %3275 = vtanh.f32 %v4114_v6 }
0x29f9   :  { %v3276_v41 = vpop.eup %3275 }
0x29fa   :  { %2276 = vrot.lane.b32.xlu1 %v3276_v41, %s3356_s30 }
0x2a6c   :  { %v2277_v18 = vpop.permute.xlu1 %2276 }
0x2a6d   :  { %v4124_v10 = vmul.f32 %v2277_v18, %v2261_v3 }
0x2a6f   :  { %v2280_v62 = vpack.c.bf16 %v4124_v10, %v4124_v10 }
0x2a71   :  { %2290 = vrot.lane.b32.xlu0 %v2280_v62, %s4271_s5 }
0x2ae3   :  { %v2291_v49 = vpop.permute.xlu0 %2290 }
0x2ae4   :  { %3002 = vmatmul.msk.bf16.vlgmr.msra.gmra.mxu0 %vm171_vm1, %v2291_v49 }
0x2b61   :  { %v2316_v14 = vpop.f32.mrf.mxu0 }
0x2b62   :  { %v2317_v16 = vadd.f32 %v3142_v13, %v2316_v14 }
0x2b64   :  { %v2321_v17 = vrot.slane %v2317_v16, 1  ;;  %v2322_v19 = vperm.slane %v2317_v16, 0 }
0x2b66   :  { %v2323_v20 = vperm.slane %v2321_v17, 0  ;;  %v2326_v21 = vadd.f32 %v3915_v33, %v2322_v19 }
0x2b68   :  { %v2327_v29 = vadd.f32 %v3921_v35, %v2323_v20  ;;  %3277 = vtanh.f32 %v2326_v21 }
0x2b69   :  { %v2318_v23 = vpop.f32.mrf.mxu0 }
0x2b6a   :  { %3279 = vtanh.f32 %v2327_v29 }
0x2b6e   :  { %v3278_v25 = vpop.eup %3277 }
0x2b6f   :  { %v2330_v27 = vmul.f32 %v3927_v42, %v3278_v25 }
0x2b70   :  { %v3280_v30 = vpop.eup %3279 }
0x2b71   :  { %v2332_v26 = vsel %vm171_vm1, %v2330_v27, 0.0  ;;  %v2331_v32 = vmul.f32 %v3927_v42, %v3280_v30  ;;  %v3117_v30 = vld [vmem:[%s4244_s15 + $0x18] sm:$0xff] }
0x2b72   :  { %2333 = vadd.xlane.f32.xlu2 %v2332_v26  ;;  %2513 = vmatpush.bf16.msrb.mxu1 %v3117_v30  ;;  %v3116_v26 = vld [vmem:[%s4244_s15 + $0x10] sm:$0xff] }
0x2b73   :  { %v2335_v34 = vsel %vm171_vm1, %v2331_v32, 0.0  ;;  %v3115_v32 = vld [vmem:[%s4244_s15 + $0x8] sm:$0xff] }
0x2b74   :  { %2336 = vadd.xlane.f32.xlu1 %v2335_v34  ;;  %v3114_v34 = vld [vmem:[%s4244_s15] sm:$0xff] }
0x2b76   :  { %2514 = vmatpush.bf16.msrb.mxu1 %v3116_v26 }
0x2b7a   :  { %2515 = vmatpush.bf16.msrb.mxu1 %v3115_v32 }
0x2b7e   :  { %2516 = vmatpush.bf16.msrb.mxu1 %v3114_v34 }
0x2be5   :  { %v2334_v7 = vpop.xlane.xlu2 %2333 }
0x2be6   :  { %v2338_v33 = vadd.f32 %v2334_v7, %v3589_v28 }
0x2be7   :  { %v2337_v36 = vpop.xlane.xlu1 %2336 }
0x2be8   :  { %v2339_v35 = vadd.f32 %v2337_v36, %v3589_v28  ;;  %v2342_v43 = vperm.slane %v2338_v33, %v3591_v31 }
0x2bea   :  { %v2343_v44 = vperm.slane %v2339_v35, %v3591_v31 }
0x2bec   :  { %v2344_v22 = vsel %vm375_vm2, %v2343_v44, %v2342_v43 }
0x2bed   :  { %v2346_v46 = vsel %vm378_vm3, %v2344_v22, -inf }
0x2bee   :  { %2347 = vmax.xlane.f32.xlu0 %v2346_v46 }
0x2c61   :  { %v2348_v42 = vpop.xlane.xlu0 %2347 }
0x2c62   :  { %v2350_v48 = vperm.slane %v2348_v42, 0  ;;  %v2351_v40 = vperm.slane %v2348_v42, 1 }
0x2c64   :  { %v2354_v50 = vsub.f32 %v2338_v33, %v2350_v48  ;;  %v2355_v24 = vsub.f32 %v2339_v35, %v2351_v40 }
0x2c66   :  { %v2356_v52 = vmul.f32 1.442695, %v2354_v50  ;;  %v2358_v51 = vmul.f32 1.442695, %v2355_v24 }
0x2c68   :  { %3281 = vpow2.f32 %v2356_v52 }
0x2c69   :  { %3283 = vpow2.f32 %v2358_v51 }
0x2c6e   :  { %v3282_v53 = vpop.eup %3281 }
0x2c6f   :  { %v3284_v28 = vpop.eup %3283  ;;  %2363 = vperm.xlu2 %3127, %v3282_v53  }
0x2c70   :  { %2366 = vperm.xlu1 %3126, %v3284_v28  }
0x2c78   :  { %470 = vrot.lane.b32.xlu1 %v3550_v0, %s4271_s5 }
0x2c80   :  { %1651 = vrot.lane.b32.xlu1 %v3896_v38, %s4271_s5 }
0x2cc9   :  { %v2364_v54 = vpop.permute.xlu2 %2363 }
0x2cca   :  { %v2368_v37 = vperm.slane %v2364_v54, %v3591_v31 }
0x2ce2   :  { %v2367_v56 = vpop.permute.xlu1 %2366 }
0x2ce3   :  { %v2369_v57 = vperm.slane %v2367_v56, %v3591_v31 }
0x2ce5   :  { %v2370_v58 = vsel %vm375_vm2, %v2369_v57, %v2368_v37 }
0x2ce6   :  { %v2372_v60 = vsel %vm378_vm3, %v2370_v58, 0.0 }
0x2ce7   :  { %2373 = vadd.xlane.f32.xlu0 %v2372_v60 }
0x2cea   :  { %v471_v61 = vpop.permute.xlu1 %470 }
0x2ceb   :  { %474 = vst.msk [vmem:[#allocation2] sm:$0x3] %vm473_vm4, %v471_v61 }
0x2cf2   :  { %v1652_v63 = vpop.permute.xlu1 %1651 }
0x2cf3   :  { %1654 = vst.msk [vmem:[#allocation2 + $0x6] sm:$0x3] %vm473_vm4, %v1652_v63  ;;  %v3118_v63 = vld [vmem:[%s4246_s17] sm:$0xff]  ;;  %s3359_s17 = smov [#allocation5]  }
0x2cf4   :  { %2581 = vmatpush.bf16.msrb.mxu3 %v3118_v63 }
0x2d5a   :  { %v2374_v0 = vpop.xlane.xlu0 %2373 }
0x2d5b   :  { %v2376_v38 = vperm.slane %v2374_v0, 0  ;;  %v2377_v9 = vperm.slane %v2374_v0, 1 }
0x2d5d   :  { %3285 = vrcp.f32 %v2376_v38  ;;  %v2391_v41 = vand.u32 2147483648, %v2376_v38  ;;  %v2406_v45 = vand.u32 2147483648, %v2377_v9  ;;  %v2389_v18 = vand.u32 2147483647, %v2376_v38 }
0x2d5e   :  { %3287 = vrcp.f32 %v2377_v9  ;;  %v2404_v49 = vand.u32 2147483647, %v2377_v9  ;;  %vm2385_vm6 = vweird.f32 %v2376_v38  ;;  %vm2400_vm7 = vweird.f32 %v2377_v9 }
0x2d5f   :  { %v2392_v16 = vor.u32 1.1754944e-38, %v2391_v41  ;;  %v2407_v17 = vor.u32 1.1754944e-38, %v2406_v45  ;;  %vm2390_vm10 = vcmp.eq.f32.partialorder %v2389_v18, 8.507059e+37  ;;  %v3144_v45 = vld [vmem:[%s4247_s18] ss:$0 sm:$0xff]  ;;  %s2619_s18 = sshll.u32 %s3359_s17, 4  ;;  %s2620_s18 = int_to_ptr.vmem [resolvable:$true] %s2619_s18 }
0x2d60   :  { %vm2405_vm11 = vcmp.eq.f32.partialorder %v2404_v49, 8.507059e+37 }
0x2d63   :  { %v3286_v3 = vpop.eup %3285 }
0x2d64   :  { %v3288_v12 = vpop.eup %3287  ;;  %v2381_v31 = vmul.f32 %v3286_v3, %v2376_v38  ;;  %vm2386_vm3 = vweird.f32 %v3286_v3 }
0x2d65   :  { %v2396_v39 = vmul.f32 %v3288_v12, %v2377_v9  ;;  %vm2401_vm5 = vweird.f32 %v3288_v12  ;;  %vm2387_vm8 = vmor %vm2385_vm6, %vm2386_vm3 }
0x2d66   :  { %v2382_v5 = vsub.f32 1.0, %v2381_v31  ;;  %vm2402_vm9 = vmor %vm2400_vm7, %vm2401_vm5 }
0x2d67   :  { %v2397_v15 = vsub.f32 1.0, %v2396_v39 }
0x2d68   :  { %v2383_v8 = vmul.f32 %v3286_v3, %v2382_v5 }
0x2d69   :  { %v2398_v62 = vmul.f32 %v3288_v12, %v2397_v15 }
0x2d6a   :  { %v2384_v13 = vadd.f32 %v3286_v3, %v2383_v8 }
0x2d6b   :  { %v2399_v14 = vadd.f32 %v3288_v12, %v2398_v62 }
0x2d6c   :  { %v2388_v19 = vsel %vm2387_vm8, %v3286_v3, %v2384_v13  ;;  %v3143_v3 = vld [vmem:[%s4245_s16] ss:$0 sm:$0xff]  ;;  %s3358_s16 = smov 96  }
0x2d6d   :  { %v2403_v20 = vsel %vm2402_vm9, %v3288_v12, %v2399_v14  ;;  %v2393_v21 = vsel %vm2390_vm10, %v2392_v16, %v2388_v19 }
0x2d6e   :  { %v2408_v29 = vsel %vm2405_vm11, %v2407_v17, %v2403_v20  ;;  %v2394_v23 = vmul.f32 %v3282_v53, %v2393_v21 }
0x2d6f   :  { %v2409_v25 = vmul.f32 %v3284_v28, %v2408_v29 }
0x2d70   :  { %2412 = vperm.xlu0 %3128, %v2394_v23  }
0x2d71   :  { %2417 = vperm.xlu2 %3127, %v2409_v25  }
0x2d78   :  { %1258 = vrot.lane.b32.xlu0 %v3787_v47, %s4271_s5 }
0x2d79   :  { %865 = vrot.lane.b32.xlu2 %v3683_v59, %s4271_s5  ;;  %v3113_v59 = vld [vmem:[%s4243_s14 + $0x8] sm:$0xff] }
0x2d7a   :  { %2544 = vmatpush.bf16.msrb.mxu2 %v3113_v59 }
0x2d80   :  { %2437 = vrot.lane.b32.xlu0 %v4124_v10, %s4271_s5  ;;  %v3112_v10 = vld [vmem:[%s4243_s14] sm:$0xff] }
0x2d81   :  { %2044 = vrot.lane.b32.xlu2 %v4025_v11, %s4271_s5  ;;  %2545 = vmatpush.bf16.msrb.mxu2 %v3112_v10 }
0x2dcb   :  { %v2418_v27 = vpop.permute.xlu2 %2417 }
0x2dcc   :  { %v2421_v11 = vmul.f32 %v3974_v1, %v2418_v27 }
0x2dce   :  { %v2429_v7 = vsel %vm115_vm12, %v2421_v11, 0.0 }
0x2dcf   :  { %v2430_v1 = vrot.slane %v2429_v7, 4 }
0x2dd1   :  { %v2431_v36 = vadd.f32 %v2430_v1, %v2429_v7 }
0x2dd3   :  { %v866_v47 = vpop.permute.xlu2 %865  ;;  %v2432_v44 = vrot.slane %v2431_v36, 2 }
0x2dd4   :  { %868 = vst.msk [vmem:[#allocation2 + $0x2] sm:$0x3] %vm473_vm4, %v866_v47 }
0x2dd5   :  { %v2433_v42 = vadd.f32 %v2432_v44, %v2431_v36 }
0x2dd7   :  { %v2434_v24 = vrot.slane %v2433_v42, 1 }
0x2dd9   :  { %v2435_v53 = vadd.f32 %v2434_v24, %v2433_v42 }
0x2ddb   :  { %v2045_v33 = vpop.permute.xlu2 %2044 }
0x2ddc   :  { %2047 = vst.msk [vmem:[#allocation2 + $0x8] sm:$0x3] %vm473_vm4, %v2045_v33 }
0x2de2   :  { %v2413_v35 = vpop.permute.xlu0 %2412 }
0x2de3   :  { %v2420_v43 = vmul.f32 %v3964_v55, %v2413_v35  ;;  %v2466_v55 = vld [vmem:[#allocation3] sm:$0xff] }
0x2de5   :  { %v2422_v22 = vsel %vm115_vm12, %v2420_v43, 0.0 }
0x2de6   :  { %v2423_v46 = vrot.slane %v2422_v22, 4 }
0x2de8   :  { %v2424_v48 = vadd.f32 %v2423_v46, %v2422_v22 }
0x2dea   :  { %v2425_v40 = vrot.slane %v2424_v48, 2  ;;  %v1259_v50 = vpop.permute.xlu0 %1258 }
0x2deb   :  { %1261 = vst.msk [vmem:[#allocation2 + $0x4] sm:$0x3] %vm473_vm4, %v1259_v50 }
0x2dec   :  { %v2426_v52 = vadd.f32 %v2425_v40, %v2424_v48 }
0x2dee   :  { %v2427_v51 = vrot.slane %v2426_v52, 1 }
0x2df0   :  { %v2428_v28 = vadd.f32 %v2427_v51, %v2426_v52 }
0x2df2   :  { %v2443_v54 = vsel %vm375_vm2, %v2435_v53, %v2428_v28  ;;  %v2438_v56 = vpop.permute.xlu0 %2437  ;;  %v2464_v58 = vld [vmem:[#allocation2] sm:$0xff] }
0x2df3   :  { %2445 = vst.msk [vmem:[#allocation3 + $0xa] sm:$0x3] %vm479_vm13, %v2443_v54 }
0x2df4   :  { %2440 = vst.msk [vmem:[#allocation2 + $0xa] sm:$0x3] %vm473_vm4, %v2438_v56 }
0x2df5   :  { %2457 = vst.msk [vmem:[#allocation5 + $0x2] sm:$0x3] %vm473_vm4, %v2438_v56 }
0x2dfa   :  { %v2467_v37 = vld [vmem:[#allocation3 + $0x8] sm:$0xf] }
0x2dfb   :  { %v2473_v57 = vpack.c.bf16 %v2467_v37, %v2466_v55  ;;  %v2465_v60 = vld [vmem:[#allocation2 + $0x8] sm:$0xf] }
0x2dfc   :  { %v2468_v61 = vpack.c.bf16 %v2465_v60, %v2464_v58 }
0x2dfd   :  { %3019 = vmatmul.msk.bf16.vlgmr.msrb.gmra.mxu1 %vm115_vm12, %v2473_v57 }
0x2dfe   :  { %3028 = vmatmul.msk.bf16.vlgmr.msrb.gmra.mxu2 %vm171_vm1, %v2468_v61  ;;  %vm2590_vm1 = vcmask 1043456  }
0x2e7a   :  { %v2518_v0 = vpop.f32.mrf.mxu1 }
0x2e81   :  { %v2547_v38 = vpop.f32.mrf.mxu2 }
0x2e82   :  { %v2548_v9 = vadd.f32 %v2547_v38, %v2518_v0  ;;  %v2520_v12 = vpop.f32.mrf.mxu1 }
0x2e84   :  { %v2556_v5 = vadd.f32 %v3143_v3, %v2548_v9 }
0x2e89   :  { %v2549_v31 = vpop.f32.mrf.mxu2 }
0x2e8a   :  { %v2550_v39 = vadd.f32 %v2549_v31, %v2520_v12 }
0x2e8c   :  { %v2557_v15 = vadd.f32 %v3143_v3, %v2550_v39 }
0x2e8e   :  { %v2558_v41 = vpack.c.bf16 %v2557_v15, %v2556_v5 }
0x2e90   :  { %3033 = vmatmul.msk.bf16.vlgmr.msrb.gmra.mxu3 %vm138_vm0, %v2558_v41 }
0x2f13   :  { %v2583_v8 = vpop.f32.mrf.mxu3 }
0x2f14   :  { %v2584_v18 = vadd.f32 %v3144_v45, %v2583_v8 }
0x2f16   :  { %2588 = vmax.xlane.f32.xlu2 %v2584_v18 }
0x2f1b   :  { %v2585_v62 = vpop.f32.mrf.mxu3 }
0x2f1c   :  { %v2586_v49 = vadd.f32 %v3144_v45, %v2585_v62 }
0x2f1e   :  { %v2591_v13 = vsel %vm2590_vm1, %v2586_v49, -inf }
0x2f1f   :  { %2592 = vmax.xlane.f32.xlu1 %v2591_v13 }
0x2f2e   :  { %2447 = vrot.lane.b32.xlu2 %v4101_v4, %s4271_s5 }
0x2f89   :  { %v2589_v14 = vpop.xlane.xlu2 %2588 }
0x2f8a   :  { %v2594_v16 = vsub.f32 %v2584_v18, %v2589_v14 }
0x2f8c   :  { %v2596_v17 = vmul.f32 1.442695, %v2594_v16 }
0x2f8e   :  { %3289 = vpow2.f32 %v2596_v17 }
0x2f91   :  { %v2448_v19 = vpop.permute.xlu2 %2447 }
0x2f92   :  { %2450 = vst.msk [vmem:[#allocation5] sm:$0x3] %vm473_vm4, %v2448_v19  ;;  %v2593_v20 = vpop.xlane.xlu1 %2592 }
0x2f93   :  { %v2595_v21 = vsub.f32 %v2586_v49, %v2593_v20  ;;  %2627 = dma.vmem_to_hbm [thread:$0]  %s2620_s18, 64, %s2622_s12, [#allocation6], %s4271_s5, %s4271_s5, %s3360_s27  }
0x2f94   :  { %v3290_v29 = vpop.eup %3289 }
0x2f95   :  { %v2598_v23 = vmul.f32 1.442695, %v2595_v21  ;;  %2600 = vadd.xlane.f32.xlu0 %v3290_v29 }
0x2f97   :  { %3291 = vpow2.f32 %v2598_v23 }
0x2f9d   :  { %v3292_v25 = vpop.eup %3291 }
0x2f9e   :  { %v2602_v27 = vsel %vm2590_vm1, %v3292_v25, 0.0 }
0x2f9f   :  { %2603 = vadd.xlane.f32.xlu1 %v2602_v27 }
0x2fa9   :  { %2452 = vrot.lane.b32.xlu0 %v4091_v2, %s3358_s16 }
0x2fb8   :  { %2459 = vrot.lane.b32.xlu1 %v4114_v6, %s3358_s16 }
0x3008   :  { %v2601_v4 = vpop.xlane.xlu0 %2600 }
0x3009   :  { %3293 = vlog2.f32 %v2601_v4 }
0x300f   :  { %v3294_v30 = vpop.eup %3293 }
0x3010   :  { %v2606_v26 = vmul.f32 0.6931472, %v3294_v30 }
0x3012   :  { %v2609_v47 = vsub.f32 %v2594_v16, %v2606_v26  ;;  %v2604_v2 = vpop.xlane.xlu1 %2603 }
0x3013   :  { %3295 = vlog2.f32 %v2604_v2 }
0x3014   :  { %2611 = vst [vmem:[%s4248_s19] sm:$0xff] %v2609_v47 }
0x3019   :  { %v3296_v59 = vpop.eup %3295 }
0x301a   :  { %v2608_v11 = vmul.f32 0.6931472, %v3296_v59 }
0x301b   :  { %v2453_v10 = vpop.permute.xlu0 %2452 }
0x301c   :  { %v2610_v32 = vsub.f32 %v2595_v21, %v2608_v11  ;;  %2455 = vst.msk [vmem:[#allocation7] sm:$0x3] %vm473_vm4, %v2453_v10 }
0x301e   :  { %2612 = vst [vmem:[%s4248_s19 + $0x8] sm:$0xf] %v2610_v32 }
0x302a   :  { %v2460_v6 = vpop.permute.xlu1 %2459 }
0x302b   :  { %2463 = vst.msk [vmem:[#allocation7 + $0x2] sm:$0x3] %vm473_vm4, %v2460_v6 }
0x302c   :  { %2640 = dma.vmem_to_hbm [thread:$0]  %s2633_s6, 64, %s2635_s29, [#allocation8], %s4271_s5, %s4271_s5, %s3360_s27  }
0x302d   :  { %3351 = dma.done.wait [#allocation6], 64  }
0x302e   :  { %3352 = vsyncadd [#allocation6], 4294967232 }
0x302f   :  { %3353 = dma.done.wait [#allocation8], 64  }
0x3030   :  { %3354 = vsyncadd [#allocation8], 4294967232 }
0x3031   :  { %2651 = vsyncpa [#allocation6], 1 }
0x3032   :  { %2652 = vsyncpa [#allocation8], 1 }

</bundles_post_ra>
